<compile_context>
chip_gen: v7x
topology: tpu7x:2x2x1
jax: 0.10.0
libtpu: 0.0.40
codegen_flags: <defaults>
</compile_context>

<pallas_src>
import functools

import jax
import jax.numpy as jnp
from jax import lax
from jax.experimental import pallas as pl
from jax.experimental.pallas import tpu as pltpu


# ----------------------------- Pallas kernel --------------------------------
def decoder_lstm_kernel(x_ref, wih0_ref, b_ref, wf_ref, wout_ref, bout_ref,
                        out_ref, zxb_ref, hs_ref, *, T, Bp):
    Hp = hs_ref.shape[-1]
    H2 = 2 * Hp

    # ---- Phases A+B run once (first vocab tile); scratch persists across grid.
    @pl.when(pl.program_id(0) == 0)
    def _phases_ab():
        # Phase A: hoisted layer-0 input projection for ALL timesteps, written
        # directly in the interleaved 8Hp gate layout with both biases folded in.
        zxb_ref[...] = (jnp.dot(x_ref[...], wih0_ref[...],
                                preferred_element_type=jnp.float32)
                        + b_ref[...])

        wf = wf_ref[...]        # fused recurrent weight [[Whh0|Wih1],[0|Whh1]]

        # Priming: layer-0 at t=0 (h0(-1)=c0(-1)=0, so z0(0) is just the even
        # blocks of zxb[0]; the forget gate is irrelevant since c_prev == 0).
        z0 = zxb_ref[pl.ds(0, Bp), :]
        i0 = jax.nn.sigmoid(z0[:, 0 * Hp:1 * Hp])
        g0 = jnp.tanh(z0[:, 4 * Hp:5 * Hp])
        o0 = jax.nn.sigmoid(z0[:, 6 * Hp:7 * Hp])
        c0 = i0 * g0
        h0 = o0 * jnp.tanh(c0)
        zeros_h = jnp.zeros((Bp, Hp), jnp.float32)
        hc0 = jnp.concatenate([h0, zeros_h], axis=-1)   # [h0(0) | h1(-1)=0]
        cc0 = jnp.concatenate([c0, zeros_h], axis=-1)   # [c0(0) | c1(-1)=0]

        # Phase B: wavefront recurrence.  Iteration t computes, with ONE fused
        # MXU matmul, layer-1's gates for step t (odd blocks) and the recurrent
        # half of layer-0's gates for step t+1 (even blocks); the combined gate
        # math then runs on contiguous lane-aligned (Bp, 2Hp) slices.
        def step(t, carry):
            hc, cc = carry
            z = jnp.dot(hc, wf, preferred_element_type=jnp.float32)
            tn = jnp.minimum(t + 1, T - 1)   # last step's layer-0 half is discarded
            z = z + zxb_ref[pl.ds(pl.multiple_of(tn * Bp, 8), Bp), :]
            i = jax.nn.sigmoid(z[:, 0 * H2:1 * H2])
            f = jax.nn.sigmoid(z[:, 1 * H2:2 * H2])
            g = jnp.tanh(z[:, 2 * H2:3 * H2])
            o = jax.nn.sigmoid(z[:, 3 * H2:4 * H2])
            cc = f * cc + i * g               # [c0(t+1) | c1(t)]
            hc = o * jnp.tanh(cc)             # [h0(t+1) | h1(t)]
            hs_ref[pl.ds(pl.multiple_of(t * Bp, 8), Bp), :] = hc[:, Hp:H2]
            return hc, cc

        # Full unroll for short captions; partial unroll bounds vreg pressure
        # for long sequences.
        lax.fori_loop(0, T, step, (hc0, cc0), unroll=True if T <= 32 else 8)

    # ---- Phase C: batched output projection for this vocab tile (lane-dense).
    out_ref[...] = (jnp.dot(hs_ref[...], wout_ref[...],
                            preferred_element_type=jnp.float32)
                    + bout_ref[...])


# ------------------------------ param packing --------------------------------
def _round_up(x, m):
    return ((x + m - 1) // m) * m


def _place_gates(dst, w, H, Hp, parity, row0=0):
    """Scatter the 4 gate blocks of w ((K, 4H), PyTorch order [i|f|g|o]) into
    the interleaved combined layout: gate g of layer `parity` goes to column
    block 2*g + parity (each block Hp wide, real data in its first H cols)."""
    K = w.shape[0]
    for g in range(4):
        col = (2 * g + parity) * Hp
        dst = dst.at[row0:row0 + K, col:col + H].set(w[:, g * H:(g + 1) * H])
    return dst


# ------------------------------- wrapper -------------------------------------
def decoder_rnn_forward(features, captions, params, *, vocab_tile=128):
    """features: (B, E) f32, captions: (B, L) int32 -> logits (B, L, V)."""
    assert vocab_tile % 128 == 0
    embed_tbl = params["embed"]                       # (V, E), row 0 == 0 (padding_idx)
    emb = embed_tbl[captions[:, :-1]]                 # (B, L-1, E)
    x_seq = jnp.concatenate([features[:, None, :], emb], axis=1)  # (B, T, E)
    B, T, E = x_seq.shape
    H = params["whh0"].shape[0]
    V = params["wout"].shape[1]

    Bp = _round_up(B, 8)          # sublane multiple
    Hp = _round_up(H, 128)        # lane multiple -> aligned gate slices
    Vp = _round_up(V, vocab_tile) # lane-dense output tiles
    nvt = Vp // vocab_tile

    # time-major, batch-padded, flattened to (T*Bp, E)
    x_tbe = jnp.transpose(x_seq, (1, 0, 2)).astype(jnp.float32)   # (T, B, E)
    x2d = jnp.zeros((T, Bp, E), jnp.float32).at[:, :B, :].set(x_tbe).reshape(T * Bp, E)

    # Zero-padded params in the interleaved gate layout.  Padded gate columns
    # give z=0 -> padded h/c lanes stay exactly 0; padded vocab columns give
    # logits 0 and are sliced away -> results are exact.
    wih0_p = _place_gates(jnp.zeros((E, 8 * Hp), jnp.float32),
                          params["wih0"], H, Hp, parity=0)          # (E, 8Hp)
    b_p = _place_gates(jnp.zeros((1, 8 * Hp), jnp.float32),
                       params["b0"], H, Hp, parity=0)               # b0 -> even
    b_p = _place_gates(b_p, params["b1"], H, Hp, parity=1)          # b1 -> odd
    wf_p = jnp.zeros((2 * Hp, 8 * Hp), jnp.float32)                 # fused recurrent
    wf_p = _place_gates(wf_p, params["whh0"], H, Hp, parity=0, row0=0)
    wf_p = _place_gates(wf_p, params["wih1"], H, Hp, parity=1, row0=0)
    wf_p = _place_gates(wf_p, params["whh1"], H, Hp, parity=1, row0=Hp)
    wout_p = jnp.zeros((Hp, Vp), jnp.float32).at[:H, :V].set(params["wout"])
    bout_p = jnp.zeros((1, Vp), jnp.float32).at[:, :V].set(params["bout"])

    kernel = functools.partial(decoder_lstm_kernel, T=T, Bp=Bp)

    # TODO(synk): on v6e/v7x cast the Phase A/C matmul operands to bf16 (keep
    # the recurrence in f32) and re-derive the tile/VMEM budget for v7x.
    out2d = pl.pallas_call(
        kernel,
        out_shape=jax.ShapeDtypeStruct((T * Bp, Vp), jnp.float32),
        grid_spec=pltpu.PrefetchScalarGridSpec(
            num_scalar_prefetch=0,
            grid=(nvt,),
            in_specs=[
                pl.BlockSpec((T * Bp, E), lambda j: (0, 0)),        # x2d
                pl.BlockSpec((E, 8 * Hp), lambda j: (0, 0)),        # wih0 (interleaved)
                pl.BlockSpec((1, 8 * Hp), lambda j: (0, 0)),        # b0|b1 (interleaved)
                pl.BlockSpec((2 * Hp, 8 * Hp), lambda j: (0, 0)),   # fused recurrent W
                pl.BlockSpec((Hp, vocab_tile), lambda j: (0, j)),   # W_out tile
                pl.BlockSpec((1, vocab_tile), lambda j: (0, j)),    # b_out tile
            ],
            out_specs=pl.BlockSpec((T * Bp, vocab_tile), lambda j: (0, j)),
            scratch_shapes=[
                pltpu.VMEM((T * Bp, 8 * Hp), jnp.float32),  # zx+b slab (interleaved)
                pltpu.VMEM((T * Bp, Hp), jnp.float32),      # h1 history
            ],
        ),
        compiler_params=pltpu.CompilerParams(
            # Phase C tiles depend on Phase A/B done at grid step 0 (scratch),
            # so the vocab axis must stay sequential within this kernel.
            dimension_semantics=("arbitrary",),
        ),
    )(x2d, wih0_p, b_p, wf_p, wout_p, bout_p)

    out = out2d.reshape(T, Bp, Vp)[:, :B, :V]          # drop padding
    return jnp.transpose(out, (1, 0, 2))               # (B, T, V) batch-first


# --------------------------- pure-JAX reference ------------------------------
def decoder_rnn_reference(features, captions, params):
    embed_tbl = params["embed"]
    emb = embed_tbl[captions[:, :-1]]
    x_seq = jnp.concatenate([features[:, None, :], emb], axis=1)  # (B, T, E)
    H = params["whh0"].shape[0]

    def cell(x_in, h, c, wih, whh, b):
        z = x_in @ wih + h @ whh + b
        i = jax.nn.sigmoid(z[:, 0:H])
        f = jax.nn.sigmoid(z[:, H:2 * H])
        g = jnp.tanh(z[:, 2 * H:3 * H])
        o = jax.nn.sigmoid(z[:, 3 * H:4 * H])
        c_new = f * c + i * g
        return o * jnp.tanh(c_new), c_new

    B = features.shape[0]

    def step(carry, x_t):
        h0, c0, h1, c1 = carry
        h0, c0 = cell(x_t, h0, c0, params["wih0"], params["whh0"], params["b0"])
        h1, c1 = cell(h0, h1, c1, params["wih1"], params["whh1"], params["b1"])
        return (h0, c0, h1, c1), h1

    init = tuple(jnp.zeros((B, H), jnp.float32) for _ in range(4))
    _, hs = lax.scan(step, init, jnp.transpose(x_seq, (1, 0, 2)))  # (T, B, H)
    logits = hs @ params["wout"] + params["bout"]                  # (T, B, V)
    return jnp.transpose(logits, (1, 0, 2))


# --------------------------------- main ---------------------------------------
if __name__ == "__main__":
    B, L, E, H, V = 2, 8, 32, 32, 320  # batch, caption len, embed, hidden, vocab

    key = jax.random.PRNGKey(0)
    ks = jax.random.split(key, 13)
    k_scale = 1.0 / jnp.sqrt(jnp.float32(H))

    embed = jax.random.normal(ks[0], (V, E), jnp.float32)
    embed = embed.at[0].set(0.0)  # padding_idx=0

    def u(k, shape):
        return jax.random.uniform(k, shape, jnp.float32, -k_scale, k_scale)

    params = {
        "embed": embed,
        # layer 0: input E -> 4H gates (i,f,g,o), stored transposed for x @ W
        "wih0": u(ks[1], (E, 4 * H)),
        "whh0": u(ks[2], (H, 4 * H)),
        "b0":   u(ks[3], (1, 4 * H)) + u(ks[4], (1, 4 * H)),  # b_ih + b_hh
        # layer 1: input H -> 4H gates
        "wih1": u(ks[5], (H, 4 * H)),
        "whh1": u(ks[6], (H, 4 * H)),
        "b1":   u(ks[7], (1, 4 * H)) + u(ks[8], (1, 4 * H)),
        # output Linear(H -> V)
        "wout": u(ks[9], (H, V)),
        "bout": u(ks[10], (1, V)),
    }

    features = jax.random.normal(ks[11], (B, E), jnp.float32)
    captions = jax.random.randint(ks[12], (B, L), 0, V, jnp.int32)

    # vocab_tile=128 exercises the multi-tile Phase-C grid at toy V
    # (use >=512 at realistic vocab sizes to fill the 256-wide MXU).
    out = decoder_rnn_forward(features, captions, params, vocab_tile=128)
    out = jax.block_until_ready(out)

    ref = decoder_rnn_reference(features, captions, params)
    assert out.shape == (B, L, V), out.shape
    assert jnp.allclose(out, ref, atol=1e-4, rtol=1e-4), \
        float(jnp.max(jnp.abs(out - ref)))

    print("KERNEL_OK")
</pallas_src>

<mosaic_0001>
module attributes {stable_mosaic.version = 11 : i64} {
  func.func @decoder_lstm_kernel(%arg0: i32, %arg1: memref<64x32xf32, #tpu.memory_space<vmem>>, %arg2: memref<32x1024xf32, #tpu.memory_space<vmem>>, %arg3: memref<1x1024xf32, #tpu.memory_space<vmem>>, %arg4: memref<256x1024xf32, #tpu.memory_space<vmem>>, %arg5: memref<128x128xf32, #tpu.memory_space<vmem>>, %arg6: memref<1x128xf32, #tpu.memory_space<vmem>>, %arg7: memref<64x128xf32, #tpu.memory_space<vmem>>, %arg8: memref<64x1024xf32, #tpu.memory_space<vmem>>, %arg9: memref<64x128xf32, #tpu.memory_space<vmem>>) attributes {dimension_semantics = [#tpu.dimension_semantics<arbitrary>], iteration_bounds = array<i64: 3>, scalar_prefetch = 0 : i64, scratch_operands = 2 : i64, tpu.core_type = #tpu.core_type<tc>, window_params = [{pipeline_mode = #tpu.pipeline_mode<synchronous>, transform_indices = @transform_0, window_bounds = array<i64: 64, 32>}, {pipeline_mode = #tpu.pipeline_mode<synchronous>, transform_indices = @transform_1, window_bounds = array<i64: 32, 1024>}, {pipeline_mode = #tpu.pipeline_mode<synchronous>, transform_indices = @transform_2, window_bounds = array<i64: 1, 1024>}, {pipeline_mode = #tpu.pipeline_mode<synchronous>, transform_indices = @transform_3, window_bounds = array<i64: 256, 1024>}, {transform_indices = @transform_4, window_bounds = array<i64: 128, 128>}, {transform_indices = @transform_5, window_bounds = array<i64: 1, 128>}, {transform_indices = @transform_6, window_bounds = array<i64: 64, 128>}]} {
    %c0_i32 = arith.constant 0 : i32
    %0 = arith.cmpi eq, %arg0, %c0_i32 : i32
    %1 = arith.extui %0 : i1 to i32
    %c0_i32_0 = arith.constant 0 : i32
    %2 = arith.cmpi ne, %1, %c0_i32_0 : i32
    scf.if %2 {
      %c0_8 = arith.constant 0 : index
      %c0_9 = arith.constant 0 : index
      %10 = vector.load %arg1[%c0_8, %c0_9] : memref<64x32xf32, #tpu.memory_space<vmem>>, vector<64x32xf32>
      %c0_10 = arith.constant 0 : index
      %c0_11 = arith.constant 0 : index
      %11 = vector.load %arg2[%c0_10, %c0_11] : memref<32x1024xf32, #tpu.memory_space<vmem>>, vector<32x1024xf32>
      %cst_12 = arith.constant dense<0.000000e+00> : vector<64x1024xf32>
      %12 = tpu.matmul %10, %11, %cst_12 {dimension_numbers = #tpu.dot_dimension_numbers<[1], [0], [0], [1], [0, 0, 1, 1], [], []>} : vector<64x32xf32>, vector<32x1024xf32>, vector<64x1024xf32> -> vector<64x1024xf32>
      %c0_13 = arith.constant 0 : index
      %c0_14 = arith.constant 0 : index
      %13 = vector.load %arg3[%c0_13, %c0_14] : memref<1x1024xf32, #tpu.memory_space<vmem>>, vector<1x1024xf32>
      %14 = vector.broadcast %13 : vector<1x1024xf32> to vector<64x1024xf32>
      %15 = arith.addf %12, %14 : vector<64x1024xf32>
      %c0_15 = arith.constant 0 : index
      %c0_16 = arith.constant 0 : index
      %16 = vector.load %arg8[%c0_15, %c0_16] : memref<64x1024xf32, #tpu.memory_space<vmem>>, vector<64x1024xf32>
      tpu.vector_store %arg8[%c0_15, %c0_16], %15 {strides = array<i32>} : memref<64x1024xf32, #tpu.memory_space<vmem>>, vector<64x1024xf32>,
      %c0_17 = arith.constant 0 : index
      %c0_18 = arith.constant 0 : index
      %17 = vector.load %arg4[%c0_17, %c0_18] : memref<256x1024xf32, #tpu.memory_space<vmem>>, vector<256x1024xf32>
      %c0_19 = arith.constant 0 : index
      %c0_20 = arith.constant 0 : index
      %18 = vector.load %arg8[%c0_19, %c0_20] : memref<64x1024xf32, #tpu.memory_space<vmem>>, vector<8x1024xf32>
      %19 = vector.extract_strided_slice %18 {offsets = [0, 0], sizes = [8, 128], strides = [1, 1]} : vector<8x1024xf32> to vector<8x128xf32>
      %20 = arith.negf %19 : vector<8x128xf32>
      %21 = math.exp %20 : vector<8x128xf32>
      %cst_21 = arith.constant 1.000000e+00 : f32
      %22 = vector.broadcast %cst_21 : f32 to vector<8x128xf32>
      %23 = arith.addf %22, %21 : vector<8x128xf32>
      %24 = arith.divf %22, %23 : vector<8x128xf32>
      %25 = vector.extract_strided_slice %18 {offsets = [0, 512], sizes = [8, 128], strides = [1, 1]} : vector<8x1024xf32> to vector<8x128xf32>
      %26 = math.tanh %25 : vector<8x128xf32>
      %27 = vector.extract_strided_slice %18 {offsets = [0, 768], sizes = [8, 128], strides = [1, 1]} : vector<8x1024xf32> to vector<8x128xf32>
      %28 = arith.negf %27 : vector<8x128xf32>
      %29 = math.exp %28 : vector<8x128xf32>
      %cst_22 = arith.constant 1.000000e+00 : f32
      %30 = vector.broadcast %cst_22 : f32 to vector<8x128xf32>
      %31 = arith.addf %30, %29 : vector<8x128xf32>
      %32 = arith.divf %30, %31 : vector<8x128xf32>
      %33 = arith.mulf %24, %26 : vector<8x128xf32>
      %34 = math.tanh %33 : vector<8x128xf32>
      %35 = arith.mulf %32, %34 : vector<8x128xf32>
      %cst_23 = arith.constant 0.000000e+00 : f32
      %36 = vector.broadcast %cst_23 : f32 to vector<8x128xf32>
      %37 = tpu.concatenate %35, %36 in 1 : vector<8x128xf32>, vector<8x128xf32> -> vector<8x256xf32>
      %38 = tpu.concatenate %33, %36 in 1 : vector<8x128xf32>, vector<8x128xf32> -> vector<8x256xf32>
      %c0_i32_24 = arith.constant 0 : i32
      %cst_25 = arith.constant dense<0.000000e+00> : vector<8x1024xf32>
      %39 = tpu.matmul %37, %17, %cst_25 {dimension_numbers = #tpu.dot_dimension_numbers<[1], [0], [0], [1], [0, 0, 1, 1], [], []>} : vector<8x256xf32>, vector<256x1024xf32>, vector<8x1024xf32> -> vector<8x1024xf32>
      %c1_i32 = arith.constant 1 : i32
      %40 = arith.addi %c0_i32_24, %c1_i32 : i32
      %c7_i32 = arith.constant 7 : i32
      %41 = arith.minsi %40, %c7_i32 : i32
      %c8_i32 = arith.constant 8 : i32
      %42 = arith.muli %41, %c8_i32 : i32
      %43 = tpu.assume_multiple %42, 8 : i32
      %44 = arith.index_cast %43 : i32 to index
      %c0_26 = arith.constant 0 : index
      %45 = vector.load %arg8[%44, %c0_26] : memref<64x1024xf32, #tpu.memory_space<vmem>>, vector<8x1024xf32>
      %46 = arith.addf %39, %45 : vector<8x1024xf32>
      %47 = vector.extract_strided_slice %46 {offsets = [0, 0], sizes = [8, 256], strides = [1, 1]} : vector<8x1024xf32> to vector<8x256xf32>
      %48 = arith.negf %47 : vector<8x256xf32>
      %49 = math.exp %48 : vector<8x256xf32>
      %cst_27 = arith.constant 1.000000e+00 : f32
      %50 = vector.broadcast %cst_27 : f32 to vector<8x256xf32>
      %51 = arith.addf %50, %49 : vector<8x256xf32>
      %52 = arith.divf %50, %51 : vector<8x256xf32>
      %53 = vector.extract_strided_slice %46 {offsets = [0, 256], sizes = [8, 256], strides = [1, 1]} : vector<8x1024xf32> to vector<8x256xf32>
      %54 = arith.negf %53 : vector<8x256xf32>
      %55 = math.exp %54 : vector<8x256xf32>
      %cst_28 = arith.constant 1.000000e+00 : f32
      %56 = vector.broadcast %cst_28 : f32 to vector<8x256xf32>
      %57 = arith.addf %56, %55 : vector<8x256xf32>
      %58 = arith.divf %56, %57 : vector<8x256xf32>
      %59 = vector.extract_strided_slice %46 {offsets = [0, 512], sizes = [8, 256], strides = [1, 1]} : vector<8x1024xf32> to vector<8x256xf32>
      %60 = math.tanh %59 : vector<8x256xf32>
      %61 = vector.extract_strided_slice %46 {offsets = [0, 768], sizes = [8, 256], strides = [1, 1]} : vector<8x1024xf32> to vector<8x256xf32>
      %62 = arith.negf %61 : vector<8x256xf32>
      %63 = math.exp %62 : vector<8x256xf32>
      %cst_29 = arith.constant 1.000000e+00 : f32
      %64 = vector.broadcast %cst_29 : f32 to vector<8x256xf32>
      %65 = arith.addf %64, %63 : vector<8x256xf32>
      %66 = arith.divf %64, %65 : vector<8x256xf32>
      %67 = arith.mulf %58, %38 : vector<8x256xf32>
      %68 = arith.mulf %52, %60 : vector<8x256xf32>
      %69 = arith.addf %67, %68 : vector<8x256xf32>
      %70 = math.tanh %69 : vector<8x256xf32>
      %71 = arith.mulf %66, %70 : vector<8x256xf32>
      %72 = vector.extract_strided_slice %71 {offsets = [0, 128], sizes = [8, 128], strides = [1, 1]} : vector<8x256xf32> to vector<8x128xf32>
      %c8_i32_30 = arith.constant 8 : i32
      %73 = arith.muli %c0_i32_24, %c8_i32_30 : i32
      %74 = tpu.assume_multiple %73, 8 : i32
      %75 = arith.index_cast %74 : i32 to index
      %c0_31 = arith.constant 0 : index
      %76 = vector.load %arg9[%75, %c0_31] : memref<64x128xf32, #tpu.memory_space<vmem>>, vector<8x128xf32>
      tpu.vector_store %arg9[%75, %c0_31], %72 {strides = array<i32>} : memref<64x128xf32, #tpu.memory_space<vmem>>, vector<8x128xf32>,
      %c1_i32_32 = arith.constant 1 : i32
      %cst_33 = arith.constant dense<0.000000e+00> : vector<8x1024xf32>
      %77 = tpu.matmul %71, %17, %cst_33 {dimension_numbers = #tpu.dot_dimension_numbers<[1], [0], [0], [1], [0, 0, 1, 1], [], []>} : vector<8x256xf32>, vector<256x1024xf32>, vector<8x1024xf32> -> vector<8x1024xf32>
      %c1_i32_34 = arith.constant 1 : i32
      %78 = arith.addi %c1_i32_32, %c1_i32_34 : i32
      %c7_i32_35 = arith.constant 7 : i32
      %79 = arith.minsi %78, %c7_i32_35 : i32
      %c8_i32_36 = arith.constant 8 : i32
      %80 = arith.muli %79, %c8_i32_36 : i32
      %81 = tpu.assume_multiple %80, 8 : i32
      %82 = arith.index_cast %81 : i32 to index
      %c0_37 = arith.constant 0 : index
      %83 = vector.load %arg8[%82, %c0_37] : memref<64x1024xf32, #tpu.memory_space<vmem>>, vector<8x1024xf32>
      %84 = arith.addf %77, %83 : vector<8x1024xf32>
      %85 = vector.extract_strided_slice %84 {offsets = [0, 0], sizes = [8, 256], strides = [1, 1]} : vector<8x1024xf32> to vector<8x256xf32>
      %86 = arith.negf %85 : vector<8x256xf32>
      %87 = math.exp %86 : vector<8x256xf32>
      %cst_38 = arith.constant 1.000000e+00 : f32
      %88 = vector.broadcast %cst_38 : f32 to vector<8x256xf32>
      %89 = arith.addf %88, %87 : vector<8x256xf32>
      %90 = arith.divf %88, %89 : vector<8x256xf32>
      %91 = vector.extract_strided_slice %84 {offsets = [0, 256], sizes = [8, 256], strides = [1, 1]} : vector<8x1024xf32> to vector<8x256xf32>
      %92 = arith.negf %91 : vector<8x256xf32>
      %93 = math.exp %92 : vector<8x256xf32>
      %cst_39 = arith.constant 1.000000e+00 : f32
      %94 = vector.broadcast %cst_39 : f32 to vector<8x256xf32>
      %95 = arith.addf %94, %93 : vector<8x256xf32>
      %96 = arith.divf %94, %95 : vector<8x256xf32>
      %97 = vector.extract_strided_slice %84 {offsets = [0, 512], sizes = [8, 256], strides = [1, 1]} : vector<8x1024xf32> to vector<8x256xf32>
      %98 = math.tanh %97 : vector<8x256xf32>
      %99 = vector.extract_strided_slice %84 {offsets = [0, 768], sizes = [8, 256], strides = [1, 1]} : vector<8x1024xf32> to vector<8x256xf32>
      %100 = arith.negf %99 : vector<8x256xf32>
      %101 = math.exp %100 : vector<8x256xf32>
      %cst_40 = arith.constant 1.000000e+00 : f32
      %102 = vector.broadcast %cst_40 : f32 to vector<8x256xf32>
      %103 = arith.addf %102, %101 : vector<8x256xf32>
      %104 = arith.divf %102, %103 : vector<8x256xf32>
      %105 = arith.mulf %96, %69 : vector<8x256xf32>
      %106 = arith.mulf %90, %98 : vector<8x256xf32>
      %107 = arith.addf %105, %106 : vector<8x256xf32>
      %108 = math.tanh %107 : vector<8x256xf32>
      %109 = arith.mulf %104, %108 : vector<8x256xf32>
      %110 = vector.extract_strided_slice %109 {offsets = [0, 128], sizes = [8, 128], strides = [1, 1]} : vector<8x256xf32> to vector<8x128xf32>
      %c8_i32_41 = arith.constant 8 : i32
      %111 = arith.muli %c1_i32_32, %c8_i32_41 : i32
      %112 = tpu.assume_multiple %111, 8 : i32
      %113 = arith.index_cast %112 : i32 to index
      %c0_42 = arith.constant 0 : index
      %114 = vector.load %arg9[%113, %c0_42] : memref<64x128xf32, #tpu.memory_space<vmem>>, vector<8x128xf32>
      tpu.vector_store %arg9[%113, %c0_42], %110 {strides = array<i32>} : memref<64x128xf32, #tpu.memory_space<vmem>>, vector<8x128xf32>,
      %c2_i32 = arith.constant 2 : i32
      %cst_43 = arith.constant dense<0.000000e+00> : vector<8x1024xf32>
      %115 = tpu.matmul %109, %17, %cst_43 {dimension_numbers = #tpu.dot_dimension_numbers<[1], [0], [0], [1], [0, 0, 1, 1], [], []>} : vector<8x256xf32>, vector<256x1024xf32>, vector<8x1024xf32> -> vector<8x1024xf32>
      %c1_i32_44 = arith.constant 1 : i32
      %116 = arith.addi %c2_i32, %c1_i32_44 : i32
      %c7_i32_45 = arith.constant 7 : i32
      %117 = arith.minsi %116, %c7_i32_45 : i32
      %c8_i32_46 = arith.constant 8 : i32
      %118 = arith.muli %117, %c8_i32_46 : i32
      %119 = tpu.assume_multiple %118, 8 : i32
      %120 = arith.index_cast %119 : i32 to index
      %c0_47 = arith.constant 0 : index
      %121 = vector.load %arg8[%120, %c0_47] : memref<64x1024xf32, #tpu.memory_space<vmem>>, vector<8x1024xf32>
      %122 = arith.addf %115, %121 : vector<8x1024xf32>
      %123 = vector.extract_strided_slice %122 {offsets = [0, 0], sizes = [8, 256], strides = [1, 1]} : vector<8x1024xf32> to vector<8x256xf32>
      %124 = arith.negf %123 : vector<8x256xf32>
      %125 = math.exp %124 : vector<8x256xf32>
      %cst_48 = arith.constant 1.000000e+00 : f32
      %126 = vector.broadcast %cst_48 : f32 to vector<8x256xf32>
      %127 = arith.addf %126, %125 : vector<8x256xf32>
      %128 = arith.divf %126, %127 : vector<8x256xf32>
      %129 = vector.extract_strided_slice %122 {offsets = [0, 256], sizes = [8, 256], strides = [1, 1]} : vector<8x1024xf32> to vector<8x256xf32>
      %130 = arith.negf %129 : vector<8x256xf32>
      %131 = math.exp %130 : vector<8x256xf32>
      %cst_49 = arith.constant 1.000000e+00 : f32
      %132 = vector.broadcast %cst_49 : f32 to vector<8x256xf32>
      %133 = arith.addf %132, %131 : vector<8x256xf32>
      %134 = arith.divf %132, %133 : vector<8x256xf32>
      %135 = vector.extract_strided_slice %122 {offsets = [0, 512], sizes = [8, 256], strides = [1, 1]} : vector<8x1024xf32> to vector<8x256xf32>
      %136 = math.tanh %135 : vector<8x256xf32>
      %137 = vector.extract_strided_slice %122 {offsets = [0, 768], sizes = [8, 256], strides = [1, 1]} : vector<8x1024xf32> to vector<8x256xf32>
      %138 = arith.negf %137 : vector<8x256xf32>
      %139 = math.exp %138 : vector<8x256xf32>
      %cst_50 = arith.constant 1.000000e+00 : f32
      %140 = vector.broadcast %cst_50 : f32 to vector<8x256xf32>
      %141 = arith.addf %140, %139 : vector<8x256xf32>
      %142 = arith.divf %140, %141 : vector<8x256xf32>
      %143 = arith.mulf %134, %107 : vector<8x256xf32>
      %144 = arith.mulf %128, %136 : vector<8x256xf32>
      %145 = arith.addf %143, %144 : vector<8x256xf32>
      %146 = math.tanh %145 : vector<8x256xf32>
      %147 = arith.mulf %142, %146 : vector<8x256xf32>
      %148 = vector.extract_strided_slice %147 {offsets = [0, 128], sizes = [8, 128], strides = [1, 1]} : vector<8x256xf32> to vector<8x128xf32>
      %c8_i32_51 = arith.constant 8 : i32
      %149 = arith.muli %c2_i32, %c8_i32_51 : i32
      %150 = tpu.assume_multiple %149, 8 : i32
      %151 = arith.index_cast %150 : i32 to index
      %c0_52 = arith.constant 0 : index
      %152 = vector.load %arg9[%151, %c0_52] : memref<64x128xf32, #tpu.memory_space<vmem>>, vector<8x128xf32>
      tpu.vector_store %arg9[%151, %c0_52], %148 {strides = array<i32>} : memref<64x128xf32, #tpu.memory_space<vmem>>, vector<8x128xf32>,
      %c3_i32 = arith.constant 3 : i32
      %cst_53 = arith.constant dense<0.000000e+00> : vector<8x1024xf32>
      %153 = tpu.matmul %147, %17, %cst_53 {dimension_numbers = #tpu.dot_dimension_numbers<[1], [0], [0], [1], [0, 0, 1, 1], [], []>} : vector<8x256xf32>, vector<256x1024xf32>, vector<8x1024xf32> -> vector<8x1024xf32>
      %c1_i32_54 = arith.constant 1 : i32
      %154 = arith.addi %c3_i32, %c1_i32_54 : i32
      %c7_i32_55 = arith.constant 7 : i32
      %155 = arith.minsi %154, %c7_i32_55 : i32
      %c8_i32_56 = arith.constant 8 : i32
      %156 = arith.muli %155, %c8_i32_56 : i32
      %157 = tpu.assume_multiple %156, 8 : i32
      %158 = arith.index_cast %157 : i32 to index
      %c0_57 = arith.constant 0 : index
      %159 = vector.load %arg8[%158, %c0_57] : memref<64x1024xf32, #tpu.memory_space<vmem>>, vector<8x1024xf32>
      %160 = arith.addf %153, %159 : vector<8x1024xf32>
      %161 = vector.extract_strided_slice %160 {offsets = [0, 0], sizes = [8, 256], strides = [1, 1]} : vector<8x1024xf32> to vector<8x256xf32>
      %162 = arith.negf %161 : vector<8x256xf32>
      %163 = math.exp %162 : vector<8x256xf32>
      %cst_58 = arith.constant 1.000000e+00 : f32
      %164 = vector.broadcast %cst_58 : f32 to vector<8x256xf32>
      %165 = arith.addf %164, %163 : vector<8x256xf32>
      %166 = arith.divf %164, %165 : vector<8x256xf32>
      %167 = vector.extract_strided_slice %160 {offsets = [0, 256], sizes = [8, 256], strides = [1, 1]} : vector<8x1024xf32> to vector<8x256xf32>
      %168 = arith.negf %167 : vector<8x256xf32>
      %169 = math.exp %168 : vector<8x256xf32>
      %cst_59 = arith.constant 1.000000e+00 : f32
      %170 = vector.broadcast %cst_59 : f32 to vector<8x256xf32>
      %171 = arith.addf %170, %169 : vector<8x256xf32>
      %172 = arith.divf %170, %171 : vector<8x256xf32>
      %173 = vector.extract_strided_slice %160 {offsets = [0, 512], sizes = [8, 256], strides = [1, 1]} : vector<8x1024xf32> to vector<8x256xf32>
      %174 = math.tanh %173 : vector<8x256xf32>
      %175 = vector.extract_strided_slice %160 {offsets = [0, 768], sizes = [8, 256], strides = [1, 1]} : vector<8x1024xf32> to vector<8x256xf32>
      %176 = arith.negf %175 : vector<8x256xf32>
      %177 = math.exp %176 : vector<8x256xf32>
      %cst_60 = arith.constant 1.000000e+00 : f32
      %178 = vector.broadcast %cst_60 : f32 to vector<8x256xf32>
      %179 = arith.addf %178, %177 : vector<8x256xf32>
      %180 = arith.divf %178, %179 : vector<8x256xf32>
      %181 = arith.mulf %172, %145 : vector<8x256xf32>
      %182 = arith.mulf %166, %174 : vector<8x256xf32>
      %183 = arith.addf %181, %182 : vector<8x256xf32>
      %184 = math.tanh %183 : vector<8x256xf32>
      %185 = arith.mulf %180, %184 : vector<8x256xf32>
      %186 = vector.extract_strided_slice %185 {offsets = [0, 128], sizes = [8, 128], strides = [1, 1]} : vector<8x256xf32> to vector<8x128xf32>
      %c8_i32_61 = arith.constant 8 : i32
      %187 = arith.muli %c3_i32, %c8_i32_61 : i32
      %188 = tpu.assume_multiple %187, 8 : i32
      %189 = arith.index_cast %188 : i32 to index
      %c0_62 = arith.constant 0 : index
      %190 = vector.load %arg9[%189, %c0_62] : memref<64x128xf32, #tpu.memory_space<vmem>>, vector<8x128xf32>
      tpu.vector_store %arg9[%189, %c0_62], %186 {strides = array<i32>} : memref<64x128xf32, #tpu.memory_space<vmem>>, vector<8x128xf32>,
      %c4_i32 = arith.constant 4 : i32
      %cst_63 = arith.constant dense<0.000000e+00> : vector<8x1024xf32>
      %191 = tpu.matmul %185, %17, %cst_63 {dimension_numbers = #tpu.dot_dimension_numbers<[1], [0], [0], [1], [0, 0, 1, 1], [], []>} : vector<8x256xf32>, vector<256x1024xf32>, vector<8x1024xf32> -> vector<8x1024xf32>
      %c1_i32_64 = arith.constant 1 : i32
      %192 = arith.addi %c4_i32, %c1_i32_64 : i32
      %c7_i32_65 = arith.constant 7 : i32
      %193 = arith.minsi %192, %c7_i32_65 : i32
      %c8_i32_66 = arith.constant 8 : i32
      %194 = arith.muli %193, %c8_i32_66 : i32
      %195 = tpu.assume_multiple %194, 8 : i32
      %196 = arith.index_cast %195 : i32 to index
      %c0_67 = arith.constant 0 : index
      %197 = vector.load %arg8[%196, %c0_67] : memref<64x1024xf32, #tpu.memory_space<vmem>>, vector<8x1024xf32>
      %198 = arith.addf %191, %197 : vector<8x1024xf32>
      %199 = vector.extract_strided_slice %198 {offsets = [0, 0], sizes = [8, 256], strides = [1, 1]} : vector<8x1024xf32> to vector<8x256xf32>
      %200 = arith.negf %199 : vector<8x256xf32>
      %201 = math.exp %200 : vector<8x256xf32>
      %cst_68 = arith.constant 1.000000e+00 : f32
      %202 = vector.broadcast %cst_68 : f32 to vector<8x256xf32>
      %203 = arith.addf %202, %201 : vector<8x256xf32>
      %204 = arith.divf %202, %203 : vector<8x256xf32>
      %205 = vector.extract_strided_slice %198 {offsets = [0, 256], sizes = [8, 256], strides = [1, 1]} : vector<8x1024xf32> to vector<8x256xf32>
      %206 = arith.negf %205 : vector<8x256xf32>
      %207 = math.exp %206 : vector<8x256xf32>
      %cst_69 = arith.constant 1.000000e+00 : f32
      %208 = vector.broadcast %cst_69 : f32 to vector<8x256xf32>
      %209 = arith.addf %208, %207 : vector<8x256xf32>
      %210 = arith.divf %208, %209 : vector<8x256xf32>
      %211 = vector.extract_strided_slice %198 {offsets = [0, 512], sizes = [8, 256], strides = [1, 1]} : vector<8x1024xf32> to vector<8x256xf32>
      %212 = math.tanh %211 : vector<8x256xf32>
      %213 = vector.extract_strided_slice %198 {offsets = [0, 768], sizes = [8, 256], strides = [1, 1]} : vector<8x1024xf32> to vector<8x256xf32>
      %214 = arith.negf %213 : vector<8x256xf32>
      %215 = math.exp %214 : vector<8x256xf32>
      %cst_70 = arith.constant 1.000000e+00 : f32
      %216 = vector.broadcast %cst_70 : f32 to vector<8x256xf32>
      %217 = arith.addf %216, %215 : vector<8x256xf32>
      %218 = arith.divf %216, %217 : vector<8x256xf32>
      %219 = arith.mulf %210, %183 : vector<8x256xf32>
      %220 = arith.mulf %204, %212 : vector<8x256xf32>
      %221 = arith.addf %219, %220 : vector<8x256xf32>
      %222 = math.tanh %221 : vector<8x256xf32>
      %223 = arith.mulf %218, %222 : vector<8x256xf32>
      %224 = vector.extract_strided_slice %223 {offsets = [0, 128], sizes = [8, 128], strides = [1, 1]} : vector<8x256xf32> to vector<8x128xf32>
      %c8_i32_71 = arith.constant 8 : i32
      %225 = arith.muli %c4_i32, %c8_i32_71 : i32
      %226 = tpu.assume_multiple %225, 8 : i32
      %227 = arith.index_cast %226 : i32 to index
      %c0_72 = arith.constant 0 : index
      %228 = vector.load %arg9[%227, %c0_72] : memref<64x128xf32, #tpu.memory_space<vmem>>, vector<8x128xf32>
      tpu.vector_store %arg9[%227, %c0_72], %224 {strides = array<i32>} : memref<64x128xf32, #tpu.memory_space<vmem>>, vector<8x128xf32>,
      %c5_i32 = arith.constant 5 : i32
      %cst_73 = arith.constant dense<0.000000e+00> : vector<8x1024xf32>
      %229 = tpu.matmul %223, %17, %cst_73 {dimension_numbers = #tpu.dot_dimension_numbers<[1], [0], [0], [1], [0, 0, 1, 1], [], []>} : vector<8x256xf32>, vector<256x1024xf32>, vector<8x1024xf32> -> vector<8x1024xf32>
      %c1_i32_74 = arith.constant 1 : i32
      %230 = arith.addi %c5_i32, %c1_i32_74 : i32
      %c7_i32_75 = arith.constant 7 : i32
      %231 = arith.minsi %230, %c7_i32_75 : i32
      %c8_i32_76 = arith.constant 8 : i32
      %232 = arith.muli %231, %c8_i32_76 : i32
      %233 = tpu.assume_multiple %232, 8 : i32
      %234 = arith.index_cast %233 : i32 to index
      %c0_77 = arith.constant 0 : index
      %235 = vector.load %arg8[%234, %c0_77] : memref<64x1024xf32, #tpu.memory_space<vmem>>, vector<8x1024xf32>
      %236 = arith.addf %229, %235 : vector<8x1024xf32>
      %237 = vector.extract_strided_slice %236 {offsets = [0, 0], sizes = [8, 256], strides = [1, 1]} : vector<8x1024xf32> to vector<8x256xf32>
      %238 = arith.negf %237 : vector<8x256xf32>
      %239 = math.exp %238 : vector<8x256xf32>
      %cst_78 = arith.constant 1.000000e+00 : f32
      %240 = vector.broadcast %cst_78 : f32 to vector<8x256xf32>
      %241 = arith.addf %240, %239 : vector<8x256xf32>
      %242 = arith.divf %240, %241 : vector<8x256xf32>
      %243 = vector.extract_strided_slice %236 {offsets = [0, 256], sizes = [8, 256], strides = [1, 1]} : vector<8x1024xf32> to vector<8x256xf32>
      %244 = arith.negf %243 : vector<8x256xf32>
      %245 = math.exp %244 : vector<8x256xf32>
      %cst_79 = arith.constant 1.000000e+00 : f32
      %246 = vector.broadcast %cst_79 : f32 to vector<8x256xf32>
      %247 = arith.addf %246, %245 : vector<8x256xf32>
      %248 = arith.divf %246, %247 : vector<8x256xf32>
      %249 = vector.extract_strided_slice %236 {offsets = [0, 512], sizes = [8, 256], strides = [1, 1]} : vector<8x1024xf32> to vector<8x256xf32>
      %250 = math.tanh %249 : vector<8x256xf32>
      %251 = vector.extract_strided_slice %236 {offsets = [0, 768], sizes = [8, 256], strides = [1, 1]} : vector<8x1024xf32> to vector<8x256xf32>
      %252 = arith.negf %251 : vector<8x256xf32>
      %253 = math.exp %252 : vector<8x256xf32>
      %cst_80 = arith.constant 1.000000e+00 : f32
      %254 = vector.broadcast %cst_80 : f32 to vector<8x256xf32>
      %255 = arith.addf %254, %253 : vector<8x256xf32>
      %256 = arith.divf %254, %255 : vector<8x256xf32>
      %257 = arith.mulf %248, %221 : vector<8x256xf32>
      %258 = arith.mulf %242, %250 : vector<8x256xf32>
      %259 = arith.addf %257, %258 : vector<8x256xf32>
      %260 = math.tanh %259 : vector<8x256xf32>
      %261 = arith.mulf %256, %260 : vector<8x256xf32>
      %262 = vector.extract_strided_slice %261 {offsets = [0, 128], sizes = [8, 128], strides = [1, 1]} : vector<8x256xf32> to vector<8x128xf32>
      %c8_i32_81 = arith.constant 8 : i32
      %263 = arith.muli %c5_i32, %c8_i32_81 : i32
      %264 = tpu.assume_multiple %263, 8 : i32
      %265 = arith.index_cast %264 : i32 to index
      %c0_82 = arith.constant 0 : index
      %266 = vector.load %arg9[%265, %c0_82] : memref<64x128xf32, #tpu.memory_space<vmem>>, vector<8x128xf32>
      tpu.vector_store %arg9[%265, %c0_82], %262 {strides = array<i32>} : memref<64x128xf32, #tpu.memory_space<vmem>>, vector<8x128xf32>,
      %c6_i32 = arith.constant 6 : i32
      %cst_83 = arith.constant dense<0.000000e+00> : vector<8x1024xf32>
      %267 = tpu.matmul %261, %17, %cst_83 {dimension_numbers = #tpu.dot_dimension_numbers<[1], [0], [0], [1], [0, 0, 1, 1], [], []>} : vector<8x256xf32>, vector<256x1024xf32>, vector<8x1024xf32> -> vector<8x1024xf32>
      %c1_i32_84 = arith.constant 1 : i32
      %268 = arith.addi %c6_i32, %c1_i32_84 : i32
      %c7_i32_85 = arith.constant 7 : i32
      %269 = arith.minsi %268, %c7_i32_85 : i32
      %c8_i32_86 = arith.constant 8 : i32
      %270 = arith.muli %269, %c8_i32_86 : i32
      %271 = tpu.assume_multiple %270, 8 : i32
      %272 = arith.index_cast %271 : i32 to index
      %c0_87 = arith.constant 0 : index
      %273 = vector.load %arg8[%272, %c0_87] : memref<64x1024xf32, #tpu.memory_space<vmem>>, vector<8x1024xf32>
      %274 = arith.addf %267, %273 : vector<8x1024xf32>
      %275 = vector.extract_strided_slice %274 {offsets = [0, 0], sizes = [8, 256], strides = [1, 1]} : vector<8x1024xf32> to vector<8x256xf32>
      %276 = arith.negf %275 : vector<8x256xf32>
      %277 = math.exp %276 : vector<8x256xf32>
      %cst_88 = arith.constant 1.000000e+00 : f32
      %278 = vector.broadcast %cst_88 : f32 to vector<8x256xf32>
      %279 = arith.addf %278, %277 : vector<8x256xf32>
      %280 = arith.divf %278, %279 : vector<8x256xf32>
      %281 = vector.extract_strided_slice %274 {offsets = [0, 256], sizes = [8, 256], strides = [1, 1]} : vector<8x1024xf32> to vector<8x256xf32>
      %282 = arith.negf %281 : vector<8x256xf32>
      %283 = math.exp %282 : vector<8x256xf32>
      %cst_89 = arith.constant 1.000000e+00 : f32
      %284 = vector.broadcast %cst_89 : f32 to vector<8x256xf32>
      %285 = arith.addf %284, %283 : vector<8x256xf32>
      %286 = arith.divf %284, %285 : vector<8x256xf32>
      %287 = vector.extract_strided_slice %274 {offsets = [0, 512], sizes = [8, 256], strides = [1, 1]} : vector<8x1024xf32> to vector<8x256xf32>
      %288 = math.tanh %287 : vector<8x256xf32>
      %289 = vector.extract_strided_slice %274 {offsets = [0, 768], sizes = [8, 256], strides = [1, 1]} : vector<8x1024xf32> to vector<8x256xf32>
      %290 = arith.negf %289 : vector<8x256xf32>
      %291 = math.exp %290 : vector<8x256xf32>
      %cst_90 = arith.constant 1.000000e+00 : f32
      %292 = vector.broadcast %cst_90 : f32 to vector<8x256xf32>
      %293 = arith.addf %292, %291 : vector<8x256xf32>
      %294 = arith.divf %292, %293 : vector<8x256xf32>
      %295 = arith.mulf %286, %259 : vector<8x256xf32>
      %296 = arith.mulf %280, %288 : vector<8x256xf32>
      %297 = arith.addf %295, %296 : vector<8x256xf32>
      %298 = math.tanh %297 : vector<8x256xf32>
      %299 = arith.mulf %294, %298 : vector<8x256xf32>
      %300 = vector.extract_strided_slice %299 {offsets = [0, 128], sizes = [8, 128], strides = [1, 1]} : vector<8x256xf32> to vector<8x128xf32>
      %c8_i32_91 = arith.constant 8 : i32
      %301 = arith.muli %c6_i32, %c8_i32_91 : i32
      %302 = tpu.assume_multiple %301, 8 : i32
      %303 = arith.index_cast %302 : i32 to index
      %c0_92 = arith.constant 0 : index
      %304 = vector.load %arg9[%303, %c0_92] : memref<64x128xf32, #tpu.memory_space<vmem>>, vector<8x128xf32>
      tpu.vector_store %arg9[%303, %c0_92], %300 {strides = array<i32>} : memref<64x128xf32, #tpu.memory_space<vmem>>, vector<8x128xf32>,
      %c7_i32_93 = arith.constant 7 : i32
      %cst_94 = arith.constant dense<0.000000e+00> : vector<8x1024xf32>
      %305 = tpu.matmul %299, %17, %cst_94 {dimension_numbers = #tpu.dot_dimension_numbers<[1], [0], [0], [1], [0, 0, 1, 1], [], []>} : vector<8x256xf32>, vector<256x1024xf32>, vector<8x1024xf32> -> vector<8x1024xf32>
      %c1_i32_95 = arith.constant 1 : i32
      %306 = arith.addi %c7_i32_93, %c1_i32_95 : i32
      %c7_i32_96 = arith.constant 7 : i32
      %307 = arith.minsi %306, %c7_i32_96 : i32
      %c8_i32_97 = arith.constant 8 : i32
      %308 = arith.muli %307, %c8_i32_97 : i32
      %309 = tpu.assume_multiple %308, 8 : i32
      %310 = arith.index_cast %309 : i32 to index
      %c0_98 = arith.constant 0 : index
      %311 = vector.load %arg8[%310, %c0_98] : memref<64x1024xf32, #tpu.memory_space<vmem>>, vector<8x1024xf32>
      %312 = arith.addf %305, %311 : vector<8x1024xf32>
      %313 = vector.extract_strided_slice %312 {offsets = [0, 0], sizes = [8, 256], strides = [1, 1]} : vector<8x1024xf32> to vector<8x256xf32>
      %314 = arith.negf %313 : vector<8x256xf32>
      %315 = math.exp %314 : vector<8x256xf32>
      %cst_99 = arith.constant 1.000000e+00 : f32
      %316 = vector.broadcast %cst_99 : f32 to vector<8x256xf32>
      %317 = arith.addf %316, %315 : vector<8x256xf32>
      %318 = arith.divf %316, %317 : vector<8x256xf32>
      %319 = vector.extract_strided_slice %312 {offsets = [0, 256], sizes = [8, 256], strides = [1, 1]} : vector<8x1024xf32> to vector<8x256xf32>
      %320 = arith.negf %319 : vector<8x256xf32>
      %321 = math.exp %320 : vector<8x256xf32>
      %cst_100 = arith.constant 1.000000e+00 : f32
      %322 = vector.broadcast %cst_100 : f32 to vector<8x256xf32>
      %323 = arith.addf %322, %321 : vector<8x256xf32>
      %324 = arith.divf %322, %323 : vector<8x256xf32>
      %325 = vector.extract_strided_slice %312 {offsets = [0, 512], sizes = [8, 256], strides = [1, 1]} : vector<8x1024xf32> to vector<8x256xf32>
      %326 = math.tanh %325 : vector<8x256xf32>
      %327 = vector.extract_strided_slice %312 {offsets = [0, 768], sizes = [8, 256], strides = [1, 1]} : vector<8x1024xf32> to vector<8x256xf32>
      %328 = arith.negf %327 : vector<8x256xf32>
      %329 = math.exp %328 : vector<8x256xf32>
      %cst_101 = arith.constant 1.000000e+00 : f32
      %330 = vector.broadcast %cst_101 : f32 to vector<8x256xf32>
      %331 = arith.addf %330, %329 : vector<8x256xf32>
      %332 = arith.divf %330, %331 : vector<8x256xf32>
      %333 = arith.mulf %324, %297 : vector<8x256xf32>
      %334 = arith.mulf %318, %326 : vector<8x256xf32>
      %335 = arith.addf %333, %334 : vector<8x256xf32>
      %336 = math.tanh %335 : vector<8x256xf32>
      %337 = arith.mulf %332, %336 : vector<8x256xf32>
      %338 = vector.extract_strided_slice %337 {offsets = [0, 128], sizes = [8, 128], strides = [1, 1]} : vector<8x256xf32> to vector<8x128xf32>
      %c8_i32_102 = arith.constant 8 : i32
      %339 = arith.muli %c7_i32_93, %c8_i32_102 : i32
      %340 = tpu.assume_multiple %339, 8 : i32
      %341 = arith.index_cast %340 : i32 to index
      %c0_103 = arith.constant 0 : index
      %342 = vector.load %arg9[%341, %c0_103] : memref<64x128xf32, #tpu.memory_space<vmem>>, vector<8x128xf32>
      tpu.vector_store %arg9[%341, %c0_103], %338 {strides = array<i32>} : memref<64x128xf32, #tpu.memory_space<vmem>>, vector<8x128xf32>,
      %c8_i32_104 = arith.constant 8 : i32
    } else {
    }
    %c0 = arith.constant 0 : index
    %c0_1 = arith.constant 0 : index
    %3 = vector.load %arg9[%c0, %c0_1] : memref<64x128xf32, #tpu.memory_space<vmem>>, vector<64x128xf32>
    %c0_2 = arith.constant 0 : index
    %c0_3 = arith.constant 0 : index
    %4 = vector.load %arg5[%c0_2, %c0_3] : memref<128x128xf32, #tpu.memory_space<vmem>>, vector<128x128xf32>
    %cst = arith.constant dense<0.000000e+00> : vector<64x128xf32>
    %5 = tpu.matmul %3, %4, %cst {dimension_numbers = #tpu.dot_dimension_numbers<[1], [0], [0], [1], [0, 0, 1, 1], [], []>} : vector<64x128xf32>, vector<128x128xf32>, vector<64x128xf32> -> vector<64x128xf32>
    %c0_4 = arith.constant 0 : index
    %c0_5 = arith.constant 0 : index
    %6 = vector.load %arg6[%c0_4, %c0_5] : memref<1x128xf32, #tpu.memory_space<vmem>>, vector<1x128xf32>
    %7 = vector.broadcast %6 : vector<1x128xf32> to vector<64x128xf32>
    %8 = arith.addf %5, %7 : vector<64x128xf32>
    %c0_6 = arith.constant 0 : index
    %c0_7 = arith.constant 0 : index
    %9 = vector.load %arg7[%c0_6, %c0_7] : memref<64x128xf32, #tpu.memory_space<vmem>>, vector<64x128xf32>
    tpu.vector_store %arg7[%c0_6, %c0_7], %8 {strides = array<i32>} : memref<64x128xf32, #tpu.memory_space<vmem>>, vector<64x128xf32>,
    return
  }
  func.func @transform_0(%arg0: i32) -> (i32, i32) {
    %c0_i32 = arith.constant 0 : i32
    %c0_i32_0 = arith.constant 0 : i32
    %c0_i32_1 = arith.constant 0 : i32
    return %c0_i32, %c0_i32_0 : i32, i32
  }
  func.func @transform_1(%arg0: i32) -> (i32, i32) {
    %c0_i32 = arith.constant 0 : i32
    %c0_i32_0 = arith.constant 0 : i32
    %c0_i32_1 = arith.constant 0 : i32
    return %c0_i32, %c0_i32_0 : i32, i32
  }
  func.func @transform_2(%arg0: i32) -> (i32, i32) {
    %c0_i32 = arith.constant 0 : i32
    %c0_i32_0 = arith.constant 0 : i32
    %c0_i32_1 = arith.constant 0 : i32
    return %c0_i32, %c0_i32_0 : i32, i32
  }
  func.func @transform_3(%arg0: i32) -> (i32, i32) {
    %c0_i32 = arith.constant 0 : i32
    %c0_i32_0 = arith.constant 0 : i32
    %c0_i32_1 = arith.constant 0 : i32
    return %c0_i32, %c0_i32_0 : i32, i32
  }
  func.func @transform_4(%arg0: i32) -> (i32, i32) {
    %c0_i32 = arith.constant 0 : i32
    %c0_i32_0 = arith.constant 0 : i32
    return %c0_i32, %arg0 : i32, i32
  }
  func.func @transform_5(%arg0: i32) -> (i32, i32) {
    %c0_i32 = arith.constant 0 : i32
    %c0_i32_0 = arith.constant 0 : i32
    return %c0_i32, %arg0 : i32, i32
  }
  func.func @transform_6(%arg0: i32) -> (i32, i32) {
    %c0_i32 = arith.constant 0 : i32
    %c0_i32_0 = arith.constant 0 : i32
    return %c0_i32, %arg0 : i32, i32
  }
}

</mosaic_0001>

<bundles_post_ra>
// kernel: tpu_custom_call.1
= control target key start
LH: loop header
LB: loop body
LE: loop exit
PB: predicated region body
PF: predicated region fallthrough
CT: control target
= control target key end

     0   :  { %11 = vsyncpa [#allocation5], 0  ;;  %s9029_s0 = inlined_call_operand.vmem [shape: f32[64,32], index: 0, kind: input, shape index: {}]   ;;  %s9030_s1 = inlined_call_operand.hbm [shape: f32[32,1024], index: 1, kind: input, shape index: {}]   ;;  %s9031_s2 = inlined_call_operand.vmem [shape: f32[1,1024], index: 2, kind: input, shape index: {}]   ;;  %s9032_s3 = inlined_call_operand.hbm [shape: f32[256,1024], index: 3, kind: input, shape index: {}]   ;;  %s9033_s4 = inlined_call_operand.hbm [shape: f32[128,384], index: 4, kind: input, shape index: {}]   ;;  %s9034_s5 = inlined_call_operand.vmem [shape: f32[1,384], index: 5, kind: input, shape index: {}]   ;;  %s9035_s6 = inlined_call_operand.hbm [shape: f32[64,384], index: 6, kind: output, shape index: {}]  }
   0x1   :  { %12 = vsyncpa [#allocation8], 0 }
   0x2   :  { %13 = vsyncpa [#allocation6], 0 }
   0x3   :  { %15 = vsyncpa [#allocation6 + $0x1], 0  ;;  %s7128_s21 = smov 0   ;;  %s7130_s22 = smov 0  }
   0x4   :  { %s7132_s23 = smov 0   ;;  %s7134_s24 = smov 0  }
   0x5 LB: > { %s7149_s25 = sadd.s32 4294967295, %s7078_s24   ;;  %s4201_s26 = sadd.s32 4294967294, %s7078_s24   ;;  %s7078_s24 = sphi %s7134_s24, %s10113_s24   ;;  %s7074_s23 = sphi %s7132_s23, %s10112_s23   ;;  %s7070_s22 = sphi %s7130_s22, %s10111_s22   ;;  %s7066_s21 = sphi %s7128_s21, %s10110_s21  }
   0x6   : > { %s7153_s27 = sadd.s32 1, %s7078_s24   ;;  %s112_s28 = sadd.s32 1, %s7074_s23 }
   0x7   : > { %s109_s29 = ssub.s32 %s7078_s24, %s7153_s27  ;;  %p119_p0 = scmp.ne.s32.totalorder %s7074_s23, %s7070_s22 }
   0x8   : > { %p110_p1 = scmp.eq.s32.totalorder %s109_s29, 0  ;;  %p120_p2 = scmp.eq.s32.totalorder %s7078_s24, 0 }
   0x9   : > { %p125_p3 = scmp.ne.s32.totalorder %s7070_s22, %s7066_s21  ;;  %p9036_p4 = scmp.eq.s32.totalorder %s7149_s25, 0 }
   0xa   : > { %s7165_s30 = scalar_select %p110_p1, %s7074_s23, %s112_s28  }
   0xb   : > { %p7167_p5 = por %p120_p2, %p119_p0  ;;  %p7173_p6 = por %p9036_p4, %p125_p3 }
   0xc   : > { %9328 = sst [smem:[#allocation15_spill]] %s7165_s30  ;;  %p175_p7 = scmp.eq.s32.totalorder %s7149_s25, 2 }
   0xd   : > { %s9329_s7 = scalar_select %p7167_p5, 1, 0 }
   0xe   : > { %s9330_s8 = scalar_select %p7173_p6, 1, 0 }
   0xf   : > { %p181_p8 = scmp.eq.s32.totalorder %s4201_s26, 2  ;;  %p4202_p9 = scmp.ge.s32.totalorder %s7078_s24, 1 }
  0x10   : > { %p188_p10 = scmp.lt.s32.totalorder %s7078_s24, 4  ;;  %p7180_p11 = por %p175_p7, %p119_p0 }
  0x11   : > { %p7184_p12 = por %p181_p8, %p125_p3  ;;  %s7080_s12 = smov [#allocation4]  }
  0x12   : > { %s9331_s9 = scalar_select %p7180_p11, 1, 0 }
  0x13   : > { %s9332_s10 = scalar_select %p7184_p12, 1, 0 }
  0x14   : > { %p7188_p13 = pnand %p4202_p9, %p188_p10  ;;  %s203_s13 = sshll.u32 %s7080_s12, 4  ;;  %s204_s13 = int_to_ptr.vmem [resolvable:$true] %s203_s13 }
  0x15   : > { %s7081_s15 = smov [#allocation7]   ;;  %s6918_s19 = scalar_lea.hbm %s9030_s1, 4096 }
  0x16   : > { %s9333_s11 = scalar_select %p7188_p13, 1, 0 }
  0x17   : > { %p6602_p2 = pneg %p7188_p13  ;;  %s219_s16 = sshll.u32 %s7081_s15, 4  ;;  %s220_s16 = int_to_ptr.vmem [resolvable:$true] %s219_s16 }
  0x18   : > { %p6919_p7 = scmp.ne.s32.totalorder %s9030_s1, %s6918_s19 }
  0x19   : > { %p7197_p0 = pnand %p6602_p2, %p9036_p4  ;;  %p6925_p2 = scmp.lt.u32.totalorder %s6918_s19, %s9030_s1 }
  0x1b   : > { %p6920_p8 = pneg %p7197_p0 }
  0x1d   : > { %p6921_p9 = pnand %p6920_p8, %p6919_p7 }
  0x1f   : > { %p6922_p10 = pneg %p6921_p9 }
  0x21   : > { %p6927_p1 = pnand %p6925_p2, %p6922_p10 }
  0x23   : > { %6930 = shalt.err (!%p6927_p1)
}
  0x24   : > { %s6931_s12 = scalar_lea.vmem %s204_s13, 4096  ;;  %p6939_p11 = scmp.lt.s32.totalorder %s204_s13, %s204_s13 }
  0x25   : > { %p6932_p4 = scmp.ne.s32.totalorder %s204_s13, %s6931_s12  ;;  %p6940_p6 = scmp.lt.s32.totalorder %s6931_s12, %s6931_s12 }
  0x27   : > { %p6934_p3 = pnand %p6932_p4, %p6920_p8  ;;  %p6941_p13 = por %p6940_p6, %p6939_p11 }
  0x29   : > { %p6935_p12 = pneg %p6934_p3 }
  0x2b   : > { %p6942_p5 = pnand %p6941_p13, %p6935_p12 }
  0x2d   : > { %6945 = shalt.err (!%p6942_p5)
}
  0x2e   : > { %s7082_s15 = smov 1024   ;;  %s7083_s17 = smov 64  }
  0x2f   : > { %6605 = dma.hbm_to_vmem [thread:$0]  (!%p7197_p0), %s9030_s1, 4096, %s204_s13, [#allocation5], %s7082_s15, %s7082_s15, %s7083_s17  }
  0x30   : > { %p9335_p1 = scmp.ne.s32.totalorder %s9329_s7, 0  ;;  %p9336_p7 = scmp.lt.s32.totalorder %s7078_s24, 3 }
  0x31   : > { %s6946_s29 = scalar_lea.hbm %s9032_s3, 32768 }
  0x32   : > { %p7228_p4 = pnand %p9336_p7, %p9335_p1  ;;  %p6947_p5 = scmp.ne.s32.totalorder %s9032_s3, %s6946_s29 }
  0x33   : > { %p6953_p12 = scmp.lt.u32.totalorder %s6946_s29, %s9032_s3 }
  0x34   : > { %s9337_s20 = scalar_select %p7228_p4, 1, 0 }
  0x35   : > { %p6949_p6 = pnand %p6947_p5, %p6920_p8 }
  0x37   : > { %p6950_p11 = pneg %p6949_p6 }
  0x39   : > { %p6955_p13 = pnand %p6953_p12, %p6950_p11 }
  0x3b   : > { %6958 = shalt.err (!%p6955_p13)
}
  0x3c   : > { %s6959_s18 = scalar_lea.vmem %s220_s16, 32768  ;;  %p6967_p2 = scmp.lt.s32.totalorder %s220_s16, %s220_s16 }
  0x3d   : > { %p6960_p3 = scmp.ne.s32.totalorder %s220_s16, %s6959_s18  ;;  %p6968_p1 = scmp.lt.s32.totalorder %s6959_s18, %s6959_s18 }
  0x3f   : > { %p6962_p9 = pnand %p6960_p3, %p6920_p8  ;;  %p6969_p7 = por %p6968_p1, %p6967_p2 }
  0x41   : > { %p6963_p10 = pneg %p6962_p9 }
  0x43   : > { %p6970_p4 = pnand %p6969_p7, %p6963_p10 }
  0x45   : > { %6973 = shalt.err (!%p6970_p4)
}
  0x46   : > { %6608 = dma.hbm_to_vmem [thread:$0]  (!%p7197_p0), %s9032_s3, 32768, %s220_s16, [#allocation8], %s7082_s15, %s7082_s15, %s7083_s17  }
  0x47   : > { %s233_s26 = sand.u32 1, %s7078_s24   ;;  %s235_s28 = sand.u32 1, %s7074_s23  }
  0x48   : > { %s4206_s29 = sshll.u32 %s235_s28, 7  ;;  %s4207_s12 = sshll.u32 %s7078_s24, 7 }
  0x49   : > { %s7258_s18 = scalar_lea.hbm %s9033_s4, %s4207_s12  ;;  %s237_s14 = scalar_lea.vmem [#allocation9], %s4206_s29 }
  0x4a   : > { %s243_s30 = sshll.u32 %s237_s14, 4  ;;  %s7262_s19 = scalar_lea.sflag [#allocation5], %s233_s26  ;;  %s7260_s30 = int_to_ptr.vmem [resolvable:$true] %s243_s30 }
  0x4b   : > { %s6974_s16 = scalar_lea.hbm %s7258_s18, 2048  ;;  %p9338_p8 = scmp.ne.s32.totalorder %s9337_s20, 0 }
  0x4c   : > { %p6975_p0 = scmp.ne.s32.totalorder %s7258_s18, %s6974_s16  ;;  %s6979_s28 = scalar_lea.hbm %s9033_s4, 6144 }
  0x4d   : > { %p6976_p4 = pneg %p9338_p8  ;;  %p6980_p11 = scmp.lt.u32.totalorder %s7258_s18, %s9033_s4 }
  0x4e   : > { %p6981_p12 = scmp.lt.u32.totalorder %s6979_s28, %s6974_s16  ;;  %p6983_p3 = scmp.lt.u32.totalorder %s6974_s16, %s7258_s18 }
  0x4f   : > { %p6977_p5 = pnand %p6976_p4, %p6975_p0 }
  0x50   : > { %p6982_p13 = por %p6981_p12, %p6980_p11 }
  0x51   : > { %p6978_p6 = pneg %p6977_p5 }
  0x52   : > { %p6984_p9 = por %p6983_p3, %p6982_p13 }
  0x54   : > { %p6985_p10 = pnand %p6984_p9, %p6978_p6 }
  0x56   : > { %6988 = shalt.err (!%p6985_p10)
}
  0x57   : > { %s6989_s26 = scalar_lea.vmem %s7260_s30, 2048  ;;  %s7084_s29 = smov [#allocation9]  }
  0x58   : > { %p6990_p2 = scmp.ne.s32.totalorder %s7260_s30, %s6989_s26  ;;  %s6994_s7 = sshll.u32 %s7084_s29, 4  ;;  %s6995_s7 = int_to_ptr.vmem [resolvable:$false] %s6994_s7 }
  0x59   : > { %s6996_s14 = scalar_lea.vmem %s6995_s7, 4096  ;;  %p6997_p0 = scmp.lt.s32.totalorder %s7260_s30, %s6995_s7 }
  0x5a   : > { %p6992_p1 = pnand %p6990_p2, %p6976_p4  ;;  %p6998_p5 = scmp.lt.s32.totalorder %s6996_s14, %s6989_s26 }
  0x5c   : > { %p6993_p7 = pneg %p6992_p1  ;;  %p6999_p11 = por %p6998_p5, %p6997_p0 }
  0x5e   : > { %p7000_p12 = pnand %p6999_p11, %p6993_p7 }
  0x60   : > { %7003 = shalt.err (!%p7000_p12)
}
  0x61   : > { %s7085_s16 = smov 384   ;;  %s7086_s15 = smov 128  }
  0x62   : > { %s7087_s17 = smov 8   ;;  %p9339_p4 = scmp.ne.s32.totalorder %s9333_s11, 0 }
  0x63   : > { %6612 = dma.hbm_to_vmem [thread:$0]  (!%p9338_p8), %s7258_s18, 2048, %s7260_s30, %s7262_s19, %s7085_s16, %s7086_s15, %s7087_s17  }
  0x64   : > { %261 = sbr.rel (%p9339_p4) target bundleno = 3162 (0xc5a), region = 44  ;;  %p9340_p6 = scmp.eq.s32.totalorder (!%p9339_p4), %s7149_s25, 0 }
  0x6b   : > { %7049 = dma.done.wait (%p9340_p6), [#allocation5], 4096   ;;  %p9341_p13 = pmov %p9340_p6 }
  0x6c   : > { %p9342_p3 = pmov %p9340_p6 }
  0x6d   : > { %7051 = vsyncadd (%p9341_p13), [#allocation5], 4294963200 }
  0x6e   : > { %7053 = dma.done.wait (%p9342_p3), [#allocation8], 32768   ;;  %p9343_p9 = pmov %p9342_p3 }
  0x6f   : > { %s271_s20 = sand.u32 1, %s7149_s25   ;;  %s7302_s18 = sand.u32 1, %s7070_s22  }
  0x70   : > { %7055 = vsyncadd (%p9343_p9), [#allocation8], 4294934528  ;;  %s4211_s11 = sshll.u32 %s7302_s18, 7  ;;  %s272_s30 = scalar_lea.sflag [#allocation5], %s271_s20 }
  0x71   : > { %s7305_s19 = scalar_lea.vmem [#allocation9], %s4211_s11  ;;  %p9344_p8 = scmp.ne.s32.totalorder %s9330_s8, 0 }
  0x73   : > { %7057 = dma.done.wait (%p9344_p8), %s272_s30, 2048  }
  0x74   : > { %7059 = vsyncadd (%p9344_p8), %s272_s30, 4294965248  ;;  %s4212_s28 = sshll.u32 %s7302_s18, 6  ;;  %p307_p10 = scmp.lt.s32.totalorder %s7149_s25, 2 }
  0x75   : > { %s7320_s7 = scalar_lea.vmem [#allocation10], %s4212_s28  ;;  %p9345_p2 = scmp.ne.s32.totalorder %s7149_s25, 0 }
  0x76   : > { %s7314_s12 = scalar_select %p307_p10, %s7149_s25, 2 }
  0x77   : > { %313 = sbr.rel (%p9345_p2) target bundleno = 2892 (0xb4c), region = 60 }
  0x78   : > { %s309_s29 = scalar_lea.vmem %s9034_s5, %s7314_s12 }
  0x7e   : > { %v323_v0 = vld [vmem:[#allocation4 + $0x8] sm:$0xff]  ;;  %v325_v2 = vld [vmem:[#allocation4 + $0x18] sm:$0xff]  ;;  %v322_v5 = vld [vmem:[#allocation4] sm:$0xff]  ;;  %v9041_v7 = vmov 0.0   ;;  %vm396_vm0 = vcmask 261120  }
  0x7f   : > { %v331_v1 = vld [vmem:[#allocation4 + $0x48] sm:$0xff]  ;;  %v333_v4 = vld [vmem:[#allocation4 + $0x58] sm:$0xff]  ;;  %v330_v6 = vld [vmem:[#allocation4 + $0x40] sm:$0xff]  ;;  %485 = vmatprep.mubr.f32.mxu0 %v9041_v7  ;;  %598 = vmatprep.mubr.f32.mxu1 %v9041_v7 }
  0x80   : > { %v4366_v3 = vpack.c.bf16 %v331_v1, %v323_v0  ;;  %v4374_v8 = vpack.c.bf16 %v333_v4, %v325_v2  ;;  %v4368_v9 = vpack.c.bf16 %v330_v6, %v322_v5  ;;  %v324_v10 = vld [vmem:[#allocation4 + $0x10] sm:$0xff]  ;;  %v339_v12 = vld [vmem:[#allocation4 + $0x88] sm:$0xff]  ;;  %v341_v15 = vld [vmem:[#allocation4 + $0x98] sm:$0xff] }
  0x81   : > { %v332_v11 = vld [vmem:[#allocation4 + $0x50] sm:$0xff]  ;;  %v347_v14 = vld [vmem:[#allocation4 + $0xc8] sm:$0xff]  ;;  %v349_v16 = vld [vmem:[#allocation4 + $0xd8] sm:$0xff] }
  0x82   : > { %4367 = vmatprep.subr.bf16.mxu0 %v4366_v3  ;;  %v4376_v13 = vpack.c.bf16 %v332_v11, %v324_v10  ;;  %4375 = vmatprep.subr.bf16.mxu1 %v4374_v8  ;;  %v4370_v17 = vpack.c.bf16 %v347_v14, %v339_v12  ;;  %v4378_v18 = vpack.c.bf16 %v349_v16, %v341_v15  ;;  %v338_v19 = vld [vmem:[#allocation4 + $0x80] sm:$0xff]  ;;  %v340_v21 = vld [vmem:[#allocation4 + $0x90] sm:$0xff]  ;;  %v329_v24 = vld [vmem:[#allocation4 + $0x38] sm:$0xff] }
  0x83   : > { %4369 = vmatpush1.bf16.msra.mxu0 %v4368_v9  ;;  %v346_v20 = vld [vmem:[#allocation4 + $0xc0] sm:$0xff]  ;;  %v348_v23 = vld [vmem:[#allocation4 + $0xd0] sm:$0xff]  ;;  %v337_v26 = vld [vmem:[#allocation4 + $0x78] sm:$0xff] }
  0x84   : > { %4377 = vmatpush1.bf16.msra.mxu1 %v4376_v13  ;;  %v4372_v22 = vpack.c.bf16 %v346_v20, %v338_v19  ;;  %4371 = vmatprep.subr.bf16.mxu0 %v4370_v17  ;;  %v4380_v25 = vpack.c.bf16 %v348_v23, %v340_v21  ;;  %v328_v27 = vld [vmem:[#allocation4 + $0x30] sm:$0xff]  ;;  %v4390_v29 = vpack.c.bf16 %v337_v26, %v329_v24  ;;  %v327_v30 = vld [vmem:[#allocation4 + $0x28] sm:$0xff]  ;;  %v326_v32 = vld [vmem:[#allocation4 + $0x20] sm:$0xff] }
  0x85   : > { %4379 = vmatprep.subr.bf16.mxu1 %v4378_v18  ;;  %v336_v28 = vld [vmem:[#allocation4 + $0x70] sm:$0xff]  ;;  %v335_v31 = vld [vmem:[#allocation4 + $0x68] sm:$0xff]  ;;  %v7329_v33 = vld [vmem:[%s9029_s0] sm:$0xff] }
  0x86   : > { %v4382_v34 = vpack.c.bf16 %v335_v31, %v327_v30  ;;  %v334_v35 = vld [vmem:[#allocation4 + $0x60] sm:$0xff]  ;;  %v4392_v36 = vpack.c.bf16 %v336_v28, %v328_v27  ;;  %v345_v37 = vld [vmem:[#allocation4 + $0xb8] sm:$0xff]  ;;  %v344_v40 = vld [vmem:[#allocation4 + $0xb0] sm:$0xff] }
  0x87   : > { %4373 = vmatpush1.bf16.msra.mxu0 %v4372_v22  ;;  %v4384_v38 = vpack.c.bf16 %v334_v35, %v326_v32  ;;  %v353_v39 = vld [vmem:[#allocation4 + $0xf8] sm:$0xff]  ;;  %v352_v41 = vld [vmem:[#allocation4 + $0xf0] sm:$0xff]  ;;  %v343_v43 = vld [vmem:[#allocation4 + $0xa8] sm:$0xff] }
  0x88   : > { %4381 = vmatpush1.bf16.msra.mxu1 %v4380_v25  ;;  %4383 = vmatprep.subr.bf16.mxu0 %v4382_v34  ;;  %v4394_v42 = vpack.c.bf16 %v353_v39, %v345_v37  ;;  %v351_v44 = vld [vmem:[#allocation4 + $0xe8] sm:$0xff]  ;;  %v342_v45 = vld [vmem:[#allocation4 + $0xa0] sm:$0xff]  ;;  %v4396_v49 = vpack.c.bf16 %v352_v41, %v344_v40  ;;  %v940_v53 = vld [vmem:[#allocation7 + $0x18] sm:$0xff] }
  0x89   : > { %4391 = vmatprep.subr.bf16.mxu1 %v4390_v29  ;;  %v7339_v46 = vld [vmem:[%s9029_s0 + $0x8] sm:$0xff]  ;;  %v4386_v47 = vpack.c.bf16 %v351_v44, %v343_v43  ;;  %v350_v48 = vld [vmem:[#allocation4 + $0xe0] sm:$0xff]  ;;  %v948_v54 = vld [vmem:[#allocation7 + $0x58] sm:$0xff] }
  0x8a   : > { %4214 = vmatmul.mubr.msk.f32.vlgmr.msra.gmra.mrb[0].mxu0 %vm396_vm0, %v7329_v33  ;;  %v938_v50 = vld [vmem:[#allocation7 + $0x8] sm:$0xff]  ;;  %v4388_v52 = vpack.c.bf16 %v350_v48, %v342_v45  ;;  %v7346_v56 = vpack.c.bf16 %v948_v54, %v940_v53  ;;  %v316_v57 = vld [vmem:[%s9029_s0 + $0x10] sm:$0xff]  ;;  %v317_v58 = vld [vmem:[%s9029_s0 + $0x18] sm:$0xff] }
  0x8b   : > { %4222 = vmatmul.mubr.msk.f32.vlgmr.msra.gmra.mrb[0].mxu1 %vm396_vm0, %v7329_v33  ;;  %491 = vmatprep.mubr.f32.mxu0 %v9041_v7  ;;  %v946_v51 = vld [vmem:[#allocation7 + $0x48] sm:$0xff]  ;;  %v318_v59 = vld [vmem:[%s9029_s0 + $0x20] sm:$0xff]  ;;  %v320_v61 = vld [vmem:[%s9029_s0 + $0x30] sm:$0xff] }
  0x8c   : > { %4393 = vmatpush1.bf16.msra.mxu1 %v4392_v36  ;;  %604 = vmatprep.mubr.f32.mxu1 %v9041_v7  ;;  %v7344_v55 = vpack.c.bf16 %v946_v51, %v938_v50  ;;  %9347 = vst [vmem:[#allocation17_spill] sm:$0xff] %v7346_v56  ;;  %v319_v60 = vld [vmem:[%s9029_s0 + $0x28] sm:$0xff]  ;;  %v321_v62 = vld [vmem:[%s9029_s0 + $0x38] sm:$0xff]  ;;  %v937_v63 = vld [vmem:[#allocation7] sm:$0xff] }
  0x8d   : > { %4385 = vmatpush1.bf16.msra.mxu0 %v4384_v38  ;;  %4395 = vmatprep.subr.bf16.mxu1 %v4394_v42  ;;  %v945_v0 = vld [vmem:[#allocation7 + $0x40] sm:$0xff]  ;;  %v939_v1 = vld [vmem:[#allocation7 + $0x10] sm:$0xff]  ;;  %v954_v5 = vld [vmem:[#allocation7 + $0x88] sm:$0xff] }
  0x8e   : > { %4215 = vmatmul.mubr.msk.f32.gmra.mrb[2].mxu0 %vm396_vm0, %v7339_v46  ;;  %4387 = vmatprep.subr.bf16.mxu0 %v4386_v47  ;;  %9346 = vst [vmem:[#allocation16_spill] sm:$0xff] %v7344_v55  ;;  %v947_v2 = vld [vmem:[#allocation7 + $0x50] sm:$0xff]  ;;  %v7395_v3 = vpack.c.bf16 %v945_v0, %v937_v63  ;;  %v962_v6 = vld [vmem:[#allocation7 + $0xc8] sm:$0xff]  ;;  %v956_v8 = vld [vmem:[#allocation7 + $0x98] sm:$0xff] }
  0x8f   : > { %4223 = vmatmul.mubr.msk.f32.gmra.mrb[2].mxu1 %vm396_vm0, %v7339_v46  ;;  %497 = vmatprep.mubr.f32.mxu0 %v9041_v7  ;;  %v7398_v4 = vpack.c.bf16 %v947_v2, %v939_v1  ;;  %v7438_v9 = vpack.c.bf16 %v962_v6, %v954_v5  ;;  %v964_v10 = vld [vmem:[#allocation7 + $0xd8] sm:$0xff]  ;;  %v953_v11 = vld [vmem:[#allocation7 + $0x80] sm:$0xff]  ;;  %v955_v14 = vld [vmem:[#allocation7 + $0x90] sm:$0xff] }
  0x90   : > { %610 = vmatprep.mubr.f32.mxu1 %v9041_v7  ;;  %4397 = vmatpush1.bf16.msra.mxu1 %v4396_v49  ;;  %9348 = vst [vmem:[#allocation18_spill] sm:$0xff] %v7395_v3  ;;  %v7440_v12 = vpack.c.bf16 %v964_v10, %v956_v8  ;;  %v961_v13 = vld [vmem:[#allocation7 + $0xc0] sm:$0xff]  ;;  %v963_v15 = vld [vmem:[#allocation7 + $0xd0] sm:$0xff]  ;;  %v970_v18 = vld [vmem:[#allocation7 + $0x108] sm:$0xff] }
  0x91   : > { %4389 = vmatpush1.bf16.msra.mxu0 %v4388_v52  ;;  %4463 = vmatprep.subr.bf16.mxu1 %v7346_v56  ;;  %9349 = vst [vmem:[#allocation19_spill] sm:$0xff] %v7398_v4  ;;  %9350 = vst [vmem:[#allocation20_spill] sm:$0xff] %v7438_v9  ;;  %v7443_v16 = vpack.c.bf16 %v961_v13, %v953_v11  ;;  %v7445_v17 = vpack.c.bf16 %v963_v15, %v955_v14  ;;  %v978_v19 = vld [vmem:[#allocation7 + $0x148] sm:$0xff]  ;;  %v972_v20 = vld [vmem:[#allocation7 + $0x118] sm:$0xff] }
  0x92   : > { %4216 = vmatmul.mubr.msk.f32.gmra.mrb[4].mxu0 %vm396_vm0, %v316_v57  ;;  %4399 = vmatprep.subr.bf16.mxu0 %v7344_v55  ;;  %9351 = vst [vmem:[#allocation21_spill] sm:$0xff] %v7440_v12  ;;  %v7450_v21 = vpack.c.bf16 %v978_v19, %v970_v18  ;;  %v980_v22 = vld [vmem:[#allocation7 + $0x158] sm:$0xff]  ;;  %v969_v23 = vld [vmem:[#allocation7 + $0x100] sm:$0xff]  ;;  %v971_v27 = vld [vmem:[#allocation7 + $0x110] sm:$0xff] }
  0x93   : > { %4224 = vmatmul.mubr.msk.f32.gmra.mrb[4].mxu1 %vm396_vm0, %v316_v57  ;;  %503 = vmatprep.mubr.f32.mxu0 %v9041_v7  ;;  %9352 = vst [vmem:[#allocation22_spill] sm:$0xff] %v7443_v16  ;;  %9353 = vst [vmem:[#allocation23_spill] sm:$0xff] %v7445_v17  ;;  %v977_v24 = vld [vmem:[#allocation7 + $0x140] sm:$0xff]  ;;  %v7452_v25 = vpack.c.bf16 %v980_v22, %v972_v20  ;;  %v979_v28 = vld [vmem:[#allocation7 + $0x150] sm:$0xff] }
  0x94   : > { %616 = vmatprep.mubr.f32.mxu1 %v9041_v7  ;;  %9354 = vst [vmem:[#allocation24_spill] sm:$0xff] %v7450_v21  ;;  %v7454_v26 = vpack.c.bf16 %v977_v24, %v969_v23  ;;  %v7457_v29 = vpack.c.bf16 %v979_v28, %v971_v27  ;;  %v986_v30 = vld [vmem:[#allocation7 + $0x188] sm:$0xff]  ;;  %v988_v32 = vld [vmem:[#allocation7 + $0x198] sm:$0xff]  ;;  %v985_v35 = vld [vmem:[#allocation7 + $0x180] sm:$0xff] }
  0x95   : > { %9355 = vst [vmem:[#allocation25_spill] sm:$0xff] %v7452_v25  ;;  %v994_v31 = vld [vmem:[#allocation7 + $0x1c8] sm:$0xff]  ;;  %v996_v34 = vld [vmem:[#allocation7 + $0x1d8] sm:$0xff]  ;;  %v993_v36 = vld [vmem:[#allocation7 + $0x1c0] sm:$0xff] }
  0x96   : > { %4217 = vmatmul.mubr.msk.f32.gmra.mrb[6].mxu0 %vm396_vm0, %v317_v58  ;;  %9356 = vst [vmem:[#allocation26_spill] sm:$0xff] %v7454_v26  ;;  %9357 = vst [vmem:[#allocation27_spill] sm:$0xff] %v7457_v29  ;;  %v7464_v37 = vpack.c.bf16 %v996_v34, %v988_v32  ;;  %v7466_v38 = vpack.c.bf16 %v993_v36, %v985_v35  ;;  %v987_v39 = vld [vmem:[#allocation7 + $0x190] sm:$0xff]  ;;  %v1002_v42 = vld [vmem:[#allocation7 + $0x208] sm:$0xff] }
  0x97   : > { %4225 = vmatmul.mubr.msk.f32.gmra.mrb[6].mxu1 %vm396_vm0, %v317_v58  ;;  %509 = vmatprep.mubr.f32.mxu0 %v9041_v7  ;;  %v995_v40 = vld [vmem:[#allocation7 + $0x1d0] sm:$0xff]  ;;  %v1010_v43 = vld [vmem:[#allocation7 + $0x248] sm:$0xff]  ;;  %v1004_v44 = vld [vmem:[#allocation7 + $0x218] sm:$0xff] }
  0x98   : > { %622 = vmatprep.mubr.f32.mxu1 %v9041_v7  ;;  %9359 = vst [vmem:[#allocation29_spill] sm:$0xff] %v7464_v37  ;;  %9360 = vst [vmem:[#allocation30_spill] sm:$0xff] %v7466_v38  ;;  %v7469_v41 = vpack.c.bf16 %v995_v40, %v987_v39  ;;  %v7474_v45 = vpack.c.bf16 %v1010_v43, %v1002_v42  ;;  %v1001_v47 = vld [vmem:[#allocation7 + $0x200] sm:$0xff]  ;;  %v1003_v51 = vld [vmem:[#allocation7 + $0x210] sm:$0xff] }
  0x99   : > { %v1009_v48 = vld [vmem:[#allocation7 + $0x240] sm:$0xff]  ;;  %v1011_v52 = vld [vmem:[#allocation7 + $0x250] sm:$0xff]  ;;  %v1018_v54 = vld [vmem:[#allocation7 + $0x288] sm:$0xff] }
  0x9a   : > { %4218 = vmatmul.mubr.msk.f32.gmra.mrb[8].mxu0 %vm396_vm0, %v318_v59  ;;  %9361 = vst [vmem:[#allocation31_spill] sm:$0xff] %v7469_v41  ;;  %9362 = vst [vmem:[#allocation32_spill] sm:$0xff] %v7474_v45  ;;  %v7478_v50 = vpack.c.bf16 %v1009_v48, %v1001_v47  ;;  %v7481_v53 = vpack.c.bf16 %v1011_v52, %v1003_v51  ;;  %v1019_v1 = vld [vmem:[#allocation7 + $0x290] sm:$0xff]  ;;  %v1034_v5 = vld [vmem:[#allocation7 + $0x308] sm:$0xff] }
  0x9b   : > { %4226 = vmatmul.mubr.msk.f32.gmra.mrb[8].mxu1 %vm396_vm0, %v318_v59  ;;  %515 = vmatprep.mubr.f32.mxu0 %v9041_v7  ;;  %v1027_v2 = vld [vmem:[#allocation7 + $0x2d0] sm:$0xff]  ;;  %v1042_v8 = vld [vmem:[#allocation7 + $0x348] sm:$0xff]  ;;  %v1036_v10 = vld [vmem:[#allocation7 + $0x318] sm:$0xff] }
  0x9c   : > { %628 = vmatprep.mubr.f32.mxu1 %v9041_v7  ;;  %9364 = vst [vmem:[#allocation34_spill] sm:$0xff] %v7478_v50  ;;  %9365 = vst [vmem:[#allocation35_spill] sm:$0xff] %v7481_v53  ;;  %v7493_v6 = vpack.c.bf16 %v1027_v2, %v1019_v1  ;;  %v1044_v11 = vld [vmem:[#allocation7 + $0x358] sm:$0xff]  ;;  %v7496_v13 = vpack.c.bf16 %v1042_v8, %v1034_v5  ;;  %v1033_v15 = vld [vmem:[#allocation7 + $0x300] sm:$0xff] }
  0x9d   : > { %v7498_v14 = vpack.c.bf16 %v1044_v11, %v1036_v10  ;;  %v1041_v18 = vld [vmem:[#allocation7 + $0x340] sm:$0xff]  ;;  %v1035_v19 = vld [vmem:[#allocation7 + $0x310] sm:$0xff]  ;;  %v1050_v23 = vld [vmem:[#allocation7 + $0x388] sm:$0xff] }
  0x9e   : > { %4219 = vmatmul.mubr.msk.f32.gmra.mrb[10].mxu0 %vm396_vm0, %v319_v60  ;;  %9369 = vst [vmem:[#allocation39_spill] sm:$0xff] %v7493_v6  ;;  %9370 = vst [vmem:[#allocation40_spill] sm:$0xff] %v7496_v13  ;;  %v7502_v20 = vpack.c.bf16 %v1041_v18, %v1033_v15  ;;  %v1043_v22 = vld [vmem:[#allocation7 + $0x350] sm:$0xff]  ;;  %v1058_v24 = vld [vmem:[#allocation7 + $0x3c8] sm:$0xff] }
  0x9f   : > { %4227 = vmatmul.mubr.msk.f32.gmra.mrb[10].mxu1 %vm396_vm0, %v319_v60  ;;  %521 = vmatprep.mubr.f32.mxu0 %v9041_v7  ;;  %9371 = vst [vmem:[#allocation41_spill] sm:$0xff] %v7498_v14  ;;  %v7506_v27 = vpack.c.bf16 %v1043_v22, %v1035_v19  ;;  %v7508_v28 = vpack.c.bf16 %v1058_v24, %v1050_v23  ;;  %v1049_v32 = vld [vmem:[#allocation7 + $0x380] sm:$0xff]  ;;  %v1051_v36 = vld [vmem:[#allocation7 + $0x390] sm:$0xff]  ;;  %v1066_v43 = vld [vmem:[#allocation7 + $0x408] sm:$0xff] }
  0xa0   : > { %634 = vmatprep.mubr.f32.mxu1 %v9041_v7  ;;  %9372 = vst [vmem:[#allocation42_spill] sm:$0xff] %v7502_v20  ;;  %v1057_v35 = vld [vmem:[#allocation7 + $0x3c0] sm:$0xff]  ;;  %v1059_v39 = vld [vmem:[#allocation7 + $0x3d0] sm:$0xff]  ;;  %v1076_v48 = vld [vmem:[#allocation7 + $0x458] sm:$0xff] }
  0xa1   : > { %9373 = vst [vmem:[#allocation43_spill] sm:$0xff] %v7506_v27  ;;  %9374 = vst [vmem:[#allocation44_spill] sm:$0xff] %v7508_v28  ;;  %v7514_v40 = vpack.c.bf16 %v1057_v35, %v1049_v32  ;;  %v7516_v42 = vpack.c.bf16 %v1059_v39, %v1051_v36  ;;  %v1065_v51 = vld [vmem:[#allocation7 + $0x400] sm:$0xff]  ;;  %v1090_v1 = vld [vmem:[#allocation7 + $0x4c8] sm:$0xff] }
  0xa2   : > { %4220 = vmatmul.mubr.msk.f32.gmra.mrb[12].mxu0 %vm396_vm0, %v320_v61  ;;  %v1073_v52 = vld [vmem:[#allocation7 + $0x440] sm:$0xff]  ;;  %v1084_v2 = vld [vmem:[#allocation7 + $0x498] sm:$0xff]  ;;  %v1083_v19 = vld [vmem:[#allocation7 + $0x490] sm:$0xff] }
  0xa3   : > { %4228 = vmatmul.mubr.msk.f32.gmra.mrb[12].mxu1 %vm396_vm0, %v320_v61  ;;  %527 = vmatprep.mubr.f32.mxu0 %v9041_v7  ;;  %9376 = vst [vmem:[#allocation46_spill] sm:$0xff] %v7514_v40  ;;  %9377 = vst [vmem:[#allocation47_spill] sm:$0xff] %v7516_v42  ;;  %v1092_v8 = vld [vmem:[#allocation7 + $0x4d8] sm:$0xff]  ;;  %v1081_v10 = vld [vmem:[#allocation7 + $0x480] sm:$0xff] }
  0xa4   : > { %640 = vmatprep.mubr.f32.mxu1 %v9041_v7  ;;  %v1089_v11 = vld [vmem:[#allocation7 + $0x4c0] sm:$0xff]  ;;  %v7536_v15 = vpack.c.bf16 %v1092_v8, %v1084_v2  ;;  %v1091_v22 = vld [vmem:[#allocation7 + $0x4d0] sm:$0xff]  ;;  %v1098_v24 = vld [vmem:[#allocation7 + $0x508] sm:$0xff] }
  0xa5   : > { %v7538_v18 = vpack.c.bf16 %v1089_v11, %v1081_v10  ;;  %v7541_v23 = vpack.c.bf16 %v1091_v22, %v1083_v19  ;;  %v1108_v35 = vld [vmem:[#allocation7 + $0x558] sm:$0xff]  ;;  %v1097_v36 = vld [vmem:[#allocation7 + $0x500] sm:$0xff]  ;;  %v1115_v19 = vld [vmem:[#allocation7 + $0x590] sm:$0xff] }
  0xa6   : > { %4221 = vmatmul.mubr.msk.f32.gmra.mrb[14].mxu0 %vm396_vm0, %v321_v62  ;;  %9383 = vst [vmem:[#allocation53_spill] sm:$0xff] %v7536_v15  ;;  %v1105_v39 = vld [vmem:[#allocation7 + $0x540] sm:$0xff]  ;;  %v1123_v22 = vld [vmem:[#allocation7 + $0x5d0] sm:$0xff] }
  0xa7   : > { %4229 = vmatmul.mubr.msk.f32.gmra.mrb[14].mxu1 %vm396_vm0, %v321_v62  ;;  %711 = vmatprep.mubr.f32.mxu0 %v9041_v7  ;;  %9384 = vst [vmem:[#allocation54_spill] sm:$0xff] %v7538_v18  ;;  %9385 = vst [vmem:[#allocation55_spill] sm:$0xff] %v7541_v23  ;;  %v1113_v2 = vld [vmem:[#allocation7 + $0x580] sm:$0xff] }
  0xa8   : > { %824 = vmatprep.mubr.f32.mxu1 %v9041_v7  ;;  %v1121_v8 = vld [vmem:[#allocation7 + $0x5c0] sm:$0xff] }
  0xa9   : > { %v7562_v11 = vpack.c.bf16 %v1121_v8, %v1113_v2  ;;  %v1146_v8 = vld [vmem:[#allocation7 + $0x688] sm:$0xff] }
  0xaa   : > { %4230 = vmatmul.mubr.msk.f32.vlgmr.msra.gmra.mrb[16].mxu0 %vm396_vm0, %v7329_v33 }
  0xab   : > { %4238 = vmatmul.mubr.msk.f32.vlgmr.msra.gmra.mrb[16].mxu1 %vm396_vm0, %v7329_v33  ;;  %4401 = vmatpush1.bf16.msra.mxu0 %v7395_v3  ;;  %v7462_v33 = vpack.c.bf16 %v994_v31, %v986_v30  ;;  %v1052_v30 = vld [vmem:[#allocation7 + $0x398] sm:$0xff]  ;;  %9392 = vst [vmem:[#allocation62_spill] sm:$0xff] %v7562_v11 }
  0xac   : > { %4465 = vmatpush1.bf16.msra.mxu1 %v7398_v4  ;;  %717 = vmatprep.mubr.f32.mxu0 %v9041_v7  ;;  %v1060_v31 = vld [vmem:[#allocation7 + $0x3d8] sm:$0xff] }
  0xad   : > { %830 = vmatprep.mubr.f32.mxu1 %v9041_v7  ;;  %4403 = vmatprep.subr.bf16.mxu0 %v7438_v9  ;;  %9358 = vst [vmem:[#allocation28_spill] sm:$0xff] %v7462_v33  ;;  %v7510_v34 = vpack.c.bf16 %v1060_v31, %v1052_v30  ;;  %v1106_v30 = vld [vmem:[#allocation7 + $0x548] sm:$0xff]  ;;  %v1100_v31 = vld [vmem:[#allocation7 + $0x518] sm:$0xff] }
  0xae   : > { %4231 = vmatmul.mubr.msk.f32.gmra.mrb[18].mxu0 %vm396_vm0, %v7339_v46  ;;  %4467 = vmatprep.subr.bf16.mxu1 %v7440_v12  ;;  %v7546_v32 = vpack.c.bf16 %v1106_v30, %v1098_v24  ;;  %v7565_v24 = vpack.c.bf16 %v1123_v22, %v1115_v19  ;;  %v1130_v30 = vld [vmem:[#allocation7 + $0x608] sm:$0xff]  ;;  %v1148_v22 = vld [vmem:[#allocation7 + $0x698] sm:$0xff] }
  0xaf   : > { %4239 = vmatmul.mubr.msk.f32.gmra.mrb[18].mxu1 %vm396_vm0, %v7339_v46  ;;  %723 = vmatprep.mubr.f32.mxu0 %v9041_v7  ;;  %v1012_v46 = vld [vmem:[#allocation7 + $0x258] sm:$0xff]  ;;  %9375 = vst [vmem:[#allocation45_spill] sm:$0xff] %v7510_v34  ;;  %v1154_v19 = vld [vmem:[#allocation7 + $0x6c8] sm:$0xff] }
  0xb0   : > { %836 = vmatprep.mubr.f32.mxu1 %v9041_v7  ;;  %4405 = vmatpush1.bf16.msra.mxu0 %v7443_v16  ;;  %v7476_v49 = vpack.c.bf16 %v1012_v46, %v1004_v44  ;;  %v1074_v44 = vld [vmem:[#allocation7 + $0x448] sm:$0xff]  ;;  %v1068_v46 = vld [vmem:[#allocation7 + $0x418] sm:$0xff]  ;;  %9386 = vst [vmem:[#allocation56_spill] sm:$0xff] %v7546_v32  ;;  %9393 = vst [vmem:[#allocation63_spill] sm:$0xff] %v7565_v24 }
  0xb1   : > { %4469 = vmatpush1.bf16.msra.mxu1 %v7445_v17  ;;  %4407 = vmatprep.subr.bf16.mxu0 %v7450_v21  ;;  %v7522_v47 = vpack.c.bf16 %v1074_v44, %v1066_v43  ;;  %v7548_v43 = vpack.c.bf16 %v1108_v35, %v1100_v31  ;;  %v7550_v44 = vpack.c.bf16 %v1105_v39, %v1097_v36  ;;  %v1138_v31 = vld [vmem:[#allocation7 + $0x648] sm:$0xff]  ;;  %v1132_v35 = vld [vmem:[#allocation7 + $0x618] sm:$0xff] }
  0xb2   : > { %4232 = vmatmul.mubr.msk.f32.gmra.mrb[20].mxu0 %vm396_vm0, %v316_v57  ;;  %4471 = vmatprep.subr.bf16.mxu1 %v7452_v25  ;;  %9363 = vst [vmem:[#allocation33_spill] sm:$0xff] %v7476_v49  ;;  %v7570_v36 = vpack.c.bf16 %v1138_v31, %v1130_v30  ;;  %v1140_v39 = vld [vmem:[#allocation7 + $0x658] sm:$0xff]  ;;  %v7582_v30 = vpack.c.bf16 %v1154_v19, %v1146_v8 }
  0xb3   : > { %4240 = vmatmul.mubr.msk.f32.gmra.mrb[20].mxu1 %vm396_vm0, %v316_v57  ;;  %729 = vmatprep.mubr.f32.mxu0 %v9041_v7  ;;  %v1026_v57 = vld [vmem:[#allocation7 + $0x2c8] sm:$0xff]  ;;  %9378 = vst [vmem:[#allocation48_spill] sm:$0xff] %v7522_v47  ;;  %9387 = vst [vmem:[#allocation57_spill] sm:$0xff] %v7548_v43  ;;  %v1156_v31 = vld [vmem:[#allocation7 + $0x6d8] sm:$0xff] }
  0xb4   : > { %842 = vmatprep.mubr.f32.mxu1 %v9041_v7  ;;  %4409 = vmatpush1.bf16.msra.mxu0 %v7454_v26  ;;  %9388 = vst [vmem:[#allocation58_spill] sm:$0xff] %v7550_v44  ;;  %9394 = vst [vmem:[#allocation64_spill] sm:$0xff] %v7570_v36  ;;  %v1172_v19 = vld [vmem:[#allocation7 + $0x758] sm:$0xff] }
  0xb5   : > { %4473 = vmatpush1.bf16.msra.mxu1 %v7457_v29  ;;  %4411 = vmatprep.subr.bf16.mxu0 %v7462_v33  ;;  %9398 = vst [vmem:[#allocation68_spill] sm:$0xff] %v7582_v30 }
  0xb6   : > { %4233 = vmatmul.mubr.msk.f32.gmra.mrb[22].mxu0 %vm396_vm0, %v317_v58  ;;  %4475 = vmatprep.subr.bf16.mxu1 %v7464_v37 }
  0xb7   : > { %4241 = vmatmul.mubr.msk.f32.gmra.mrb[22].mxu1 %vm396_vm0, %v317_v58  ;;  %735 = vmatprep.mubr.f32.mxu0 %v9041_v7  ;;  %v1020_v58 = vld [vmem:[#allocation7 + $0x298] sm:$0xff] }
  0xb8   : > { %848 = vmatprep.mubr.f32.mxu1 %v9041_v7  ;;  %4413 = vmatpush1.bf16.msra.mxu0 %v7466_v38 }
  0xb9   : > { %4477 = vmatpush1.bf16.msra.mxu1 %v7469_v41  ;;  %4415 = vmatprep.subr.bf16.mxu0 %v7474_v45 }
  0xba   : > { %4234 = vmatmul.mubr.msk.f32.gmra.mrb[24].mxu0 %vm396_vm0, %v318_v59  ;;  %4479 = vmatprep.subr.bf16.mxu1 %v7476_v49 }
  0xbb   : > { %4242 = vmatmul.mubr.msk.f32.gmra.mrb[24].mxu1 %vm396_vm0, %v318_v59  ;;  %741 = vmatprep.mubr.f32.mxu0 %v9041_v7  ;;  %v7486_v59 = vpack.c.bf16 %v1026_v57, %v1018_v54  ;;  %v7524_v54 = vpack.c.bf16 %v1076_v48, %v1068_v46  ;;  %v7526_v57 = vpack.c.bf16 %v1073_v52, %v1065_v51  ;;  %v1099_v46 = vld [vmem:[#allocation7 + $0x510] sm:$0xff]  ;;  %v1114_v52 = vld [vmem:[#allocation7 + $0x588] sm:$0xff] }
  0xbc   : > { %854 = vmatprep.mubr.f32.mxu1 %v9041_v7  ;;  %4417 = vmatpush1.bf16.msra.mxu0 %v7478_v50  ;;  %v1107_v48 = vld [vmem:[#allocation7 + $0x550] sm:$0xff] }
  0xbd   : > { %4481 = vmatpush1.bf16.msra.mxu1 %v7481_v53  ;;  %9366 = vst [vmem:[#allocation36_spill] sm:$0xff] %v7486_v59  ;;  %4419 = vmatprep.subr.bf16.mxu0 %v7486_v59  ;;  %9379 = vst [vmem:[#allocation49_spill] sm:$0xff] %v7524_v54  ;;  %v7553_v51 = vpack.c.bf16 %v1107_v48, %v1099_v46  ;;  %v1129_v46 = vld [vmem:[#allocation7 + $0x600] sm:$0xff] }
  0xbe   : > { %4235 = vmatmul.mubr.msk.f32.gmra.mrb[26].mxu0 %vm396_vm0, %v319_v60  ;;  %9380 = vst [vmem:[#allocation50_spill] sm:$0xff] %v7526_v57  ;;  %v1137_v48 = vld [vmem:[#allocation7 + $0x640] sm:$0xff] }
  0xbf   : > { %4243 = vmatmul.mubr.msk.f32.gmra.mrb[26].mxu1 %vm396_vm0, %v319_v60  ;;  %747 = vmatprep.mubr.f32.mxu0 %v9041_v7  ;;  %v1028_v60 = vld [vmem:[#allocation7 + $0x2d8] sm:$0xff]  ;;  %9389 = vst [vmem:[#allocation59_spill] sm:$0xff] %v7553_v51 }
  0xc0   : > { %860 = vmatprep.mubr.f32.mxu1 %v9041_v7  ;;  %v7488_v63 = vpack.c.bf16 %v1028_v60, %v1020_v58  ;;  %v1067_v58 = vld [vmem:[#allocation7 + $0x410] sm:$0xff] }
  0xc1   : > { %v1075_v60 = vld [vmem:[#allocation7 + $0x450] sm:$0xff] }
  0xc2   : > { %4236 = vmatmul.mubr.msk.f32.gmra.mrb[28].mxu0 %vm396_vm0, %v320_v61  ;;  %9367 = vst [vmem:[#allocation37_spill] sm:$0xff] %v7488_v63  ;;  %4483 = vmatprep.subr.bf16.mxu1 %v7488_v63 }
  0xc3   : > { %4244 = vmatmul.mubr.msk.f32.gmra.mrb[28].mxu1 %vm396_vm0, %v320_v61  ;;  %753 = vmatprep.mubr.f32.mxu0 %v9041_v7  ;;  %v1017_v61 = vld [vmem:[#allocation7 + $0x280] sm:$0xff] }
  0xc4   : > { %866 = vmatprep.mubr.f32.mxu1 %v9041_v7  ;;  %4485 = vmatpush1.bf16.msra.mxu1 %v7493_v6 }
  0xc5   : > { %4487 = vmatprep.subr.bf16.mxu1 %v7498_v14 }
  0xc6   : > { %4237 = vmatmul.mubr.msk.f32.gmra.mrb[30].mxu0 %vm396_vm0, %v321_v62 }
  0xc7   : > { %4245 = vmatmul.mubr.msk.f32.gmra.mrb[30].mxu1 %vm396_vm0, %v321_v62  ;;  %1287 = vmatprep.mubr.f32.mxu0 %v9041_v7  ;;  %v1025_v62 = vld [vmem:[#allocation7 + $0x2c0] sm:$0xff] }
  0xc8   : > { %1358 = vmatprep.mubr.f32.mxu1 %v9041_v7  ;;  %v7490_v0 = vpack.c.bf16 %v1025_v62, %v1017_v61  ;;  %4489 = vmatpush1.bf16.msra.mxu1 %v7506_v27  ;;  %v7529_v61 = vpack.c.bf16 %v1075_v60, %v1067_v58  ;;  %v1082_v62 = vld [vmem:[#allocation7 + $0x488] sm:$0xff]  ;;  %v1116_v60 = vld [vmem:[#allocation7 + $0x598] sm:$0xff] }
  0xc9   : > { %4491 = vmatprep.subr.bf16.mxu1 %v7510_v34  ;;  %v7534_v5 = vpack.c.bf16 %v1090_v1, %v1082_v62  ;;  %v1122_v58 = vld [vmem:[#allocation7 + $0x5c8] sm:$0xff]  ;;  %v1124_v1 = vld [vmem:[#allocation7 + $0x5d8] sm:$0xff] }
  0xca   : > { %9368 = vst [vmem:[#allocation38_spill] sm:$0xff] %v7490_v0  ;;  %4421 = vmatpush1.bf16.msra.mxu0 %v7490_v0  ;;  %9381 = vst [vmem:[#allocation51_spill] sm:$0xff] %v7529_v61  ;;  %v7558_v62 = vpack.c.bf16 %v1122_v58, %v1114_v52  ;;  %v7560_v10 = vpack.c.bf16 %v1124_v1, %v1116_v60  ;;  %v7572_v52 = vpack.c.bf16 %v1140_v39, %v1132_v35  ;;  %v1131_v60 = vld [vmem:[#allocation7 + $0x610] sm:$0xff]  ;;  %v1145_v35 = vld [vmem:[#allocation7 + $0x680] sm:$0xff] }
  0xcb   : > { %4423 = vmatprep.subr.bf16.mxu0 %v7496_v13  ;;  %9382 = vst [vmem:[#allocation52_spill] sm:$0xff] %v7534_v5  ;;  %v7574_v58 = vpack.c.bf16 %v1137_v48, %v1129_v46  ;;  %v1139_v1 = vld [vmem:[#allocation7 + $0x650] sm:$0xff]  ;;  %v1153_v39 = vld [vmem:[#allocation7 + $0x6c0] sm:$0xff]  ;;  %v7584_v46 = vpack.c.bf16 %v1156_v31, %v1148_v22 }
  0xcc   : > { %4493 = vmatpush1.bf16.msra.mxu1 %v7516_v42  ;;  %9390 = vst [vmem:[#allocation60_spill] sm:$0xff] %v7558_v62  ;;  %9391 = vst [vmem:[#allocation61_spill] sm:$0xff] %v7560_v10  ;;  %v7577_v2 = vpack.c.bf16 %v1139_v1, %v1131_v60  ;;  %v7586_v48 = vpack.c.bf16 %v1153_v39, %v1145_v35  ;;  %v1147_v60 = vld [vmem:[#allocation7 + $0x690] sm:$0xff] }
  0xcd   : > { %4495 = vmatprep.subr.bf16.mxu1 %v7524_v54  ;;  %9395 = vst [vmem:[#allocation65_spill] sm:$0xff] %v7572_v52  ;;  %9396 = vst [vmem:[#allocation66_spill] sm:$0xff] %v7574_v58  ;;  %v1155_v1 = vld [vmem:[#allocation7 + $0x6d0] sm:$0xff] }
  0xce   : > { %4425 = vmatpush1.bf16.msra.mxu0 %v7502_v20  ;;  %9397 = vst [vmem:[#allocation67_spill] sm:$0xff] %v7577_v2  ;;  %9399 = vst [vmem:[#allocation69_spill] sm:$0xff] %v7584_v46  ;;  %v7589_v7 = vpack.c.bf16 %v1155_v1, %v1147_v60  ;;  %v1163_v35 = vld [vmem:[#allocation7 + $0x710] sm:$0xff]  ;;  %v1178_v60 = vld [vmem:[#allocation7 + $0x788] sm:$0xff] }
  0xcf   : > { %4427 = vmatprep.subr.bf16.mxu0 %v7508_v28  ;;  %9400 = vst [vmem:[#allocation70_spill] sm:$0xff] %v7586_v48  ;;  %v1171_v39 = vld [vmem:[#allocation7 + $0x750] sm:$0xff] }
  0xd0   : > { %4497 = vmatpush1.bf16.msra.mxu1 %v7529_v61  ;;  %9401 = vst [vmem:[#allocation71_spill] sm:$0xff] %v7589_v7  ;;  %v7601_v1 = vpack.c.bf16 %v1171_v39, %v1163_v35 }
  0xd1   : > { %4499 = vmatprep.subr.bf16.mxu1 %v7536_v15 }
  0xd2   : > { %4429 = vmatpush1.bf16.msra.mxu0 %v7514_v40  ;;  %9405 = vst [vmem:[#allocation75_spill] sm:$0xff] %v7601_v1 }
  0xd3   : > { %4431 = vmatprep.subr.bf16.mxu0 %v7522_v47 }
  0xd4   : > { %4501 = vmatpush1.bf16.msra.mxu1 %v7541_v23 }
  0xd5   : > { %4503 = vmatprep.subr.bf16.mxu1 %v7548_v43 }
  0xd6   : > { %4433 = vmatpush1.bf16.msra.mxu0 %v7526_v57 }
  0xd7   : > { %4435 = vmatprep.subr.bf16.mxu0 %v7534_v5 }
  0xd8   : > { %4505 = vmatpush1.bf16.msra.mxu1 %v7553_v51  ;;  %v959_v51 = vld [vmem:[#allocation7 + $0xb0] sm:$0xff] }
  0xd9   : > { %4507 = vmatprep.subr.bf16.mxu1 %v7560_v10 }
  0xda   : > { %4437 = vmatpush1.bf16.msra.mxu0 %v7538_v18 }
  0xdb   : > { %4439 = vmatprep.subr.bf16.mxu0 %v7546_v32 }
  0xdc   : > { %4509 = vmatpush1.bf16.msra.mxu1 %v7565_v24  ;;  %v1169_v24 = vld [vmem:[#allocation7 + $0x740] sm:$0xff] }
  0xdd   : > { %4511 = vmatprep.subr.bf16.mxu1 %v7572_v52  ;;  %v1162_v52 = vld [vmem:[#allocation7 + $0x708] sm:$0xff] }
  0xde   : > { %4441 = vmatpush1.bf16.msra.mxu0 %v7550_v44  ;;  %v967_v44 = vld [vmem:[#allocation7 + $0xf0] sm:$0xff] }
  0xdf   : > { %4443 = vmatprep.subr.bf16.mxu0 %v7558_v62 }
  0xe0   : > { %4513 = vmatpush1.bf16.msra.mxu1 %v7577_v2  ;;  %v1161_v2 = vld [vmem:[#allocation7 + $0x700] sm:$0xff] }
  0xe1   : > { %4515 = vmatprep.subr.bf16.mxu1 %v7584_v46  ;;  %v7598_v31 = vpack.c.bf16 %v1169_v24, %v1161_v2  ;;  %v1188_v46 = vld [vmem:[#allocation7 + $0x7d8] sm:$0xff]  ;;  %v1179_v24 = vld [vmem:[#allocation7 + $0x790] sm:$0xff] }
  0xe2   : > { %4445 = vmatpush1.bf16.msra.mxu0 %v7562_v11  ;;  %v1187_v2 = vld [vmem:[#allocation7 + $0x7d0] sm:$0xff]  ;;  %v950_v11 = vld [vmem:[#allocation7 + $0x68] sm:$0xff] }
  0xe3   : > { %4447 = vmatprep.subr.bf16.mxu0 %v7570_v36  ;;  %v1170_v36 = vld [vmem:[#allocation7 + $0x748] sm:$0xff]  ;;  %9404 = vst [vmem:[#allocation74_spill] sm:$0xff] %v7598_v31  ;;  %v7612_v39 = vpack.c.bf16 %v1187_v2, %v1179_v24 }
  0xe4   : > { %v7592_v8 = vpack.c.bf16 %v1170_v36, %v1162_v52  ;;  %4517 = vmatpush1.bf16.msra.mxu1 %v7589_v7  ;;  %v1186_v36 = vld [vmem:[#allocation7 + $0x7c8] sm:$0xff]  ;;  %v1180_v52 = vld [vmem:[#allocation7 + $0x798] sm:$0xff] }
  0xe5   : > { %v942_v7 = vld [vmem:[#allocation7 + $0x28] sm:$0xff]  ;;  %9409 = vst [vmem:[#allocation79_spill] sm:$0xff] %v7612_v39 }
  0xe6   : > { %4449 = vmatpush1.bf16.msra.mxu0 %v7574_v58  ;;  %v1164_v58 = vld [vmem:[#allocation7 + $0x718] sm:$0xff]  ;;  %9402 = vst [vmem:[#allocation72_spill] sm:$0xff] %v7592_v8 }
  0xe7   : > { %4451 = vmatprep.subr.bf16.mxu0 %v7582_v30  ;;  %v7596_v22 = vpack.c.bf16 %v1172_v19, %v1164_v58  ;;  %v7604_v30 = vpack.c.bf16 %v1186_v36, %v1178_v60  ;;  %v1177_v58 = vld [vmem:[#allocation7 + $0x780] sm:$0xff]  ;;  %v356_v36 = vlaneseq }
  0xe8   : > { %v1185_v19 = vld [vmem:[#allocation7 + $0x7c0] sm:$0xff] }
  0xe9   : > { %9403 = vst [vmem:[#allocation73_spill] sm:$0xff] %v7596_v22  ;;  %4519 = vmatprep.subr.bf16.mxu1 %v7596_v22  ;;  %9406 = vst [vmem:[#allocation76_spill] sm:$0xff] %v7604_v30  ;;  %v7610_v35 = vpack.c.bf16 %v1185_v19, %v1177_v58  ;;  %v952_v22 = vld [vmem:[#allocation7 + $0x78] sm:$0xff] }
  0xea   : > { %4453 = vmatpush1.bf16.msra.mxu0 %v7586_v48  ;;  %v7606_v48 = vpack.c.bf16 %v1188_v46, %v1180_v52  ;;  %4521 = vmatpush1.bf16.msra.mxu1 %v7601_v1  ;;  %v7616_v46 = vpack.c.bf16 %v950_v11, %v942_v7  ;;  %v7624_v52 = vshrl.u32 %v356_v36, 7  ;;  %v7630_v11 = vld [vmem:[%s9031_s2] sm:$0xff] }
  0xeb   : > { %4455 = vmatprep.subr.bf16.mxu0 %v7592_v8  ;;  %9408 = vst [vmem:[#allocation78_spill] sm:$0xff] %v7610_v35  ;;  %v944_v8 = vld [vmem:[#allocation7 + $0x38] sm:$0xff]  ;;  %9413 = vst [vmem:[#allocation83_spill] sm:$0xff] %v7630_v11 }
  0xec   : > { %9407 = vst [vmem:[#allocation77_spill] sm:$0xff] %v7606_v48  ;;  %4523 = vmatprep.subr.bf16.mxu1 %v7606_v48  ;;  %9410 = vst [vmem:[#allocation80_spill] sm:$0xff] %v7616_v46  ;;  %v7618_v60 = vpack.c.bf16 %v952_v22, %v944_v8  ;;  %v358_v24 = vsub.s32 0, %v7624_v52  ;;  %v374_v36 = vsub.s32 4, %v7624_v52 }
  0xed   : > { %9412 = vst [vmem:[#allocation82_spill] sm:$0xff] %v7624_v52 }
  0xee   : > { %4457 = vmatpush1.bf16.msra.mxu0 %v7598_v31  ;;  %9411 = vst [vmem:[#allocation81_spill] sm:$0xff] %v7618_v60  ;;  %4525 = vmatpush1.bf16.msra.mxu1 %v7612_v39  ;;  %v7633_v8 = vrot.slane %v7630_v11, %v358_v24 }
  0xef   : > { %4459 = vmatprep.subr.bf16.mxu0 %v7604_v30  ;;  %4591 = vmatprep.subr.bf16.mxu1 %v7618_v60 }
  0xf0   : > { %9414 = vst [vmem:[#allocation84_spill] sm:$0xff] %v7633_v8 }
  0xf2   : > { %4461 = vmatpush1.bf16.msra.mxu0 %v7610_v35  ;;  %v7645_v35 = vrot.slane %v7630_v11, %v374_v36 }
  0xf3   : > { %4527 = vmatprep.subr.bf16.mxu0 %v7616_v46 }
  0xf4   : > { %9418 = vst [vmem:[#allocation88_spill] sm:$0xff] %v7645_v35 }
 0x15d   : > { %v487_v58 = vpop.f32.mrb[0].mxu0 }
 0x15e   : > { %v600_v19 = vpop.f32.mrb[0].mxu1  ;;  %v489_v2 = vpop.f32.mrb[1].mxu0  ;;  %v488_v22 = vadd.f32 %v487_v58, %v7633_v8 }
 0x15f   : > { %v602_v7 = vpop.f32.mrb[1].mxu1  ;;  %v382_v19 = vsub.s32 6, %v7624_v52 }
 0x160   : > { %v4246_v60 = vmul.f32 -1.442695, %v488_v22 }
 0x161   : > { %v7650_v58 = vrot.slane %v7630_v11, %v382_v19  ;;  %v941_v19 = vld [vmem:[#allocation7 + $0x20] sm:$0xff]  ;;  %v966_v11 = vld [vmem:[#allocation7 + $0xe8] sm:$0xff] }
 0x162   : > { %6666 = vpow2.f32 %v4246_v60 }
 0x163   : > { %9420 = vst [vmem:[#allocation90_spill] sm:$0xff] %v7650_v58 }
 0x16c   : > { %v6667_v46 = vpop.eup %6666 }
 0x16d   : > { %v1199_v24 = vadd.f32 1.0, %v6667_v46 }
 0x16f   : > { %6668 = vrcp.f32 %v1199_v24  ;;  %v958_v24 = vld [vmem:[#allocation7 + $0xa8] sm:$0xff] }
 0x170   : > { %v7669_v10 = vpack.c.bf16 %v966_v11, %v958_v24  ;;  %v973_v24 = vld [vmem:[#allocation7 + $0x120] sm:$0xff] }
 0x172   : > { %9427 = vst [vmem:[#allocation97_spill] sm:$0xff] %v7669_v10 }
 0x179   : > { %v7638_v39 = vpop.f32.mrb[14].mxu0  ;;  %v6669_v36 = vpop.eup %6668 }
 0x17a   : > { %9415 = vst [vmem:[#allocation85_spill] sm:$0xff] %v7638_v39  ;;  %v7640_v2 = vpop.f32.mrb[14].mxu1  ;;  %v7642_v7 = vpop.f32.mrb[15].mxu0 }
 0x17b   : > { %9416 = vst [vmem:[#allocation86_spill] sm:$0xff] %v7640_v2  ;;  %9417 = vst [vmem:[#allocation87_spill] sm:$0xff] %v7642_v7  ;;  %v7647_v48 = vpop.f32.mrb[15].mxu1 }
 0x17c   : > { %9419 = vst [vmem:[#allocation89_spill] sm:$0xff] %v7647_v48 }
 0x17d   : > { %v713_v60 = vpop.f32.mrb[16].mxu0 }
 0x17e   : > { %v714_v22 = vadd.f32 %v713_v60, %v7645_v35  ;;  %v826_v8 = vpop.f32.mrb[16].mxu1  ;;  %v715_v52 = vpop.f32.mrb[17].mxu0  ;;  %v949_v60 = vld [vmem:[#allocation7 + $0x60] sm:$0xff]  ;;  %v943_v35 = vld [vmem:[#allocation7 + $0x30] sm:$0xff] }
 0x17f   : > { %v827_v39 = vadd.f32 %v826_v8, %v7650_v58  ;;  %v828_v2 = vpop.f32.mrb[17].mxu1  ;;  %v951_v52 = vld [vmem:[#allocation7 + $0x70] sm:$0xff]  ;;  %v960_v8 = vld [vmem:[#allocation7 + $0xb8] sm:$0xff]  ;;  %v7659_v58 = vpack.c.bf16 %v949_v60, %v941_v19  ;;  %v982_v19 = vld [vmem:[#allocation7 + $0x168] sm:$0xff] }
 0x180   : > { %6670 = vtanh.f32 %v714_v22  ;;  %v968_v2 = vld [vmem:[#allocation7 + $0xf8] sm:$0xff] }
 0x181   : > { %v4247_v7 = vmul.f32 -1.442695, %v827_v39  ;;  %9423 = vst [vmem:[#allocation93_spill] sm:$0xff] %v7659_v58  ;;  %v7671_v62 = vpack.c.bf16 %v968_v2, %v960_v8  ;;  %v984_v60 = vld [vmem:[#allocation7 + $0x178] sm:$0xff]  ;;  %v981_v8 = vld [vmem:[#allocation7 + $0x160] sm:$0xff] }
 0x183   : > { %6672 = vpow2.f32 %v4247_v7  ;;  %9428 = vst [vmem:[#allocation98_spill] sm:$0xff] %v7671_v62 }
 0x18a   : > { %v6671_v30 = vpop.eup %6670 }
 0x18b   : > { %v7654_v46 = vmul.f32 %v6671_v30, %v6669_v36  ;;  %v7661_v30 = vpack.c.bf16 %v951_v52, %v943_v35  ;;  %v965_v36 = vld [vmem:[#allocation7 + $0xe0] sm:$0xff]  ;;  %v976_v35 = vld [vmem:[#allocation7 + $0x138] sm:$0xff]  ;;  %v7681_v52 = vpack.c.bf16 %v967_v44, %v959_v51  ;;  %v7693_v44 = vpack.c.bf16 %v981_v8, %v973_v24 }
 0x18c   : > { %v1005_v8 = vld [vmem:[#allocation7 + $0x220] sm:$0xff] }
 0x18d   : > { %9421 = vst [vmem:[#allocation91_spill] sm:$0xff] %v7654_v46  ;;  %v6673_v48 = vpop.eup %6672  ;;  %6674 = vtanh.f32 %v7654_v46  ;;  %9424 = vst [vmem:[#allocation94_spill] sm:$0xff] %v7661_v30 }
 0x18e   : > { %v1206_v1 = vadd.f32 1.0, %v6673_v48  ;;  %v957_v48 = vld [vmem:[#allocation7 + $0xa0] sm:$0xff]  ;;  %9431 = vst [vmem:[#allocation101_spill] sm:$0xff] %v7681_v52  ;;  %9435 = vst [vmem:[#allocation104_spill] sm:$0xff] %v7693_v44 }
 0x18f   : > { %v7679_v11 = vpack.c.bf16 %v965_v36, %v957_v48  ;;  %v9434_v48 = vmov 0.0   ;;  %v997_v36 = vld [vmem:[#allocation7 + $0x1e0] sm:$0xff] }
 0x190   : > { %6676 = vrcp.f32 %v1206_v1 }
 0x191   : > { %9430 = vst [vmem:[#allocation100_spill] sm:$0xff] %v7679_v11 }
 0x197   : > { %v6675_v22 = vpop.eup %6674 }
 0x199   : > { %v7657_v39 = vpop.f32.mrb[30].mxu0 }
 0x19a   : > { %9422 = vst [vmem:[#allocation92_spill] sm:$0xff] %v7657_v39  ;;  %v6677_v7 = vpop.eup %6676  ;;  %v7663_v46 = vpop.f32.mrb[30].mxu1  ;;  %v974_v39 = vld [vmem:[#allocation7 + $0x128] sm:$0xff] }
 0x19b   : > { %9425 = vst [vmem:[#allocation95_spill] sm:$0xff] %v7663_v46  ;;  %v7665_v1 = vpop.f32.mrb[31].mxu0  ;;  %v7667_v31 = vmul.f32 %v6677_v7, %v6675_v22  ;;  %v7673_v43 = vpop.f32.mrb[31].mxu1  ;;  %v7685_v2 = vpack.c.bf16 %v982_v19, %v974_v39  ;;  %v7687_v22 = vpack.c.bf16 %v984_v60, %v976_v35  ;;  %v975_v7 = vld [vmem:[#allocation7 + $0x130] sm:$0xff]  ;;  %v998_v46 = vld [vmem:[#allocation7 + $0x1e8] sm:$0xff]  ;;  %v989_v39 = vld [vmem:[#allocation7 + $0x1a0] sm:$0xff] }
 0x19c   : > { %9426 = vst [vmem:[#allocation96_spill] sm:$0xff] %v7665_v1  ;;  %9429 = vst [vmem:[#allocation99_spill] sm:$0xff] %v7673_v43  ;;  %v983_v43 = vld [vmem:[#allocation7 + $0x170] sm:$0xff]  ;;  %v990_v1 = vld [vmem:[#allocation7 + $0x1a8] sm:$0xff] }
 0x19d   : > { %1288 = vmatmul.mubr.f32.vlgmr.msra.gmra.mrb[2].mxu0 %v7667_v31  ;;  %1359 = vmatmul.mubr.f32.vlgmr.msra.gmra.mrb[2].mxu1 %v7667_v31  ;;  %9432 = vst [vmem:[#allocation102_spill] sm:$0xff] %v7685_v2  ;;  %9433 = vst [vmem:[#allocation103_spill] sm:$0xff] %v7687_v22  ;;  %v7695_v51 = vpack.c.bf16 %v983_v43, %v975_v7  ;;  %v7699_v19 = vpack.c.bf16 %v998_v46, %v990_v1  ;;  %v991_v60 = vld [vmem:[#allocation7 + $0x1b0] sm:$0xff]  ;;  %v1013_v7 = vld [vmem:[#allocation7 + $0x260] sm:$0xff] }
 0x19e   : > { %4529 = vmatpush1.bf16.msra.mxu0 %v7659_v58  ;;  %4593 = vmatpush1.bf16.msra.mxu1 %v7661_v30  ;;  %v992_v58 = vld [vmem:[#allocation7 + $0x1b8] sm:$0xff]  ;;  %v7705_v43 = vpack.c.bf16 %v997_v36, %v989_v39  ;;  %v1015_v1 = vld [vmem:[#allocation7 + $0x270] sm:$0xff]  ;;  %v7717_v39 = vpack.c.bf16 %v1013_v7, %v1005_v8 }
 0x19f   : > { %4531 = vmatprep.subr.bf16.mxu0 %v7669_v10  ;;  %4595 = vmatprep.subr.bf16.mxu1 %v7671_v62  ;;  %v1000_v30 = vld [vmem:[#allocation7 + $0x1f8] sm:$0xff]  ;;  %9436 = vst [vmem:[#allocation105_spill] sm:$0xff] %v7695_v51  ;;  %9437 = vst [vmem:[#allocation106_spill] sm:$0xff] %v7699_v19  ;;  %v1006_v62 = vld [vmem:[#allocation7 + $0x228] sm:$0xff] }
 0x1a0   : > { %1429 = vmatprep.mubr.f32.mxu0 %v9434_v48  ;;  %1500 = vmatprep.mubr.f32.mxu1 %v9434_v48  ;;  %v7701_v35 = vpack.c.bf16 %v1000_v30, %v992_v58  ;;  %v999_v48 = vld [vmem:[#allocation7 + $0x1f0] sm:$0xff]  ;;  %v1008_v10 = vld [vmem:[#allocation7 + $0x238] sm:$0xff]  ;;  %9439 = vst [vmem:[#allocation108_spill] sm:$0xff] %v7705_v43  ;;  %9443 = vst [vmem:[#allocation112_spill] sm:$0xff] %v7717_v39 }
 0x1a1   : > { %v7707_v24 = vpack.c.bf16 %v999_v48, %v991_v60  ;;  %v1007_v30 = vld [vmem:[#allocation7 + $0x230] sm:$0xff]  ;;  %v1021_v60 = vld [vmem:[#allocation7 + $0x2a0] sm:$0xff] }
 0x1a2   : > { %4533 = vmatpush1.bf16.msra.mxu0 %v7679_v11  ;;  %4597 = vmatpush1.bf16.msra.mxu1 %v7681_v52  ;;  %9438 = vst [vmem:[#allocation107_spill] sm:$0xff] %v7701_v35  ;;  %v1014_v11 = vld [vmem:[#allocation7 + $0x268] sm:$0xff]  ;;  %v1016_v52 = vld [vmem:[#allocation7 + $0x278] sm:$0xff]  ;;  %v7719_v36 = vpack.c.bf16 %v1015_v1, %v1007_v30  ;;  %v1029_v48 = vld [vmem:[#allocation7 + $0x2e0] sm:$0xff] }
 0x1a3   : > { %4535 = vmatprep.subr.bf16.mxu0 %v7685_v2  ;;  %4599 = vmatprep.subr.bf16.mxu1 %v7687_v22  ;;  %9440 = vst [vmem:[#allocation109_spill] sm:$0xff] %v7707_v24  ;;  %v7711_v58 = vpack.c.bf16 %v1014_v11, %v1006_v62  ;;  %v7713_v46 = vpack.c.bf16 %v1016_v52, %v1008_v10  ;;  %v1022_v22 = vld [vmem:[#allocation7 + $0x2a8] sm:$0xff]  ;;  %v1024_v2 = vld [vmem:[#allocation7 + $0x2b8] sm:$0xff]  ;;  %v1023_v11 = vld [vmem:[#allocation7 + $0x2b0] sm:$0xff] }
 0x1a4   : > { %9444 = vst [vmem:[#allocation113_spill] sm:$0xff] %v7719_v36  ;;  %v1031_v52 = vld [vmem:[#allocation7 + $0x2f0] sm:$0xff]  ;;  %v7729_v8 = vpack.c.bf16 %v1029_v48, %v1021_v60  ;;  %v1037_v30 = vld [vmem:[#allocation7 + $0x320] sm:$0xff] }
 0x1a5   : > { %9441 = vst [vmem:[#allocation110_spill] sm:$0xff] %v7711_v58  ;;  %9442 = vst [vmem:[#allocation111_spill] sm:$0xff] %v7713_v46  ;;  %v7731_v7 = vpack.c.bf16 %v1031_v52, %v1023_v11  ;;  %v1045_v1 = vld [vmem:[#allocation7 + $0x360] sm:$0xff] }
 0x1a6   : > { %4537 = vmatpush1.bf16.msra.mxu0 %v7693_v44  ;;  %4601 = vmatpush1.bf16.msra.mxu1 %v7695_v51  ;;  %v1030_v44 = vld [vmem:[#allocation7 + $0x2e8] sm:$0xff]  ;;  %v1032_v51 = vld [vmem:[#allocation7 + $0x2f8] sm:$0xff]  ;;  %9447 = vst [vmem:[#allocation116_spill] sm:$0xff] %v7729_v8  ;;  %v7741_v60 = vpack.c.bf16 %v1045_v1, %v1037_v30  ;;  %v1053_v11 = vld [vmem:[#allocation7 + $0x3a0] sm:$0xff] }
 0x1a7   : > { %4539 = vmatprep.subr.bf16.mxu0 %v7699_v19  ;;  %4603 = vmatprep.subr.bf16.mxu1 %v7701_v35  ;;  %v7723_v62 = vpack.c.bf16 %v1030_v44, %v1022_v22  ;;  %v7725_v10 = vpack.c.bf16 %v1032_v51, %v1024_v2  ;;  %v1038_v35 = vld [vmem:[#allocation7 + $0x328] sm:$0xff]  ;;  %v1040_v19 = vld [vmem:[#allocation7 + $0x338] sm:$0xff]  ;;  %9448 = vst [vmem:[#allocation117_spill] sm:$0xff] %v7731_v7  ;;  %v1039_v44 = vld [vmem:[#allocation7 + $0x330] sm:$0xff] }
 0x1a8   : > { %v1047_v51 = vld [vmem:[#allocation7 + $0x370] sm:$0xff]  ;;  %9451 = vst [vmem:[#allocation120_spill] sm:$0xff] %v7741_v60  ;;  %v1061_v52 = vld [vmem:[#allocation7 + $0x3e0] sm:$0xff] }
 0x1a9   : > { %9445 = vst [vmem:[#allocation114_spill] sm:$0xff] %v7723_v62  ;;  %9446 = vst [vmem:[#allocation115_spill] sm:$0xff] %v7725_v10  ;;  %v7743_v48 = vpack.c.bf16 %v1047_v51, %v1039_v44  ;;  %v7753_v30 = vpack.c.bf16 %v1061_v52, %v1053_v11  ;;  %v1069_v44 = vld [vmem:[#allocation7 + $0x420] sm:$0xff] }
 0x1aa   : > { %4541 = vmatpush1.bf16.msra.mxu0 %v7705_v43  ;;  %4605 = vmatpush1.bf16.msra.mxu1 %v7707_v24  ;;  %v1046_v43 = vld [vmem:[#allocation7 + $0x368] sm:$0xff]  ;;  %v1048_v24 = vld [vmem:[#allocation7 + $0x378] sm:$0xff]  ;;  %v1077_v51 = vld [vmem:[#allocation7 + $0x460] sm:$0xff] }
 0x1ab   : > { %4543 = vmatprep.subr.bf16.mxu0 %v7711_v58  ;;  %4607 = vmatprep.subr.bf16.mxu1 %v7713_v46  ;;  %v7735_v2 = vpack.c.bf16 %v1046_v43, %v1038_v35  ;;  %v7737_v22 = vpack.c.bf16 %v1048_v24, %v1040_v19  ;;  %v1054_v46 = vld [vmem:[#allocation7 + $0x3a8] sm:$0xff]  ;;  %v1056_v58 = vld [vmem:[#allocation7 + $0x3b8] sm:$0xff]  ;;  %9452 = vst [vmem:[#allocation121_spill] sm:$0xff] %v7743_v48  ;;  %v1055_v43 = vld [vmem:[#allocation7 + $0x3b0] sm:$0xff] }
 0x1ac   : > { %v1063_v24 = vld [vmem:[#allocation7 + $0x3f0] sm:$0xff]  ;;  %9455 = vst [vmem:[#allocation124_spill] sm:$0xff] %v7753_v30  ;;  %v7765_v11 = vpack.c.bf16 %v1077_v51, %v1069_v44 }
 0x1ad   : > { %9449 = vst [vmem:[#allocation118_spill] sm:$0xff] %v7735_v2  ;;  %9450 = vst [vmem:[#allocation119_spill] sm:$0xff] %v7737_v22  ;;  %v7755_v1 = vpack.c.bf16 %v1063_v24, %v1055_v43  ;;  %v1085_v43 = vld [vmem:[#allocation7 + $0x4a0] sm:$0xff] }
 0x1ae   : > { %4545 = vmatpush1.bf16.msra.mxu0 %v7717_v39  ;;  %4609 = vmatpush1.bf16.msra.mxu1 %v7719_v36  ;;  %v1062_v39 = vld [vmem:[#allocation7 + $0x3e8] sm:$0xff]  ;;  %v1064_v36 = vld [vmem:[#allocation7 + $0x3f8] sm:$0xff]  ;;  %9459 = vst [vmem:[#allocation128_spill] sm:$0xff] %v7765_v11  ;;  %v1093_v24 = vld [vmem:[#allocation7 + $0x4e0] sm:$0xff] }
 0x1af   : > { %4547 = vmatprep.subr.bf16.mxu0 %v7723_v62  ;;  %4611 = vmatprep.subr.bf16.mxu1 %v7725_v10  ;;  %v7747_v19 = vpack.c.bf16 %v1062_v39, %v1054_v46  ;;  %v7749_v35 = vpack.c.bf16 %v1064_v36, %v1056_v58  ;;  %v1070_v10 = vld [vmem:[#allocation7 + $0x428] sm:$0xff]  ;;  %v1072_v62 = vld [vmem:[#allocation7 + $0x438] sm:$0xff]  ;;  %9456 = vst [vmem:[#allocation125_spill] sm:$0xff] %v7755_v1  ;;  %v1071_v39 = vld [vmem:[#allocation7 + $0x430] sm:$0xff] }
 0x1b0   : > { %v1079_v36 = vld [vmem:[#allocation7 + $0x470] sm:$0xff]  ;;  %v7777_v44 = vpack.c.bf16 %v1093_v24, %v1085_v43 }
 0x1b1   : > { %9453 = vst [vmem:[#allocation122_spill] sm:$0xff] %v7747_v19  ;;  %9454 = vst [vmem:[#allocation123_spill] sm:$0xff] %v7749_v35  ;;  %v7767_v52 = vpack.c.bf16 %v1079_v36, %v1071_v39  ;;  %v1101_v39 = vld [vmem:[#allocation7 + $0x520] sm:$0xff] }
 0x1b2   : > { %4549 = vmatpush1.bf16.msra.mxu0 %v7729_v8  ;;  %4613 = vmatpush1.bf16.msra.mxu1 %v7731_v7  ;;  %v1078_v8 = vld [vmem:[#allocation7 + $0x468] sm:$0xff]  ;;  %v1080_v7 = vld [vmem:[#allocation7 + $0x478] sm:$0xff]  ;;  %9463 = vst [vmem:[#allocation132_spill] sm:$0xff] %v7777_v44  ;;  %v1109_v36 = vld [vmem:[#allocation7 + $0x560] sm:$0xff] }
 0x1b3   : > { %4551 = vmatprep.subr.bf16.mxu0 %v7735_v2  ;;  %4615 = vmatprep.subr.bf16.mxu1 %v7737_v22  ;;  %v7759_v58 = vpack.c.bf16 %v1078_v8, %v1070_v10  ;;  %v7761_v46 = vpack.c.bf16 %v1080_v7, %v1072_v62  ;;  %v1086_v22 = vld [vmem:[#allocation7 + $0x4a8] sm:$0xff]  ;;  %v1088_v2 = vld [vmem:[#allocation7 + $0x4b8] sm:$0xff]  ;;  %9460 = vst [vmem:[#allocation129_spill] sm:$0xff] %v7767_v52  ;;  %v1087_v8 = vld [vmem:[#allocation7 + $0x4b0] sm:$0xff] }
 0x1b4   : > { %v1095_v7 = vld [vmem:[#allocation7 + $0x4f0] sm:$0xff]  ;;  %v7789_v43 = vpack.c.bf16 %v1109_v36, %v1101_v39 }
 0x1b5   : > { %9457 = vst [vmem:[#allocation126_spill] sm:$0xff] %v7759_v58  ;;  %9458 = vst [vmem:[#allocation127_spill] sm:$0xff] %v7761_v46  ;;  %v7779_v51 = vpack.c.bf16 %v1095_v7, %v1087_v8  ;;  %v1117_v8 = vld [vmem:[#allocation7 + $0x5a0] sm:$0xff] }
 0x1b6   : > { %4553 = vmatpush1.bf16.msra.mxu0 %v7741_v60  ;;  %4617 = vmatpush1.bf16.msra.mxu1 %v7743_v48  ;;  %v1094_v60 = vld [vmem:[#allocation7 + $0x4e8] sm:$0xff]  ;;  %v1096_v48 = vld [vmem:[#allocation7 + $0x4f8] sm:$0xff]  ;;  %9467 = vst [vmem:[#allocation136_spill] sm:$0xff] %v7789_v43  ;;  %v1125_v7 = vld [vmem:[#allocation7 + $0x5e0] sm:$0xff] }
 0x1b7   : > { %4555 = vmatprep.subr.bf16.mxu0 %v7747_v19  ;;  %4619 = vmatprep.subr.bf16.mxu1 %v7749_v35  ;;  %v7771_v62 = vpack.c.bf16 %v1094_v60, %v1086_v22  ;;  %v7773_v10 = vpack.c.bf16 %v1096_v48, %v1088_v2  ;;  %v1102_v35 = vld [vmem:[#allocation7 + $0x528] sm:$0xff]  ;;  %v1104_v19 = vld [vmem:[#allocation7 + $0x538] sm:$0xff]  ;;  %9464 = vst [vmem:[#allocation133_spill] sm:$0xff] %v7779_v51  ;;  %v1103_v60 = vld [vmem:[#allocation7 + $0x530] sm:$0xff] }
 0x1b8   : > { %v1111_v48 = vld [vmem:[#allocation7 + $0x570] sm:$0xff]  ;;  %v7801_v39 = vpack.c.bf16 %v1125_v7, %v1117_v8 }
 0x1b9   : > { %9461 = vst [vmem:[#allocation130_spill] sm:$0xff] %v7771_v62  ;;  %9462 = vst [vmem:[#allocation131_spill] sm:$0xff] %v7773_v10  ;;  %v7791_v24 = vpack.c.bf16 %v1111_v48, %v1103_v60  ;;  %v1133_v60 = vld [vmem:[#allocation7 + $0x620] sm:$0xff] }
 0x1ba   : > { %4557 = vmatpush1.bf16.msra.mxu0 %v7753_v30  ;;  %4621 = vmatpush1.bf16.msra.mxu1 %v7755_v1  ;;  %v1110_v30 = vld [vmem:[#allocation7 + $0x568] sm:$0xff]  ;;  %v1112_v1 = vld [vmem:[#allocation7 + $0x578] sm:$0xff]  ;;  %9471 = vst [vmem:[#allocation140_spill] sm:$0xff] %v7801_v39  ;;  %v1141_v48 = vld [vmem:[#allocation7 + $0x660] sm:$0xff] }
 0x1bb   : > { %4559 = vmatprep.subr.bf16.mxu0 %v7759_v58  ;;  %4623 = vmatprep.subr.bf16.mxu1 %v7761_v46  ;;  %v7783_v2 = vpack.c.bf16 %v1110_v30, %v1102_v35  ;;  %v7785_v22 = vpack.c.bf16 %v1112_v1, %v1104_v19  ;;  %v1118_v46 = vld [vmem:[#allocation7 + $0x5a8] sm:$0xff]  ;;  %v1120_v58 = vld [vmem:[#allocation7 + $0x5b8] sm:$0xff]  ;;  %9468 = vst [vmem:[#allocation137_spill] sm:$0xff] %v7791_v24  ;;  %v1119_v30 = vld [vmem:[#allocation7 + $0x5b0] sm:$0xff] }
 0x1bc   : > { %v1127_v1 = vld [vmem:[#allocation7 + $0x5f0] sm:$0xff]  ;;  %v7813_v8 = vpack.c.bf16 %v1141_v48, %v1133_v60 }
 0x1bd   : > { %9465 = vst [vmem:[#allocation134_spill] sm:$0xff] %v7783_v2  ;;  %9466 = vst [vmem:[#allocation135_spill] sm:$0xff] %v7785_v22  ;;  %v7803_v36 = vpack.c.bf16 %v1127_v1, %v1119_v30  ;;  %v1149_v30 = vld [vmem:[#allocation7 + $0x6a0] sm:$0xff] }
 0x1be   : > { %4561 = vmatpush1.bf16.msra.mxu0 %v7765_v11  ;;  %4625 = vmatpush1.bf16.msra.mxu1 %v7767_v52  ;;  %v1126_v11 = vld [vmem:[#allocation7 + $0x5e8] sm:$0xff]  ;;  %v1128_v52 = vld [vmem:[#allocation7 + $0x5f8] sm:$0xff]  ;;  %9475 = vst [vmem:[#allocation144_spill] sm:$0xff] %v7813_v8  ;;  %v1157_v1 = vld [vmem:[#allocation7 + $0x6e0] sm:$0xff] }
 0x1bf   : > { %4563 = vmatprep.subr.bf16.mxu0 %v7771_v62  ;;  %4627 = vmatprep.subr.bf16.mxu1 %v7773_v10  ;;  %v7795_v19 = vpack.c.bf16 %v1126_v11, %v1118_v46  ;;  %v7797_v35 = vpack.c.bf16 %v1128_v52, %v1120_v58  ;;  %v1134_v10 = vld [vmem:[#allocation7 + $0x628] sm:$0xff]  ;;  %v1136_v62 = vld [vmem:[#allocation7 + $0x638] sm:$0xff]  ;;  %9472 = vst [vmem:[#allocation141_spill] sm:$0xff] %v7803_v36  ;;  %v1135_v11 = vld [vmem:[#allocation7 + $0x630] sm:$0xff] }
 0x1c0   : > { %v1143_v52 = vld [vmem:[#allocation7 + $0x670] sm:$0xff]  ;;  %v7825_v60 = vpack.c.bf16 %v1157_v1, %v1149_v30 }
 0x1c1   : > { %9469 = vst [vmem:[#allocation138_spill] sm:$0xff] %v7795_v19  ;;  %9470 = vst [vmem:[#allocation139_spill] sm:$0xff] %v7797_v35  ;;  %v7815_v7 = vpack.c.bf16 %v1143_v52, %v1135_v11  ;;  %v1165_v11 = vld [vmem:[#allocation7 + $0x720] sm:$0xff] }
 0x1c2   : > { %4565 = vmatpush1.bf16.msra.mxu0 %v7777_v44  ;;  %4629 = vmatpush1.bf16.msra.mxu1 %v7779_v51  ;;  %v1142_v44 = vld [vmem:[#allocation7 + $0x668] sm:$0xff]  ;;  %v1144_v51 = vld [vmem:[#allocation7 + $0x678] sm:$0xff]  ;;  %9479 = vst [vmem:[#allocation148_spill] sm:$0xff] %v7825_v60  ;;  %v1173_v52 = vld [vmem:[#allocation7 + $0x760] sm:$0xff] }
 0x1c3   : > { %4567 = vmatprep.subr.bf16.mxu0 %v7783_v2  ;;  %4631 = vmatprep.subr.bf16.mxu1 %v7785_v22  ;;  %v7807_v58 = vpack.c.bf16 %v1142_v44, %v1134_v10  ;;  %v7809_v46 = vpack.c.bf16 %v1144_v51, %v1136_v62  ;;  %v1150_v22 = vld [vmem:[#allocation7 + $0x6a8] sm:$0xff]  ;;  %v1152_v2 = vld [vmem:[#allocation7 + $0x6b8] sm:$0xff]  ;;  %9476 = vst [vmem:[#allocation145_spill] sm:$0xff] %v7815_v7  ;;  %v1151_v44 = vld [vmem:[#allocation7 + $0x6b0] sm:$0xff] }
 0x1c4   : > { %v1159_v51 = vld [vmem:[#allocation7 + $0x6f0] sm:$0xff]  ;;  %v7837_v30 = vpack.c.bf16 %v1173_v52, %v1165_v11 }
 0x1c5   : > { %9473 = vst [vmem:[#allocation142_spill] sm:$0xff] %v7807_v58  ;;  %9474 = vst [vmem:[#allocation143_spill] sm:$0xff] %v7809_v46  ;;  %v7827_v48 = vpack.c.bf16 %v1159_v51, %v1151_v44  ;;  %v1181_v44 = vld [vmem:[#allocation7 + $0x7a0] sm:$0xff]  ;;  %v1191_v51 = vld [vmem:[#allocation7 + $0x7f0] sm:$0xff] }
 0x1c6   : > { %4569 = vmatpush1.bf16.msra.mxu0 %v7789_v43  ;;  %4633 = vmatpush1.bf16.msra.mxu1 %v7791_v24  ;;  %v1158_v43 = vld [vmem:[#allocation7 + $0x6e8] sm:$0xff]  ;;  %v1160_v24 = vld [vmem:[#allocation7 + $0x6f8] sm:$0xff]  ;;  %9483 = vst [vmem:[#allocation152_spill] sm:$0xff] %v7837_v30 }
 0x1c7   : > { %4571 = vmatprep.subr.bf16.mxu0 %v7795_v19  ;;  %4635 = vmatprep.subr.bf16.mxu1 %v7797_v35  ;;  %v7819_v62 = vpack.c.bf16 %v1158_v43, %v1150_v22  ;;  %v7821_v10 = vpack.c.bf16 %v1160_v24, %v1152_v2  ;;  %v1166_v35 = vld [vmem:[#allocation7 + $0x728] sm:$0xff]  ;;  %v1168_v19 = vld [vmem:[#allocation7 + $0x738] sm:$0xff]  ;;  %9480 = vst [vmem:[#allocation149_spill] sm:$0xff] %v7827_v48  ;;  %v1167_v43 = vld [vmem:[#allocation7 + $0x730] sm:$0xff] }
 0x1c8   : > { %v1175_v24 = vld [vmem:[#allocation7 + $0x770] sm:$0xff] }
 0x1c9   : > { %9477 = vst [vmem:[#allocation146_spill] sm:$0xff] %v7819_v62  ;;  %9478 = vst [vmem:[#allocation147_spill] sm:$0xff] %v7821_v10  ;;  %v7839_v1 = vpack.c.bf16 %v1175_v24, %v1167_v43  ;;  %v9494_v43 = vld [vmem:[#allocation62_spill] sm:$0xff]  ;;  %v9495_v24 = vld [vmem:[#allocation63_spill] sm:$0xff] }
 0x1ca   : > { %4573 = vmatpush1.bf16.msra.mxu0 %v7801_v39  ;;  %4637 = vmatpush1.bf16.msra.mxu1 %v7803_v36  ;;  %v1174_v39 = vld [vmem:[#allocation7 + $0x768] sm:$0xff]  ;;  %v1176_v36 = vld [vmem:[#allocation7 + $0x778] sm:$0xff] }
 0x1cb   : > { %4575 = vmatprep.subr.bf16.mxu0 %v7807_v58  ;;  %4639 = vmatprep.subr.bf16.mxu1 %v7809_v46  ;;  %v7831_v2 = vpack.c.bf16 %v1174_v39, %v1166_v35  ;;  %v7833_v22 = vpack.c.bf16 %v1176_v36, %v1168_v19  ;;  %v1182_v46 = vld [vmem:[#allocation7 + $0x7a8] sm:$0xff]  ;;  %v1184_v58 = vld [vmem:[#allocation7 + $0x7b8] sm:$0xff]  ;;  %9484 = vst [vmem:[#allocation153_spill] sm:$0xff] %v7839_v1  ;;  %v1189_v39 = vld [vmem:[#allocation7 + $0x7e0] sm:$0xff] }
 0x1cc   : > { %v1183_v36 = vld [vmem:[#allocation7 + $0x7b0] sm:$0xff]  ;;  %v7849_v11 = vpack.c.bf16 %v1189_v39, %v1181_v44  ;;  %v9496_v44 = vld [vmem:[#allocation64_spill] sm:$0xff]  ;;  %v9497_v39 = vld [vmem:[#allocation65_spill] sm:$0xff] }
 0x1cd   : > { %9481 = vst [vmem:[#allocation150_spill] sm:$0xff] %v7831_v2  ;;  %9482 = vst [vmem:[#allocation151_spill] sm:$0xff] %v7833_v22  ;;  %v7851_v52 = vpack.c.bf16 %v1191_v51, %v1183_v36  ;;  %v9498_v36 = vld [vmem:[#allocation66_spill] sm:$0xff]  ;;  %v9499_v51 = vld [vmem:[#allocation67_spill] sm:$0xff] }
 0x1ce   : > { %4577 = vmatpush1.bf16.msra.mxu0 %v7813_v8  ;;  %4641 = vmatpush1.bf16.msra.mxu1 %v7815_v7  ;;  %v1190_v8 = vld [vmem:[#allocation7 + $0x7e8] sm:$0xff]  ;;  %v1192_v7 = vld [vmem:[#allocation7 + $0x7f8] sm:$0xff]  ;;  %9487 = vst [vmem:[#allocation156_spill] sm:$0xff] %v7849_v11 }
 0x1cf   : > { %4579 = vmatprep.subr.bf16.mxu0 %v7819_v62  ;;  %4643 = vmatprep.subr.bf16.mxu1 %v7821_v10  ;;  %v7843_v19 = vpack.c.bf16 %v1190_v8, %v1182_v46  ;;  %v7845_v35 = vpack.c.bf16 %v1192_v7, %v1184_v58  ;;  %9488 = vst [vmem:[#allocation157_spill] sm:$0xff] %v7851_v52  ;;  %v9490_v58 = vld [vmem:[#allocation58_spill] sm:$0xff]  ;;  %v9491_v46 = vld [vmem:[#allocation59_spill] sm:$0xff]  ;;  %v9492_v8 = vld [vmem:[#allocation60_spill] sm:$0xff] }
 0x1d0   : > { %v9493_v7 = vld [vmem:[#allocation61_spill] sm:$0xff] }
 0x1d1   : > { %9485 = vst [vmem:[#allocation154_spill] sm:$0xff] %v7843_v19  ;;  %9486 = vst [vmem:[#allocation155_spill] sm:$0xff] %v7845_v35 }
 0x1d2   : > { %4581 = vmatpush1.bf16.msra.mxu0 %v7825_v60  ;;  %4645 = vmatpush1.bf16.msra.mxu1 %v7827_v48 }
 0x1d3   : > { %4583 = vmatprep.subr.bf16.mxu0 %v7831_v2  ;;  %4647 = vmatprep.subr.bf16.mxu1 %v7833_v22 }
 0x1d6   : > { %4585 = vmatpush1.bf16.msra.mxu0 %v7837_v30  ;;  %4649 = vmatpush1.bf16.msra.mxu1 %v7839_v1 }
 0x1d7   : > { %4587 = vmatprep.subr.bf16.mxu0 %v7843_v19  ;;  %4651 = vmatprep.subr.bf16.mxu1 %v7845_v35 }
 0x1da   : > { %4589 = vmatpush1.bf16.msra.mxu0 %v7849_v11  ;;  %4653 = vmatpush1.bf16.msra.mxu1 %v7851_v52 }
 0x1db   : > { %4655 = vmatprep.subr.bf16.mxu0 %v7344_v55  ;;  %4719 = vmatprep.subr.bf16.mxu1 %v7346_v56 }
 0x1dd   : > { %1430 = vmatmul.mubr.f32.vlgmr.msra.gmra.mrb[18].mxu0 %v7667_v31  ;;  %1501 = vmatmul.mubr.f32.vlgmr.msra.gmra.mrb[18].mxu1 %v7667_v31  ;;  %v9489_v31 = vld [vmem:[#allocation57_spill] sm:$0xff] }
 0x1de   : > { %4657 = vmatpush1.bf16.msra.mxu0 %v7395_v3  ;;  %4721 = vmatpush1.bf16.msra.mxu1 %v7398_v4 }
 0x1df   : > { %4659 = vmatprep.subr.bf16.mxu0 %v7438_v9  ;;  %4723 = vmatprep.subr.bf16.mxu1 %v7440_v12 }
 0x1e2   : > { %4661 = vmatpush1.bf16.msra.mxu0 %v7443_v16  ;;  %4725 = vmatpush1.bf16.msra.mxu1 %v7445_v17 }
 0x1e3   : > { %4663 = vmatprep.subr.bf16.mxu0 %v7450_v21  ;;  %4727 = vmatprep.subr.bf16.mxu1 %v7452_v25 }
 0x1e6   : > { %4665 = vmatpush1.bf16.msra.mxu0 %v7454_v26  ;;  %4729 = vmatpush1.bf16.msra.mxu1 %v7457_v29 }
 0x1e7   : > { %4667 = vmatprep.subr.bf16.mxu0 %v7462_v33  ;;  %4731 = vmatprep.subr.bf16.mxu1 %v7464_v37 }
 0x1ea   : > { %4669 = vmatpush1.bf16.msra.mxu0 %v7466_v38  ;;  %4733 = vmatpush1.bf16.msra.mxu1 %v7469_v41 }
 0x1eb   : > { %4671 = vmatprep.subr.bf16.mxu0 %v7474_v45  ;;  %4735 = vmatprep.subr.bf16.mxu1 %v7476_v49 }
 0x1ee   : > { %4673 = vmatpush1.bf16.msra.mxu0 %v7478_v50  ;;  %4737 = vmatpush1.bf16.msra.mxu1 %v7481_v53 }
 0x1ef   : > { %4675 = vmatprep.subr.bf16.mxu0 %v7486_v59  ;;  %4739 = vmatprep.subr.bf16.mxu1 %v7488_v63 }
 0x1f2   : > { %4677 = vmatpush1.bf16.msra.mxu0 %v7490_v0  ;;  %4741 = vmatpush1.bf16.msra.mxu1 %v7493_v6 }
 0x1f3   : > { %4679 = vmatprep.subr.bf16.mxu0 %v7496_v13  ;;  %4743 = vmatprep.subr.bf16.mxu1 %v7498_v14 }
 0x1f6   : > { %4681 = vmatpush1.bf16.msra.mxu0 %v7502_v20  ;;  %4745 = vmatpush1.bf16.msra.mxu1 %v7506_v27 }
 0x1f7   : > { %4683 = vmatprep.subr.bf16.mxu0 %v7508_v28  ;;  %4747 = vmatprep.subr.bf16.mxu1 %v7510_v34 }
 0x1fa   : > { %4685 = vmatpush1.bf16.msra.mxu0 %v7514_v40  ;;  %4749 = vmatpush1.bf16.msra.mxu1 %v7516_v42 }
 0x1fb   : > { %4687 = vmatprep.subr.bf16.mxu0 %v7522_v47  ;;  %4751 = vmatprep.subr.bf16.mxu1 %v7524_v54 }
 0x1fe   : > { %4689 = vmatpush1.bf16.msra.mxu0 %v7526_v57  ;;  %4753 = vmatpush1.bf16.msra.mxu1 %v7529_v61 }
 0x1ff   : > { %4691 = vmatprep.subr.bf16.mxu0 %v7534_v5  ;;  %4755 = vmatprep.subr.bf16.mxu1 %v7536_v15 }
 0x202   : > { %4693 = vmatpush1.bf16.msra.mxu0 %v7538_v18  ;;  %4757 = vmatpush1.bf16.msra.mxu1 %v7541_v23  ;;  %v9514_v23 = vld [vmem:[#allocation82_spill] sm:$0xff]  ;;  %v9515_v18 = vld [vmem:[#allocation83_spill] sm:$0xff] }
 0x203   : > { %4695 = vmatprep.subr.bf16.mxu0 %v7546_v32  ;;  %4759 = vmatprep.subr.bf16.mxu1 %v9489_v31  ;;  %v9500_v31 = vld [vmem:[#allocation68_spill] sm:$0xff]  ;;  %v378_v40 = vsub.s32 5, %v9514_v23 }
 0x206   : > { %4697 = vmatpush1.bf16.msra.mxu0 %v9490_v58  ;;  %4761 = vmatpush1.bf16.msra.mxu1 %v9491_v46  ;;  %v9501_v58 = vld [vmem:[#allocation69_spill] sm:$0xff]  ;;  %v9502_v46 = vld [vmem:[#allocation70_spill] sm:$0xff] }
 0x207   : > { %4699 = vmatprep.subr.bf16.mxu0 %v9492_v8  ;;  %4763 = vmatprep.subr.bf16.mxu1 %v9493_v7  ;;  %v9503_v8 = vld [vmem:[#allocation71_spill] sm:$0xff]  ;;  %v9504_v7 = vld [vmem:[#allocation72_spill] sm:$0xff] }
 0x20a   : > { %4701 = vmatpush1.bf16.msra.mxu0 %v9494_v43  ;;  %4765 = vmatpush1.bf16.msra.mxu1 %v9495_v24  ;;  %v9505_v43 = vld [vmem:[#allocation73_spill] sm:$0xff]  ;;  %v9506_v24 = vld [vmem:[#allocation74_spill] sm:$0xff] }
 0x20b   : > { %4703 = vmatprep.subr.bf16.mxu0 %v9496_v44  ;;  %4767 = vmatprep.subr.bf16.mxu1 %v9497_v39  ;;  %v9507_v44 = vld [vmem:[#allocation75_spill] sm:$0xff]  ;;  %v9508_v39 = vld [vmem:[#allocation76_spill] sm:$0xff] }
 0x20e   : > { %4705 = vmatpush1.bf16.msra.mxu0 %v9498_v36  ;;  %4769 = vmatpush1.bf16.msra.mxu1 %v9499_v51  ;;  %v9509_v36 = vld [vmem:[#allocation77_spill] sm:$0xff]  ;;  %v9510_v51 = vld [vmem:[#allocation78_spill] sm:$0xff] }
 0x20f   : > { %4707 = vmatprep.subr.bf16.mxu0 %v9500_v31  ;;  %4771 = vmatprep.subr.bf16.mxu1 %v9501_v58  ;;  %v9511_v31 = vld [vmem:[#allocation79_spill] sm:$0xff]  ;;  %v9512_v58 = vld [vmem:[#allocation80_spill] sm:$0xff] }
 0x212   : > { %4709 = vmatpush1.bf16.msra.mxu0 %v9502_v46  ;;  %4773 = vmatpush1.bf16.msra.mxu1 %v9503_v8  ;;  %v9513_v46 = vld [vmem:[#allocation81_spill] sm:$0xff] }
 0x213   : > { %4711 = vmatprep.subr.bf16.mxu0 %v9504_v7  ;;  %4775 = vmatprep.subr.bf16.mxu1 %v9505_v43 }
 0x216   : > { %4713 = vmatpush1.bf16.msra.mxu0 %v9506_v24  ;;  %4777 = vmatpush1.bf16.msra.mxu1 %v9507_v44  ;;  %v366_v24 = vsub.s32 2, %v9514_v23  ;;  %v362_v44 = vsub.s32 1, %v9514_v23 }
 0x217   : > { %4715 = vmatprep.subr.bf16.mxu0 %v9508_v39  ;;  %4779 = vmatprep.subr.bf16.mxu1 %v9509_v36  ;;  %v370_v39 = vsub.s32 3, %v9514_v23 }
 0x218   : > { %v7929_v36 = vrot.slane %v9515_v18, %v366_v24 }
 0x21a   : > { %4717 = vmatpush1.bf16.msra.mxu0 %v9510_v51  ;;  %4781 = vmatpush1.bf16.msra.mxu1 %v9511_v31  ;;  %v7932_v51 = vrot.slane %v9515_v18, %v362_v44  ;;  %v9517_v31 = vld [vmem:[#allocation84_spill] sm:$0xff] }
 0x21b   : > { %4783 = vmatprep.subr.bf16.mxu0 %v9512_v58  ;;  %4847 = vmatprep.subr.bf16.mxu1 %v9513_v46  ;;  %v7936_v46 = vrot.slane %v9515_v18, %v370_v39 }
 0x21c   : > { %9516 = vst [vmem:[#allocation82_spill] sm:$0xff] %v7932_v51 }
 0x21d   : > { %9518 = vst [vmem:[#allocation83_spill] sm:$0xff] %v7936_v46 }
 0x270   : > { %v1289_v8 = vpop.f32.mrb[2].mxu0  ;;  %v1360_v7 = vpop.f32.mrb[2].mxu1 }
 0x271   : > { %v1291_v32 = vpop.f32.mrb[3].mxu0  ;;  %v1362_v43 = vpop.f32.mrb[3].mxu1  ;;  %v6478_v58 = vadd.f32 %v1289_v8, %v9517_v31  ;;  %v6490_v15 = vadd.f32 %v1360_v7, %v7929_v36  ;;  %v386_v7 = vsub.s32 7, %v9514_v23 }
 0x272   : > { %v6479_v5 = vadd.f32 %v1291_v32, %v7932_v51  ;;  %v6491_v61 = vadd.f32 %v1362_v43, %v7936_v46 }
 0x273   : > { %v4248_v57 = vmul.f32 -1.442695, %v6478_v58  ;;  %v4250_v54 = vmul.f32 -1.442695, %v6490_v15  ;;  %v9521_v15 = vld [vmem:[#allocation90_spill] sm:$0xff] }
 0x274   : > { %v4249_v47 = vmul.f32 -1.442695, %v6479_v5  ;;  %v4251_v42 = vmul.f32 -1.442695, %v6491_v61  ;;  %v7944_v5 = vrot.slane %v9515_v18, %v378_v40 }
 0x275   : > { %6678 = vpow2.f32 %v4248_v57  ;;  %v9520_v57 = vld [vmem:[#allocation88_spill] sm:$0xff] }
 0x276   : > { %6680 = vpow2.f32 %v4250_v54  ;;  %9519 = vst [vmem:[#allocation158_spill] sm:$0xff] %v7944_v5  ;;  %v7947_v54 = vrot.slane %v9515_v18, %v386_v7 }
 0x277   : > { %6682 = vpow2.f32 %v4249_v47 }
 0x278   : > { %6684 = vpow2.f32 %v4251_v42 }
 0x27f   : > { %v6679_v24 = vpop.eup %6678 }
 0x280   : > { %v6681_v44 = vpop.eup %6680  ;;  %v1513_v39 = vadd.f32 1.0, %v6679_v24 }
 0x281   : > { %v6683_v8 = vpop.eup %6682  ;;  %v1525_v32 = vadd.f32 1.0, %v6681_v44 }
 0x282   : > { %v6685_v31 = vpop.eup %6684  ;;  %v1514_v51 = vadd.f32 1.0, %v6683_v8  ;;  %6686 = vrcp.f32 %v1513_v39 }
 0x283   : > { %v1526_v43 = vadd.f32 1.0, %v6685_v31  ;;  %6688 = vrcp.f32 %v1525_v32 }
 0x284   : > { %6690 = vrcp.f32 %v1514_v51 }
 0x285   : > { %6692 = vrcp.f32 %v1526_v43 }
 0x28c   : > { %v6687_v8 = vpop.eup %6686 }
 0x28d   : > { %v6689_v39 = vpop.eup %6688 }
 0x28e   : > { %v6691_v51 = vpop.eup %6690 }
 0x28f   : > { %v6693_v7 = vpop.eup %6692 }
 0x290   : > { %v1546_v46 = vmul.f32 0.0, %v6693_v7 }
 0x2b0   : > { %v1431_v42 = vpop.f32.mrb[18].mxu0  ;;  %v1502_v47 = vpop.f32.mrb[18].mxu1 }
 0x2b1   : > { %v6502_v61 = vadd.f32 %v1431_v42, %v9520_v57  ;;  %v6514_v58 = vadd.f32 %v1502_v47, %v9521_v15  ;;  %v1433_v24 = vpop.f32.mrb[19].mxu0  ;;  %v1504_v23 = vpop.f32.mrb[19].mxu1  ;;  %v9522_v47 = vld [vmem:[#allocation91_spill] sm:$0xff] }
 0x2b2   : > { %v6503_v31 = vadd.f32 %v1433_v24, %v7944_v5  ;;  %v6515_v44 = vadd.f32 %v1504_v23, %v7947_v54  ;;  %v1545_v15 = vmul.f32 %v6689_v39, %v9522_v47  ;;  %v9530_v47 = vld [vmem:[#allocation103_spill] sm:$0xff] }
 0x2b3   : > { %6694 = vtanh.f32 %v6502_v61  ;;  %v4252_v40 = vmul.f32 -1.442695, %v6514_v58 }
 0x2b4   : > { %6696 = vtanh.f32 %v6503_v31  ;;  %v4253_v18 = vmul.f32 -1.442695, %v6515_v44 }
 0x2b5   : > { %6698 = vpow2.f32 %v4252_v40 }
 0x2b6   : > { %6700 = vpow2.f32 %v4253_v18 }
 0x2bd   : > { %v6695_v32 = vpop.eup %6694 }
 0x2be   : > { %v6697_v42 = vpop.eup %6696  ;;  %v1547_v57 = vmul.f32 %v6695_v32, %v6687_v8  ;;  %v9528_v32 = vld [vmem:[#allocation101_spill] sm:$0xff] }
 0x2bf   : > { %v6699_v43 = vpop.eup %6698  ;;  %v1548_v24 = vmul.f32 %v6697_v42, %v6691_v51  ;;  %v9527_v51 = vld [vmem:[#allocation100_spill] sm:$0xff]  ;;  %v9529_v42 = vld [vmem:[#allocation102_spill] sm:$0xff] }
 0x2c0   : > { %v6701_v5 = vpop.eup %6700  ;;  %v7954_v23 = vadd.f32 %v1547_v57, %v1545_v15  ;;  %v1539_v61 = vadd.f32 1.0, %v6699_v43  ;;  %v9525_v57 = vld [vmem:[#allocation97_spill] sm:$0xff]  ;;  %v9526_v15 = vld [vmem:[#allocation98_spill] sm:$0xff]  ;;  %v9531_v43 = vld [vmem:[#allocation104_spill] sm:$0xff] }
 0x2c1   : > { %v7956_v58 = vadd.f32 %v1548_v24, %v1546_v46  ;;  %v1540_v31 = vadd.f32 1.0, %v6701_v5  ;;  %v9523_v46 = vld [vmem:[#allocation93_spill] sm:$0xff]  ;;  %v9524_v5 = vld [vmem:[#allocation94_spill] sm:$0xff] }
 0x2c2   : > { %6702 = vtanh.f32 %v7954_v23  ;;  %v9532_v24 = vld [vmem:[#allocation105_spill] sm:$0xff] }
 0x2c3   : > { %6704 = vrcp.f32 %v1539_v61  ;;  %v9533_v61 = vld [vmem:[#allocation106_spill] sm:$0xff] }
 0x2c4   : > { %6706 = vtanh.f32 %v7956_v58 }
 0x2c5   : > { %6708 = vrcp.f32 %v1540_v31  ;;  %v9534_v31 = vld [vmem:[#allocation107_spill] sm:$0xff] }
 0x2cc   : > { %v6703_v44 = vpop.eup %6702 }
 0x2cd   : > { %v6705_v40 = vpop.eup %6704 }
 0x2ce   : > { %v6707_v18 = vpop.eup %6706  ;;  %v7960_v7 = vmul.f32 %v6705_v40, %v6703_v44  ;;  %v9535_v44 = vld [vmem:[#allocation108_spill] sm:$0xff]  ;;  %v9536_v40 = vld [vmem:[#allocation109_spill] sm:$0xff] }
 0x2cf   : > { %v6709_v8 = vpop.eup %6708 }
 0x2d0   : > { %v1554_v39 = vmul.f32 %v6709_v8, %v6707_v18  ;;  %v9537_v18 = vld [vmem:[#allocation110_spill] sm:$0xff]  ;;  %v9538_v8 = vld [vmem:[#allocation111_spill] sm:$0xff] }
 0x2d2   : > { %1555 = vst [vmem:[#allocation3] sm:$0xff] %v1554_v39  ;;  %1631 = vmatprep.mubr.f32.mxu0 %v1554_v39  ;;  %1702 = vmatprep.mubr.f32.mxu1 %v1554_v39 }
 0x2d3   : > { %1632 = vmatmul.mubr.f32.vlgmr.msra.gmra.mrb[4].mxu0 %v7960_v7  ;;  %1703 = vmatmul.mubr.f32.vlgmr.msra.gmra.mrb[4].mxu1 %v7960_v7 }
 0x2d4   : > { %4785 = vmatpush1.bf16.msra.mxu0 %v9523_v46  ;;  %4849 = vmatpush1.bf16.msra.mxu1 %v9524_v5 }
 0x2d5   : > { %1773 = vmatprep.mubr.f32.mxu0 %v1554_v39  ;;  %1844 = vmatprep.mubr.f32.mxu1 %v1554_v39  ;;  %v9539_v39 = vld [vmem:[#allocation112_spill] sm:$0xff] }
 0x2d6   : > { %4787 = vmatprep.subr.bf16.mxu0 %v9525_v57  ;;  %4851 = vmatprep.subr.bf16.mxu1 %v9526_v15 }
 0x2d8   : > { %4789 = vmatpush1.bf16.msra.mxu0 %v9527_v51  ;;  %4853 = vmatpush1.bf16.msra.mxu1 %v9528_v32 }
 0x2d9   : > { %4791 = vmatprep.subr.bf16.mxu0 %v9529_v42  ;;  %4855 = vmatprep.subr.bf16.mxu1 %v9530_v47  ;;  %v9540_v42 = vld [vmem:[#allocation113_spill] sm:$0xff]  ;;  %v9541_v47 = vld [vmem:[#allocation114_spill] sm:$0xff] }
 0x2dc   : > { %4793 = vmatpush1.bf16.msra.mxu0 %v9531_v43  ;;  %4857 = vmatpush1.bf16.msra.mxu1 %v9532_v24  ;;  %v9542_v43 = vld [vmem:[#allocation115_spill] sm:$0xff]  ;;  %v9543_v24 = vld [vmem:[#allocation116_spill] sm:$0xff] }
 0x2dd   : > { %4795 = vmatprep.subr.bf16.mxu0 %v9533_v61  ;;  %4859 = vmatprep.subr.bf16.mxu1 %v9534_v31  ;;  %v9544_v61 = vld [vmem:[#allocation117_spill] sm:$0xff]  ;;  %v9545_v31 = vld [vmem:[#allocation118_spill] sm:$0xff] }
 0x2e0   : > { %4797 = vmatpush1.bf16.msra.mxu0 %v9535_v44  ;;  %4861 = vmatpush1.bf16.msra.mxu1 %v9536_v40  ;;  %v9546_v44 = vld [vmem:[#allocation119_spill] sm:$0xff]  ;;  %v9547_v40 = vld [vmem:[#allocation120_spill] sm:$0xff] }
 0x2e1   : > { %4799 = vmatprep.subr.bf16.mxu0 %v9537_v18  ;;  %4863 = vmatprep.subr.bf16.mxu1 %v9538_v8  ;;  %v9548_v18 = vld [vmem:[#allocation121_spill] sm:$0xff]  ;;  %v9549_v8 = vld [vmem:[#allocation122_spill] sm:$0xff] }
 0x2e4   : > { %4801 = vmatpush1.bf16.msra.mxu0 %v9539_v39  ;;  %4865 = vmatpush1.bf16.msra.mxu1 %v9540_v42  ;;  %v9550_v39 = vld [vmem:[#allocation123_spill] sm:$0xff]  ;;  %v9551_v42 = vld [vmem:[#allocation124_spill] sm:$0xff] }
 0x2e5   : > { %4803 = vmatprep.subr.bf16.mxu0 %v9541_v47  ;;  %4867 = vmatprep.subr.bf16.mxu1 %v9542_v43  ;;  %v9552_v47 = vld [vmem:[#allocation125_spill] sm:$0xff]  ;;  %v9553_v43 = vld [vmem:[#allocation126_spill] sm:$0xff] }
 0x2e8   : > { %4805 = vmatpush1.bf16.msra.mxu0 %v9543_v24  ;;  %4869 = vmatpush1.bf16.msra.mxu1 %v9544_v61  ;;  %v9554_v24 = vld [vmem:[#allocation127_spill] sm:$0xff]  ;;  %v9555_v61 = vld [vmem:[#allocation128_spill] sm:$0xff] }
 0x2e9   : > { %4807 = vmatprep.subr.bf16.mxu0 %v9545_v31  ;;  %4871 = vmatprep.subr.bf16.mxu1 %v9546_v44  ;;  %v9556_v31 = vld [vmem:[#allocation129_spill] sm:$0xff]  ;;  %v9557_v44 = vld [vmem:[#allocation130_spill] sm:$0xff] }
 0x2ec   : > { %4809 = vmatpush1.bf16.msra.mxu0 %v9547_v40  ;;  %4873 = vmatpush1.bf16.msra.mxu1 %v9548_v18  ;;  %v9558_v40 = vld [vmem:[#allocation131_spill] sm:$0xff]  ;;  %v9559_v18 = vld [vmem:[#allocation132_spill] sm:$0xff] }
 0x2ed   : > { %4811 = vmatprep.subr.bf16.mxu0 %v9549_v8  ;;  %4875 = vmatprep.subr.bf16.mxu1 %v9550_v39  ;;  %v9560_v8 = vld [vmem:[#allocation133_spill] sm:$0xff]  ;;  %v9561_v39 = vld [vmem:[#allocation134_spill] sm:$0xff] }
 0x2f0   : > { %4813 = vmatpush1.bf16.msra.mxu0 %v9551_v42  ;;  %4877 = vmatpush1.bf16.msra.mxu1 %v9552_v47  ;;  %v9562_v42 = vld [vmem:[#allocation135_spill] sm:$0xff]  ;;  %v9563_v47 = vld [vmem:[#allocation136_spill] sm:$0xff] }
 0x2f1   : > { %4815 = vmatprep.subr.bf16.mxu0 %v9553_v43  ;;  %4879 = vmatprep.subr.bf16.mxu1 %v9554_v24  ;;  %v9564_v43 = vld [vmem:[#allocation137_spill] sm:$0xff]  ;;  %v9565_v24 = vld [vmem:[#allocation138_spill] sm:$0xff] }
 0x2f4   : > { %4817 = vmatpush1.bf16.msra.mxu0 %v9555_v61  ;;  %4881 = vmatpush1.bf16.msra.mxu1 %v9556_v31  ;;  %v9566_v61 = vld [vmem:[#allocation139_spill] sm:$0xff]  ;;  %v9567_v31 = vld [vmem:[#allocation140_spill] sm:$0xff] }
 0x2f5   : > { %4819 = vmatprep.subr.bf16.mxu0 %v9557_v44  ;;  %4883 = vmatprep.subr.bf16.mxu1 %v9558_v40  ;;  %v9568_v44 = vld [vmem:[#allocation141_spill] sm:$0xff]  ;;  %v9569_v40 = vld [vmem:[#allocation142_spill] sm:$0xff] }
 0x2f8   : > { %4821 = vmatpush1.bf16.msra.mxu0 %v9559_v18  ;;  %4885 = vmatpush1.bf16.msra.mxu1 %v9560_v8  ;;  %v9570_v18 = vld [vmem:[#allocation143_spill] sm:$0xff]  ;;  %v9571_v8 = vld [vmem:[#allocation144_spill] sm:$0xff] }
 0x2f9   : > { %4823 = vmatprep.subr.bf16.mxu0 %v9561_v39  ;;  %4887 = vmatprep.subr.bf16.mxu1 %v9562_v42  ;;  %v9572_v39 = vld [vmem:[#allocation145_spill] sm:$0xff] }
 0x2fc   : > { %4825 = vmatpush1.bf16.msra.mxu0 %v9563_v47  ;;  %4889 = vmatpush1.bf16.msra.mxu1 %v9564_v43 }
 0x2fd   : > { %4827 = vmatprep.subr.bf16.mxu0 %v9565_v24  ;;  %4891 = vmatprep.subr.bf16.mxu1 %v9566_v61 }
 0x300   : > { %4829 = vmatpush1.bf16.msra.mxu0 %v9567_v31  ;;  %4893 = vmatpush1.bf16.msra.mxu1 %v9568_v44 }
 0x301   : > { %4831 = vmatprep.subr.bf16.mxu0 %v9569_v40  ;;  %4895 = vmatprep.subr.bf16.mxu1 %v9570_v18 }
 0x304   : > { %4833 = vmatpush1.bf16.msra.mxu0 %v9571_v8  ;;  %4897 = vmatpush1.bf16.msra.mxu1 %v9572_v39 }
 0x305   : > { %4835 = vmatprep.subr.bf16.mxu0 %v7819_v62  ;;  %4899 = vmatprep.subr.bf16.mxu1 %v7821_v10 }
 0x308   : > { %4837 = vmatpush1.bf16.msra.mxu0 %v7825_v60  ;;  %4901 = vmatpush1.bf16.msra.mxu1 %v7827_v48 }
 0x309   : > { %4839 = vmatprep.subr.bf16.mxu0 %v7831_v2  ;;  %4903 = vmatprep.subr.bf16.mxu1 %v7833_v22 }
 0x30c   : > { %4841 = vmatpush1.bf16.msra.mxu0 %v7837_v30  ;;  %4905 = vmatpush1.bf16.msra.mxu1 %v7839_v1 }
 0x30d   : > { %4843 = vmatprep.subr.bf16.mxu0 %v7843_v19  ;;  %4907 = vmatprep.subr.bf16.mxu1 %v7845_v35 }
 0x310   : > { %4845 = vmatpush1.bf16.msra.mxu0 %v7849_v11  ;;  %4909 = vmatpush1.bf16.msra.mxu1 %v7851_v52 }
 0x311   : > { %4911 = vmatprep.subr.bf16.mxu0 %v7344_v55  ;;  %4975 = vmatprep.subr.bf16.mxu1 %v7346_v56 }
 0x313   : > { %1774 = vmatmul.mubr.f32.vlgmr.msra.gmra.mrb[20].mxu0 %v7960_v7  ;;  %1845 = vmatmul.mubr.f32.vlgmr.msra.gmra.mrb[20].mxu1 %v7960_v7  ;;  %v9573_v7 = vld [vmem:[#allocation46_spill] sm:$0xff] }
 0x314   : > { %4913 = vmatpush1.bf16.msra.mxu0 %v7395_v3  ;;  %4977 = vmatpush1.bf16.msra.mxu1 %v7398_v4 }
 0x315   : > { %4915 = vmatprep.subr.bf16.mxu0 %v7438_v9  ;;  %4979 = vmatprep.subr.bf16.mxu1 %v7440_v12 }
 0x318   : > { %4917 = vmatpush1.bf16.msra.mxu0 %v7443_v16  ;;  %4981 = vmatpush1.bf16.msra.mxu1 %v7445_v17 }
 0x319   : > { %4919 = vmatprep.subr.bf16.mxu0 %v7450_v21  ;;  %4983 = vmatprep.subr.bf16.mxu1 %v7452_v25 }
 0x31c   : > { %4921 = vmatpush1.bf16.msra.mxu0 %v7454_v26  ;;  %4985 = vmatpush1.bf16.msra.mxu1 %v7457_v29 }
 0x31d   : > { %4923 = vmatprep.subr.bf16.mxu0 %v7462_v33  ;;  %4987 = vmatprep.subr.bf16.mxu1 %v7464_v37 }
 0x320   : > { %4925 = vmatpush1.bf16.msra.mxu0 %v7466_v38  ;;  %4989 = vmatpush1.bf16.msra.mxu1 %v7469_v41 }
 0x321   : > { %4927 = vmatprep.subr.bf16.mxu0 %v7474_v45  ;;  %4991 = vmatprep.subr.bf16.mxu1 %v7476_v49  ;;  %v9610_v49 = vld [vmem:[#allocation82_spill] sm:$0xff]  ;;  %v9611_v45 = vld [vmem:[#allocation83_spill] sm:$0xff] }
 0x324   : > { %4929 = vmatpush1.bf16.msra.mxu0 %v7478_v50  ;;  %4993 = vmatpush1.bf16.msra.mxu1 %v7481_v53  ;;  %v9609_v50 = vld [vmem:[#allocation84_spill] sm:$0xff] }
 0x325   : > { %4931 = vmatprep.subr.bf16.mxu0 %v7486_v59  ;;  %4995 = vmatprep.subr.bf16.mxu1 %v7488_v63  ;;  %v9574_v59 = vld [vmem:[#allocation47_spill] sm:$0xff]  ;;  %v9575_v63 = vld [vmem:[#allocation48_spill] sm:$0xff] }
 0x328   : > { %4933 = vmatpush1.bf16.msra.mxu0 %v7490_v0  ;;  %4997 = vmatpush1.bf16.msra.mxu1 %v7493_v6  ;;  %v9576_v0 = vld [vmem:[#allocation49_spill] sm:$0xff]  ;;  %v9577_v6 = vld [vmem:[#allocation50_spill] sm:$0xff] }
 0x329   : > { %4935 = vmatprep.subr.bf16.mxu0 %v7496_v13  ;;  %4999 = vmatprep.subr.bf16.mxu1 %v7498_v14  ;;  %v9578_v13 = vld [vmem:[#allocation51_spill] sm:$0xff]  ;;  %v9579_v14 = vld [vmem:[#allocation52_spill] sm:$0xff] }
 0x32c   : > { %4937 = vmatpush1.bf16.msra.mxu0 %v7502_v20  ;;  %5001 = vmatpush1.bf16.msra.mxu1 %v7506_v27  ;;  %v9580_v20 = vld [vmem:[#allocation53_spill] sm:$0xff]  ;;  %v9581_v27 = vld [vmem:[#allocation54_spill] sm:$0xff] }
 0x32d   : > { %4939 = vmatprep.subr.bf16.mxu0 %v7508_v28  ;;  %5003 = vmatprep.subr.bf16.mxu1 %v7510_v34  ;;  %v9582_v28 = vld [vmem:[#allocation55_spill] sm:$0xff]  ;;  %v9583_v34 = vld [vmem:[#allocation56_spill] sm:$0xff] }
 0x330   : > { %4941 = vmatpush1.bf16.msra.mxu0 %v9573_v7  ;;  %5005 = vmatpush1.bf16.msra.mxu1 %v9574_v59  ;;  %v9584_v7 = vld [vmem:[#allocation57_spill] sm:$0xff]  ;;  %v9585_v59 = vld [vmem:[#allocation58_spill] sm:$0xff] }
 0x331   : > { %4943 = vmatprep.subr.bf16.mxu0 %v9575_v63  ;;  %5007 = vmatprep.subr.bf16.mxu1 %v9576_v0  ;;  %v9586_v63 = vld [vmem:[#allocation59_spill] sm:$0xff]  ;;  %v9587_v0 = vld [vmem:[#allocation60_spill] sm:$0xff] }
 0x334   : > { %4945 = vmatpush1.bf16.msra.mxu0 %v9577_v6  ;;  %5009 = vmatpush1.bf16.msra.mxu1 %v9578_v13  ;;  %v9588_v6 = vld [vmem:[#allocation61_spill] sm:$0xff]  ;;  %v9589_v13 = vld [vmem:[#allocation62_spill] sm:$0xff] }
 0x335   : > { %4947 = vmatprep.subr.bf16.mxu0 %v9579_v14  ;;  %5011 = vmatprep.subr.bf16.mxu1 %v9580_v20  ;;  %v9590_v14 = vld [vmem:[#allocation63_spill] sm:$0xff]  ;;  %v9591_v20 = vld [vmem:[#allocation64_spill] sm:$0xff] }
 0x338   : > { %4949 = vmatpush1.bf16.msra.mxu0 %v9581_v27  ;;  %5013 = vmatpush1.bf16.msra.mxu1 %v9582_v28  ;;  %v9592_v27 = vld [vmem:[#allocation65_spill] sm:$0xff]  ;;  %v9593_v28 = vld [vmem:[#allocation66_spill] sm:$0xff] }
 0x339   : > { %4951 = vmatprep.subr.bf16.mxu0 %v9583_v34  ;;  %5015 = vmatprep.subr.bf16.mxu1 %v9584_v7  ;;  %v9594_v34 = vld [vmem:[#allocation67_spill] sm:$0xff]  ;;  %v9595_v7 = vld [vmem:[#allocation68_spill] sm:$0xff] }
 0x33c   : > { %4953 = vmatpush1.bf16.msra.mxu0 %v9585_v59  ;;  %5017 = vmatpush1.bf16.msra.mxu1 %v9586_v63  ;;  %v9596_v59 = vld [vmem:[#allocation69_spill] sm:$0xff]  ;;  %v9597_v63 = vld [vmem:[#allocation70_spill] sm:$0xff] }
 0x33d   : > { %4955 = vmatprep.subr.bf16.mxu0 %v9587_v0  ;;  %5019 = vmatprep.subr.bf16.mxu1 %v9588_v6  ;;  %v9598_v0 = vld [vmem:[#allocation71_spill] sm:$0xff]  ;;  %v9599_v6 = vld [vmem:[#allocation72_spill] sm:$0xff] }
 0x340   : > { %4957 = vmatpush1.bf16.msra.mxu0 %v9589_v13  ;;  %5021 = vmatpush1.bf16.msra.mxu1 %v9590_v14  ;;  %v9600_v13 = vld [vmem:[#allocation73_spill] sm:$0xff]  ;;  %v9601_v14 = vld [vmem:[#allocation74_spill] sm:$0xff] }
 0x341   : > { %4959 = vmatprep.subr.bf16.mxu0 %v9591_v20  ;;  %5023 = vmatprep.subr.bf16.mxu1 %v9592_v27  ;;  %v9602_v20 = vld [vmem:[#allocation75_spill] sm:$0xff]  ;;  %v9603_v27 = vld [vmem:[#allocation76_spill] sm:$0xff] }
 0x344   : > { %4961 = vmatpush1.bf16.msra.mxu0 %v9593_v28  ;;  %5025 = vmatpush1.bf16.msra.mxu1 %v9594_v34  ;;  %v9604_v28 = vld [vmem:[#allocation77_spill] sm:$0xff]  ;;  %v9605_v34 = vld [vmem:[#allocation78_spill] sm:$0xff] }
 0x345   : > { %4963 = vmatprep.subr.bf16.mxu0 %v9595_v7  ;;  %5027 = vmatprep.subr.bf16.mxu1 %v9596_v59  ;;  %v9606_v7 = vld [vmem:[#allocation79_spill] sm:$0xff]  ;;  %v9607_v59 = vld [vmem:[#allocation80_spill] sm:$0xff] }
 0x348   : > { %4965 = vmatpush1.bf16.msra.mxu0 %v9597_v63  ;;  %5029 = vmatpush1.bf16.msra.mxu1 %v9598_v0  ;;  %v9608_v63 = vld [vmem:[#allocation81_spill] sm:$0xff] }
 0x349   : > { %4967 = vmatprep.subr.bf16.mxu0 %v9599_v6  ;;  %5031 = vmatprep.subr.bf16.mxu1 %v9600_v13 }
 0x34c   : > { %4969 = vmatpush1.bf16.msra.mxu0 %v9601_v14  ;;  %5033 = vmatpush1.bf16.msra.mxu1 %v9602_v20 }
 0x34d   : > { %4971 = vmatprep.subr.bf16.mxu0 %v9603_v27  ;;  %5035 = vmatprep.subr.bf16.mxu1 %v9604_v28 }
 0x350   : > { %4973 = vmatpush1.bf16.msra.mxu0 %v9605_v34  ;;  %5037 = vmatpush1.bf16.msra.mxu1 %v9606_v7 }
 0x351   : > { %5039 = vmatprep.subr.bf16.mxu0 %v9607_v59  ;;  %5103 = vmatprep.subr.bf16.mxu1 %v9608_v63 }
 0x3a6   : > { %v1633_v0 = vpop.f32.mrb[4].mxu0  ;;  %v1704_v6 = vpop.f32.mrb[4].mxu1 }
 0x3a7   : > { %v1635_v53 = vpop.f32.mrb[5].mxu0  ;;  %v1706_v13 = vpop.f32.mrb[5].mxu1  ;;  %v6480_v14 = vadd.f32 %v1633_v0, %v9609_v50  ;;  %v6492_v20 = vadd.f32 %v1704_v6, %v7929_v36 }
 0x3a8   : > { %v6481_v27 = vadd.f32 %v1635_v53, %v9610_v49  ;;  %v6493_v28 = vadd.f32 %v1706_v13, %v9611_v45 }
 0x3a9   : > { %v4254_v41 = vmul.f32 -1.442695, %v6480_v14  ;;  %v4256_v34 = vmul.f32 -1.442695, %v6492_v20  ;;  %v9612_v14 = vld [vmem:[#allocation88_spill] sm:$0xff] }
 0x3aa   : > { %v4255_v38 = vmul.f32 -1.442695, %v6481_v27  ;;  %v4257_v7 = vmul.f32 -1.442695, %v6493_v28  ;;  %v9613_v27 = vld [vmem:[#allocation90_spill] sm:$0xff] }
 0x3ab   : > { %6710 = vpow2.f32 %v4254_v41 }
 0x3ac   : > { %6712 = vpow2.f32 %v4256_v34  ;;  %v9614_v34 = vld [vmem:[#allocation158_spill] sm:$0xff] }
 0x3ad   : > { %6714 = vpow2.f32 %v4255_v38 }
 0x3ae   : > { %6716 = vpow2.f32 %v4257_v7 }
 0x3b5   : > { %v6711_v63 = vpop.eup %6710 }
 0x3b6   : > { %v6713_v59 = vpop.eup %6712  ;;  %v1857_v29 = vadd.f32 1.0, %v6711_v63 }
 0x3b7   : > { %v6715_v37 = vpop.eup %6714  ;;  %v1869_v0 = vadd.f32 1.0, %v6713_v59 }
 0x3b8   : > { %v6717_v33 = vpop.eup %6716  ;;  %v1858_v50 = vadd.f32 1.0, %v6715_v37  ;;  %6718 = vrcp.f32 %v1857_v29 }
 0x3b9   : > { %v1870_v6 = vadd.f32 1.0, %v6717_v33  ;;  %6720 = vrcp.f32 %v1869_v0 }
 0x3ba   : > { %6722 = vrcp.f32 %v1858_v50 }
 0x3bb   : > { %6724 = vrcp.f32 %v1870_v6 }
 0x3c2   : > { %v6719_v29 = vpop.eup %6718 }
 0x3c3   : > { %v6721_v37 = vpop.eup %6720 }
 0x3c4   : > { %v6723_v50 = vpop.eup %6722 }
 0x3c5   : > { %v6725_v63 = vpop.eup %6724 }
 0x3e6   : > { %v1775_v53 = vpop.f32.mrb[20].mxu0  ;;  %v1846_v13 = vpop.f32.mrb[20].mxu1 }
 0x3e7   : > { %v6504_v20 = vadd.f32 %v1775_v53, %v9612_v14  ;;  %v6516_v41 = vadd.f32 %v1846_v13, %v9613_v27  ;;  %v1777_v28 = vpop.f32.mrb[21].mxu0  ;;  %v1848_v38 = vpop.f32.mrb[21].mxu1  ;;  %v1889_v13 = vmul.f32 %v6721_v37, %v7954_v23 }
 0x3e8   : > { %v6505_v7 = vadd.f32 %v1777_v28, %v9614_v34  ;;  %v6517_v45 = vadd.f32 %v1848_v38, %v7947_v54  ;;  %v1890_v28 = vmul.f32 %v6725_v63, %v7956_v58  ;;  %v9618_v63 = vld [vmem:[#allocation105_spill] sm:$0xff] }
 0x3e9   : > { %6726 = vtanh.f32 %v6504_v20  ;;  %v4258_v59 = vmul.f32 -1.442695, %v6516_v41 }
 0x3ea   : > { %6728 = vtanh.f32 %v6505_v7  ;;  %v4259_v33 = vmul.f32 -1.442695, %v6517_v45 }
 0x3eb   : > { %6730 = vpow2.f32 %v4258_v59 }
 0x3ec   : > { %6732 = vpow2.f32 %v4259_v33 }
 0x3f3   : > { %v6727_v0 = vpop.eup %6726 }
 0x3f4   : > { %v6729_v53 = vpop.eup %6728  ;;  %v1891_v27 = vmul.f32 %v6727_v0, %v6719_v29  ;;  %v9619_v0 = vld [vmem:[#allocation106_spill] sm:$0xff] }
 0x3f5   : > { %v6731_v6 = vpop.eup %6730  ;;  %v1892_v34 = vmul.f32 %v6729_v53, %v6723_v50  ;;  %v9617_v50 = vld [vmem:[#allocation104_spill] sm:$0xff]  ;;  %v9620_v53 = vld [vmem:[#allocation107_spill] sm:$0xff] }
 0x3f6   : > { %v6733_v38 = vpop.eup %6732  ;;  %v8104_v20 = vadd.f32 %v1891_v27, %v1889_v13  ;;  %v1883_v41 = vadd.f32 1.0, %v6731_v6  ;;  %v9615_v27 = vld [vmem:[#allocation102_spill] sm:$0xff]  ;;  %v9621_v13 = vld [vmem:[#allocation108_spill] sm:$0xff]  ;;  %v9622_v6 = vld [vmem:[#allocation109_spill] sm:$0xff] }
 0x3f7   : > { %v8106_v45 = vadd.f32 %v1892_v34, %v1890_v28  ;;  %v1884_v7 = vadd.f32 1.0, %v6733_v38  ;;  %v9616_v34 = vld [vmem:[#allocation103_spill] sm:$0xff]  ;;  %v9623_v28 = vld [vmem:[#allocation110_spill] sm:$0xff] }
 0x3f8   : > { %6734 = vtanh.f32 %v8104_v20  ;;  %v9624_v38 = vld [vmem:[#allocation111_spill] sm:$0xff] }
 0x3f9   : > { %6736 = vrcp.f32 %v1883_v41  ;;  %v9625_v41 = vld [vmem:[#allocation112_spill] sm:$0xff] }
 0x3fa   : > { %6738 = vtanh.f32 %v8106_v45 }
 0x3fb   : > { %6740 = vrcp.f32 %v1884_v7  ;;  %v9626_v7 = vld [vmem:[#allocation113_spill] sm:$0xff] }
 0x402   : > { %v6735_v59 = vpop.eup %6734 }
 0x403   : > { %v6737_v23 = vpop.eup %6736 }
 0x404   : > { %v6739_v33 = vpop.eup %6738  ;;  %v8110_v58 = vmul.f32 %v6737_v23, %v6735_v59  ;;  %v9627_v59 = vld [vmem:[#allocation114_spill] sm:$0xff]  ;;  %v9628_v23 = vld [vmem:[#allocation115_spill] sm:$0xff] }
 0x405   : > { %v6741_v29 = vpop.eup %6740 }
 0x406   : > { %v1898_v37 = vmul.f32 %v6741_v29, %v6739_v33  ;;  %v9629_v33 = vld [vmem:[#allocation116_spill] sm:$0xff]  ;;  %v9630_v29 = vld [vmem:[#allocation117_spill] sm:$0xff] }
 0x408   : > { %1900 = vst [vmem:[#allocation3 + $0x8] sm:$0xff] %v1898_v37  ;;  %1976 = vmatprep.mubr.f32.mxu0 %v1898_v37  ;;  %2047 = vmatprep.mubr.f32.mxu1 %v1898_v37 }
 0x409   : > { %1977 = vmatmul.mubr.f32.vlgmr.msra.gmra.mrb[6].mxu0 %v8110_v58  ;;  %2048 = vmatmul.mubr.f32.vlgmr.msra.gmra.mrb[6].mxu1 %v8110_v58 }
 0x40a   : > { %5041 = vmatpush1.bf16.msra.mxu0 %v9523_v46  ;;  %5105 = vmatpush1.bf16.msra.mxu1 %v9524_v5 }
 0x40b   : > { %2118 = vmatprep.mubr.f32.mxu0 %v1898_v37  ;;  %2189 = vmatprep.mubr.f32.mxu1 %v1898_v37  ;;  %v9631_v37 = vld [vmem:[#allocation118_spill] sm:$0xff] }
 0x40c   : > { %5043 = vmatprep.subr.bf16.mxu0 %v9525_v57  ;;  %5107 = vmatprep.subr.bf16.mxu1 %v9526_v15 }
 0x40e   : > { %5045 = vmatpush1.bf16.msra.mxu0 %v9527_v51  ;;  %5109 = vmatpush1.bf16.msra.mxu1 %v9528_v32 }
 0x40f   : > { %5047 = vmatprep.subr.bf16.mxu0 %v9615_v27  ;;  %5111 = vmatprep.subr.bf16.mxu1 %v9616_v34 }
 0x412   : > { %5049 = vmatpush1.bf16.msra.mxu0 %v9617_v50  ;;  %5113 = vmatpush1.bf16.msra.mxu1 %v9618_v63 }
 0x413   : > { %5051 = vmatprep.subr.bf16.mxu0 %v9619_v0  ;;  %5115 = vmatprep.subr.bf16.mxu1 %v9620_v53 }
 0x416   : > { %5053 = vmatpush1.bf16.msra.mxu0 %v9621_v13  ;;  %5117 = vmatpush1.bf16.msra.mxu1 %v9622_v6  ;;  %v9632_v13 = vld [vmem:[#allocation119_spill] sm:$0xff]  ;;  %v9633_v6 = vld [vmem:[#allocation120_spill] sm:$0xff] }
 0x417   : > { %5055 = vmatprep.subr.bf16.mxu0 %v9623_v28  ;;  %5119 = vmatprep.subr.bf16.mxu1 %v9624_v38  ;;  %v9634_v28 = vld [vmem:[#allocation121_spill] sm:$0xff]  ;;  %v9635_v38 = vld [vmem:[#allocation122_spill] sm:$0xff] }
 0x41a   : > { %5057 = vmatpush1.bf16.msra.mxu0 %v9625_v41  ;;  %5121 = vmatpush1.bf16.msra.mxu1 %v9626_v7  ;;  %v9636_v41 = vld [vmem:[#allocation123_spill] sm:$0xff]  ;;  %v9637_v7 = vld [vmem:[#allocation124_spill] sm:$0xff] }
 0x41b   : > { %5059 = vmatprep.subr.bf16.mxu0 %v9627_v59  ;;  %5123 = vmatprep.subr.bf16.mxu1 %v9628_v23  ;;  %v9638_v59 = vld [vmem:[#allocation125_spill] sm:$0xff]  ;;  %v9639_v23 = vld [vmem:[#allocation126_spill] sm:$0xff] }
 0x41e   : > { %5061 = vmatpush1.bf16.msra.mxu0 %v9629_v33  ;;  %5125 = vmatpush1.bf16.msra.mxu1 %v9630_v29  ;;  %v9640_v33 = vld [vmem:[#allocation127_spill] sm:$0xff]  ;;  %v9641_v29 = vld [vmem:[#allocation128_spill] sm:$0xff] }
 0x41f   : > { %5063 = vmatprep.subr.bf16.mxu0 %v9631_v37  ;;  %5127 = vmatprep.subr.bf16.mxu1 %v9632_v13  ;;  %v9642_v37 = vld [vmem:[#allocation129_spill] sm:$0xff]  ;;  %v9643_v13 = vld [vmem:[#allocation130_spill] sm:$0xff] }
 0x422   : > { %5065 = vmatpush1.bf16.msra.mxu0 %v9633_v6  ;;  %5129 = vmatpush1.bf16.msra.mxu1 %v9634_v28  ;;  %v9644_v6 = vld [vmem:[#allocation131_spill] sm:$0xff]  ;;  %v9645_v28 = vld [vmem:[#allocation132_spill] sm:$0xff] }
 0x423   : > { %5067 = vmatprep.subr.bf16.mxu0 %v9635_v38  ;;  %5131 = vmatprep.subr.bf16.mxu1 %v9636_v41  ;;  %v9646_v38 = vld [vmem:[#allocation133_spill] sm:$0xff]  ;;  %v9647_v41 = vld [vmem:[#allocation134_spill] sm:$0xff] }
 0x426   : > { %5069 = vmatpush1.bf16.msra.mxu0 %v9637_v7  ;;  %5133 = vmatpush1.bf16.msra.mxu1 %v9638_v59 }
 0x427   : > { %5071 = vmatprep.subr.bf16.mxu0 %v9639_v23  ;;  %5135 = vmatprep.subr.bf16.mxu1 %v9640_v33 }
 0x42a   : > { %5073 = vmatpush1.bf16.msra.mxu0 %v9641_v29  ;;  %5137 = vmatpush1.bf16.msra.mxu1 %v9642_v37 }
 0x42b   : > { %5075 = vmatprep.subr.bf16.mxu0 %v9643_v13  ;;  %5139 = vmatprep.subr.bf16.mxu1 %v9644_v6 }
 0x42e   : > { %5077 = vmatpush1.bf16.msra.mxu0 %v9645_v28  ;;  %5141 = vmatpush1.bf16.msra.mxu1 %v9646_v38 }
 0x42f   : > { %5079 = vmatprep.subr.bf16.mxu0 %v9647_v41  ;;  %5143 = vmatprep.subr.bf16.mxu1 %v9562_v42 }
 0x432   : > { %5081 = vmatpush1.bf16.msra.mxu0 %v9563_v47  ;;  %5145 = vmatpush1.bf16.msra.mxu1 %v9564_v43 }
 0x433   : > { %5083 = vmatprep.subr.bf16.mxu0 %v9565_v24  ;;  %5147 = vmatprep.subr.bf16.mxu1 %v9566_v61 }
 0x436   : > { %5085 = vmatpush1.bf16.msra.mxu0 %v9567_v31  ;;  %5149 = vmatpush1.bf16.msra.mxu1 %v9568_v44 }
 0x437   : > { %5087 = vmatprep.subr.bf16.mxu0 %v9569_v40  ;;  %5151 = vmatprep.subr.bf16.mxu1 %v9570_v18 }
 0x43a   : > { %5089 = vmatpush1.bf16.msra.mxu0 %v9571_v8  ;;  %5153 = vmatpush1.bf16.msra.mxu1 %v9572_v39 }
 0x43b   : > { %5091 = vmatprep.subr.bf16.mxu0 %v7819_v62  ;;  %5155 = vmatprep.subr.bf16.mxu1 %v7821_v10 }
 0x43e   : > { %5093 = vmatpush1.bf16.msra.mxu0 %v7825_v60  ;;  %5157 = vmatpush1.bf16.msra.mxu1 %v7827_v48 }
 0x43f   : > { %5095 = vmatprep.subr.bf16.mxu0 %v7831_v2  ;;  %5159 = vmatprep.subr.bf16.mxu1 %v7833_v22 }
 0x442   : > { %5097 = vmatpush1.bf16.msra.mxu0 %v7837_v30  ;;  %5161 = vmatpush1.bf16.msra.mxu1 %v7839_v1 }
 0x443   : > { %5099 = vmatprep.subr.bf16.mxu0 %v7843_v19  ;;  %5163 = vmatprep.subr.bf16.mxu1 %v7845_v35 }
 0x446   : > { %5101 = vmatpush1.bf16.msra.mxu0 %v7849_v11  ;;  %5165 = vmatpush1.bf16.msra.mxu1 %v7851_v52  ;;  %v9703_v52 = vld [vmem:[#allocation84_spill] sm:$0xff]  ;;  %v9704_v11 = vld [vmem:[#allocation83_spill] sm:$0xff] }
 0x447   : > { %5167 = vmatprep.subr.bf16.mxu0 %v7344_v55  ;;  %5231 = vmatprep.subr.bf16.mxu1 %v7346_v56  ;;  %v9648_v56 = vld [vmem:[#allocation27_spill] sm:$0xff] }
 0x449   : > { %2119 = vmatmul.mubr.f32.vlgmr.msra.gmra.mrb[22].mxu0 %v8110_v58  ;;  %2190 = vmatmul.mubr.f32.vlgmr.msra.gmra.mrb[22].mxu1 %v8110_v58  ;;  %v9649_v58 = vld [vmem:[#allocation28_spill] sm:$0xff] }
 0x44a   : > { %5169 = vmatpush1.bf16.msra.mxu0 %v7395_v3  ;;  %5233 = vmatpush1.bf16.msra.mxu1 %v7398_v4  ;;  %v9650_v3 = vld [vmem:[#allocation29_spill] sm:$0xff]  ;;  %v9651_v4 = vld [vmem:[#allocation30_spill] sm:$0xff] }
 0x44b   : > { %5171 = vmatprep.subr.bf16.mxu0 %v7438_v9  ;;  %5235 = vmatprep.subr.bf16.mxu1 %v7440_v12  ;;  %v9652_v9 = vld [vmem:[#allocation31_spill] sm:$0xff]  ;;  %v9653_v12 = vld [vmem:[#allocation32_spill] sm:$0xff] }
 0x44e   : > { %5173 = vmatpush1.bf16.msra.mxu0 %v7443_v16  ;;  %5237 = vmatpush1.bf16.msra.mxu1 %v7445_v17  ;;  %v9654_v16 = vld [vmem:[#allocation33_spill] sm:$0xff]  ;;  %v9655_v17 = vld [vmem:[#allocation34_spill] sm:$0xff] }
 0x44f   : > { %5175 = vmatprep.subr.bf16.mxu0 %v7450_v21  ;;  %5239 = vmatprep.subr.bf16.mxu1 %v7452_v25  ;;  %v9656_v21 = vld [vmem:[#allocation35_spill] sm:$0xff]  ;;  %v9657_v25 = vld [vmem:[#allocation36_spill] sm:$0xff] }
 0x452   : > { %5177 = vmatpush1.bf16.msra.mxu0 %v7454_v26  ;;  %5241 = vmatpush1.bf16.msra.mxu1 %v9648_v56  ;;  %v9658_v26 = vld [vmem:[#allocation37_spill] sm:$0xff]  ;;  %v9659_v56 = vld [vmem:[#allocation38_spill] sm:$0xff] }
 0x453   : > { %5179 = vmatprep.subr.bf16.mxu0 %v9649_v58  ;;  %5243 = vmatprep.subr.bf16.mxu1 %v9650_v3  ;;  %v9660_v58 = vld [vmem:[#allocation39_spill] sm:$0xff]  ;;  %v9661_v3 = vld [vmem:[#allocation40_spill] sm:$0xff] }
 0x456   : > { %5181 = vmatpush1.bf16.msra.mxu0 %v9651_v4  ;;  %5245 = vmatpush1.bf16.msra.mxu1 %v9652_v9  ;;  %v9662_v4 = vld [vmem:[#allocation41_spill] sm:$0xff]  ;;  %v9663_v9 = vld [vmem:[#allocation42_spill] sm:$0xff] }
 0x457   : > { %5183 = vmatprep.subr.bf16.mxu0 %v9653_v12  ;;  %5247 = vmatprep.subr.bf16.mxu1 %v9654_v16  ;;  %v9664_v12 = vld [vmem:[#allocation43_spill] sm:$0xff]  ;;  %v9665_v16 = vld [vmem:[#allocation44_spill] sm:$0xff] }
 0x45a   : > { %5185 = vmatpush1.bf16.msra.mxu0 %v9655_v17  ;;  %5249 = vmatpush1.bf16.msra.mxu1 %v9656_v21  ;;  %v9666_v17 = vld [vmem:[#allocation45_spill] sm:$0xff]  ;;  %v9667_v21 = vld [vmem:[#allocation46_spill] sm:$0xff] }
 0x45b   : > { %5187 = vmatprep.subr.bf16.mxu0 %v9657_v25  ;;  %5251 = vmatprep.subr.bf16.mxu1 %v9658_v26  ;;  %v9668_v25 = vld [vmem:[#allocation47_spill] sm:$0xff]  ;;  %v9669_v26 = vld [vmem:[#allocation48_spill] sm:$0xff] }
 0x45e   : > { %5189 = vmatpush1.bf16.msra.mxu0 %v9659_v56  ;;  %5253 = vmatpush1.bf16.msra.mxu1 %v9660_v58  ;;  %v9670_v56 = vld [vmem:[#allocation49_spill] sm:$0xff]  ;;  %v9671_v58 = vld [vmem:[#allocation50_spill] sm:$0xff] }
 0x45f   : > { %5191 = vmatprep.subr.bf16.mxu0 %v9661_v3  ;;  %5255 = vmatprep.subr.bf16.mxu1 %v9662_v4  ;;  %v9672_v3 = vld [vmem:[#allocation51_spill] sm:$0xff]  ;;  %v9673_v4 = vld [vmem:[#allocation52_spill] sm:$0xff] }
 0x462   : > { %5193 = vmatpush1.bf16.msra.mxu0 %v9663_v9  ;;  %5257 = vmatpush1.bf16.msra.mxu1 %v9664_v12  ;;  %v9674_v9 = vld [vmem:[#allocation53_spill] sm:$0xff]  ;;  %v9675_v12 = vld [vmem:[#allocation54_spill] sm:$0xff] }
 0x463   : > { %5195 = vmatprep.subr.bf16.mxu0 %v9665_v16  ;;  %5259 = vmatprep.subr.bf16.mxu1 %v9666_v17  ;;  %v9676_v16 = vld [vmem:[#allocation55_spill] sm:$0xff]  ;;  %v9677_v17 = vld [vmem:[#allocation56_spill] sm:$0xff] }
 0x466   : > { %5197 = vmatpush1.bf16.msra.mxu0 %v9667_v21  ;;  %5261 = vmatpush1.bf16.msra.mxu1 %v9668_v25  ;;  %v9678_v21 = vld [vmem:[#allocation57_spill] sm:$0xff]  ;;  %v9679_v25 = vld [vmem:[#allocation58_spill] sm:$0xff] }
 0x467   : > { %5199 = vmatprep.subr.bf16.mxu0 %v9669_v26  ;;  %5263 = vmatprep.subr.bf16.mxu1 %v9670_v56  ;;  %v9680_v26 = vld [vmem:[#allocation59_spill] sm:$0xff]  ;;  %v9681_v56 = vld [vmem:[#allocation60_spill] sm:$0xff] }
 0x46a   : > { %5201 = vmatpush1.bf16.msra.mxu0 %v9671_v58  ;;  %5265 = vmatpush1.bf16.msra.mxu1 %v9672_v3  ;;  %v9682_v58 = vld [vmem:[#allocation61_spill] sm:$0xff]  ;;  %v9683_v3 = vld [vmem:[#allocation62_spill] sm:$0xff] }
 0x46b   : > { %5203 = vmatprep.subr.bf16.mxu0 %v9673_v4  ;;  %5267 = vmatprep.subr.bf16.mxu1 %v9674_v9  ;;  %v9684_v4 = vld [vmem:[#allocation63_spill] sm:$0xff]  ;;  %v9685_v9 = vld [vmem:[#allocation64_spill] sm:$0xff] }
 0x46e   : > { %5205 = vmatpush1.bf16.msra.mxu0 %v9675_v12  ;;  %5269 = vmatpush1.bf16.msra.mxu1 %v9676_v16  ;;  %v9686_v12 = vld [vmem:[#allocation65_spill] sm:$0xff]  ;;  %v9687_v16 = vld [vmem:[#allocation66_spill] sm:$0xff] }
 0x46f   : > { %5207 = vmatprep.subr.bf16.mxu0 %v9677_v17  ;;  %5271 = vmatprep.subr.bf16.mxu1 %v9678_v21  ;;  %v9688_v17 = vld [vmem:[#allocation67_spill] sm:$0xff]  ;;  %v9689_v21 = vld [vmem:[#allocation68_spill] sm:$0xff] }
 0x472   : > { %5209 = vmatpush1.bf16.msra.mxu0 %v9679_v25  ;;  %5273 = vmatpush1.bf16.msra.mxu1 %v9680_v26  ;;  %v9690_v25 = vld [vmem:[#allocation69_spill] sm:$0xff]  ;;  %v9691_v26 = vld [vmem:[#allocation70_spill] sm:$0xff] }
 0x473   : > { %5211 = vmatprep.subr.bf16.mxu0 %v9681_v56  ;;  %5275 = vmatprep.subr.bf16.mxu1 %v9682_v58  ;;  %v9692_v56 = vld [vmem:[#allocation71_spill] sm:$0xff]  ;;  %v9693_v58 = vld [vmem:[#allocation72_spill] sm:$0xff] }
 0x476   : > { %5213 = vmatpush1.bf16.msra.mxu0 %v9683_v3  ;;  %5277 = vmatpush1.bf16.msra.mxu1 %v9684_v4  ;;  %v9694_v3 = vld [vmem:[#allocation73_spill] sm:$0xff]  ;;  %v9695_v4 = vld [vmem:[#allocation74_spill] sm:$0xff] }
 0x477   : > { %5215 = vmatprep.subr.bf16.mxu0 %v9685_v9  ;;  %5279 = vmatprep.subr.bf16.mxu1 %v9686_v12  ;;  %v9696_v9 = vld [vmem:[#allocation75_spill] sm:$0xff]  ;;  %v9697_v12 = vld [vmem:[#allocation76_spill] sm:$0xff] }
 0x47a   : > { %5217 = vmatpush1.bf16.msra.mxu0 %v9687_v16  ;;  %5281 = vmatpush1.bf16.msra.mxu1 %v9688_v17  ;;  %v9698_v16 = vld [vmem:[#allocation77_spill] sm:$0xff]  ;;  %v9699_v17 = vld [vmem:[#allocation78_spill] sm:$0xff] }
 0x47b   : > { %5219 = vmatprep.subr.bf16.mxu0 %v9689_v21  ;;  %5283 = vmatprep.subr.bf16.mxu1 %v9690_v25  ;;  %v9700_v21 = vld [vmem:[#allocation79_spill] sm:$0xff]  ;;  %v9701_v25 = vld [vmem:[#allocation80_spill] sm:$0xff] }
 0x47e   : > { %5221 = vmatpush1.bf16.msra.mxu0 %v9691_v26  ;;  %5285 = vmatpush1.bf16.msra.mxu1 %v9692_v56  ;;  %v9702_v26 = vld [vmem:[#allocation81_spill] sm:$0xff] }
 0x47f   : > { %5223 = vmatprep.subr.bf16.mxu0 %v9693_v58  ;;  %5287 = vmatprep.subr.bf16.mxu1 %v9694_v3 }
 0x482   : > { %5225 = vmatpush1.bf16.msra.mxu0 %v9695_v4  ;;  %5289 = vmatpush1.bf16.msra.mxu1 %v9696_v9 }
 0x483   : > { %5227 = vmatprep.subr.bf16.mxu0 %v9697_v12  ;;  %5291 = vmatprep.subr.bf16.mxu1 %v9698_v16 }
 0x486   : > { %5229 = vmatpush1.bf16.msra.mxu0 %v9699_v17  ;;  %5293 = vmatpush1.bf16.msra.mxu1 %v9700_v21 }
 0x487   : > { %5295 = vmatprep.subr.bf16.mxu0 %v9701_v25  ;;  %5359 = vmatprep.subr.bf16.mxu1 %v9702_v26 }
 0x4dc   : > { %v1978_v56 = vpop.f32.mrb[6].mxu0  ;;  %v2049_v58 = vpop.f32.mrb[6].mxu1 }
 0x4dd   : > { %v1980_v55 = vpop.f32.mrb[7].mxu0  ;;  %v2051_v3 = vpop.f32.mrb[7].mxu1  ;;  %v6482_v4 = vadd.f32 %v1978_v56, %v9703_v52  ;;  %v6494_v9 = vadd.f32 %v2049_v58, %v7929_v36 }
 0x4de   : > { %v6483_v12 = vadd.f32 %v1980_v55, %v9610_v49  ;;  %v6495_v16 = vadd.f32 %v2051_v3, %v9704_v11 }
 0x4df   : > { %v4260_v35 = vmul.f32 -1.442695, %v6482_v4  ;;  %v4262_v17 = vmul.f32 -1.442695, %v6494_v9  ;;  %v9705_v9 = vld [vmem:[#allocation90_spill] sm:$0xff] }
 0x4e0   : > { %v4261_v19 = vmul.f32 -1.442695, %v6483_v12  ;;  %v4263_v21 = vmul.f32 -1.442695, %v6495_v16 }
 0x4e1   : > { %6742 = vpow2.f32 %v4260_v35 }
 0x4e2   : > { %6744 = vpow2.f32 %v4262_v17 }
 0x4e3   : > { %6746 = vpow2.f32 %v4261_v19 }
 0x4e4   : > { %6748 = vpow2.f32 %v4263_v21  ;;  %v9706_v21 = vld [vmem:[#allocation158_spill] sm:$0xff] }
 0x4eb   : > { %v6743_v26 = vpop.eup %6742 }
 0x4ec   : > { %v6745_v25 = vpop.eup %6744  ;;  %v2202_v22 = vadd.f32 1.0, %v6743_v26 }
 0x4ed   : > { %v6747_v1 = vpop.eup %6746  ;;  %v2214_v56 = vadd.f32 1.0, %v6745_v25 }
 0x4ee   : > { %v6749_v30 = vpop.eup %6748  ;;  %v2203_v52 = vadd.f32 1.0, %v6747_v1  ;;  %6750 = vrcp.f32 %v2202_v22 }
 0x4ef   : > { %v2215_v58 = vadd.f32 1.0, %v6749_v30  ;;  %6752 = vrcp.f32 %v2214_v56 }
 0x4f0   : > { %6754 = vrcp.f32 %v2203_v52 }
 0x4f1   : > { %6756 = vrcp.f32 %v2215_v58 }
 0x4f8   : > { %v6751_v22 = vpop.eup %6750 }
 0x4f9   : > { %v6753_v30 = vpop.eup %6752 }
 0x4fa   : > { %v6755_v1 = vpop.eup %6754 }
 0x4fb   : > { %v6757_v52 = vpop.eup %6756 }
 0x51c   : > { %v2120_v55 = vpop.f32.mrb[22].mxu0  ;;  %v2191_v3 = vpop.f32.mrb[22].mxu1 }
 0x51d   : > { %v6506_v4 = vadd.f32 %v2120_v55, %v9612_v14  ;;  %v6518_v12 = vadd.f32 %v2191_v3, %v9705_v9  ;;  %v2122_v16 = vpop.f32.mrb[23].mxu0  ;;  %v2193_v17 = vpop.f32.mrb[23].mxu1  ;;  %v2234_v3 = vmul.f32 %v6753_v30, %v8104_v20 }
 0x51e   : > { %v6507_v19 = vadd.f32 %v2122_v16, %v9706_v21  ;;  %v6519_v35 = vadd.f32 %v2193_v17, %v7947_v54  ;;  %v2235_v16 = vmul.f32 %v6757_v52, %v8106_v45  ;;  %v9710_v52 = vld [vmem:[#allocation111_spill] sm:$0xff] }
 0x51f   : > { %6758 = vtanh.f32 %v6506_v4  ;;  %v4264_v25 = vmul.f32 -1.442695, %v6518_v12 }
 0x520   : > { %6760 = vtanh.f32 %v6507_v19  ;;  %v4265_v26 = vmul.f32 -1.442695, %v6519_v35 }
 0x521   : > { %6762 = vpow2.f32 %v4264_v25 }
 0x522   : > { %6764 = vpow2.f32 %v4265_v26 }
 0x529   : > { %v6759_v56 = vpop.eup %6758 }
 0x52a   : > { %v6761_v55 = vpop.eup %6760  ;;  %v2236_v9 = vmul.f32 %v6759_v56, %v6751_v22  ;;  %v9711_v56 = vld [vmem:[#allocation112_spill] sm:$0xff] }
 0x52b   : > { %v6763_v58 = vpop.eup %6762  ;;  %v2237_v21 = vmul.f32 %v6761_v55, %v6755_v1  ;;  %v9709_v1 = vld [vmem:[#allocation110_spill] sm:$0xff]  ;;  %v9712_v55 = vld [vmem:[#allocation113_spill] sm:$0xff] }
 0x52c   : > { %v6765_v17 = vpop.eup %6764  ;;  %v8254_v4 = vadd.f32 %v2236_v9, %v2234_v3  ;;  %v2228_v12 = vadd.f32 1.0, %v6763_v58  ;;  %v9707_v9 = vld [vmem:[#allocation108_spill] sm:$0xff]  ;;  %v9713_v3 = vld [vmem:[#allocation114_spill] sm:$0xff]  ;;  %v9714_v58 = vld [vmem:[#allocation115_spill] sm:$0xff] }
 0x52d   : > { %v8256_v19 = vadd.f32 %v2237_v21, %v2235_v16  ;;  %v2229_v35 = vadd.f32 1.0, %v6765_v17  ;;  %v9708_v21 = vld [vmem:[#allocation109_spill] sm:$0xff]  ;;  %v9715_v16 = vld [vmem:[#allocation116_spill] sm:$0xff] }
 0x52e   : > { %6766 = vtanh.f32 %v8254_v4  ;;  %v9716_v17 = vld [vmem:[#allocation117_spill] sm:$0xff] }
 0x52f   : > { %6768 = vrcp.f32 %v2228_v12  ;;  %v9717_v12 = vld [vmem:[#allocation118_spill] sm:$0xff] }
 0x530   : > { %6770 = vtanh.f32 %v8256_v19 }
 0x531   : > { %6772 = vrcp.f32 %v2229_v35  ;;  %v9718_v35 = vld [vmem:[#allocation119_spill] sm:$0xff] }
 0x538   : > { %v6767_v25 = vpop.eup %6766 }
 0x539   : > { %v6769_v20 = vpop.eup %6768 }
 0x53a   : > { %v6771_v26 = vpop.eup %6770  ;;  %v8260_v45 = vmul.f32 %v6769_v20, %v6767_v25  ;;  %v9719_v25 = vld [vmem:[#allocation120_spill] sm:$0xff]  ;;  %v9720_v20 = vld [vmem:[#allocation121_spill] sm:$0xff] }
 0x53b   : > { %v6773_v22 = vpop.eup %6772 }
 0x53c   : > { %v2243_v30 = vmul.f32 %v6773_v22, %v6771_v26  ;;  %v9721_v26 = vld [vmem:[#allocation122_spill] sm:$0xff]  ;;  %v9722_v22 = vld [vmem:[#allocation123_spill] sm:$0xff] }
 0x53e   : > { %2245 = vst [vmem:[#allocation3 + $0x10] sm:$0xff] %v2243_v30  ;;  %2321 = vmatprep.mubr.f32.mxu0 %v2243_v30  ;;  %2392 = vmatprep.mubr.f32.mxu1 %v2243_v30 }
 0x53f   : > { %2322 = vmatmul.mubr.f32.vlgmr.msra.gmra.mrb[8].mxu0 %v8260_v45  ;;  %2393 = vmatmul.mubr.f32.vlgmr.msra.gmra.mrb[8].mxu1 %v8260_v45 }
 0x540   : > { %5297 = vmatpush1.bf16.msra.mxu0 %v9523_v46  ;;  %5361 = vmatpush1.bf16.msra.mxu1 %v9524_v5 }
 0x541   : > { %2463 = vmatprep.mubr.f32.mxu0 %v2243_v30  ;;  %2534 = vmatprep.mubr.f32.mxu1 %v2243_v30  ;;  %v9723_v30 = vld [vmem:[#allocation151_spill] sm:$0xff] }
 0x542   : > { %5299 = vmatprep.subr.bf16.mxu0 %v9525_v57  ;;  %5363 = vmatprep.subr.bf16.mxu1 %v9526_v15 }
 0x544   : > { %5301 = vmatpush1.bf16.msra.mxu0 %v9527_v51  ;;  %5365 = vmatpush1.bf16.msra.mxu1 %v9528_v32 }
 0x545   : > { %5303 = vmatprep.subr.bf16.mxu0 %v9615_v27  ;;  %5367 = vmatprep.subr.bf16.mxu1 %v9616_v34 }
 0x548   : > { %5305 = vmatpush1.bf16.msra.mxu0 %v9617_v50  ;;  %5369 = vmatpush1.bf16.msra.mxu1 %v9618_v63 }
 0x549   : > { %5307 = vmatprep.subr.bf16.mxu0 %v9619_v0  ;;  %5371 = vmatprep.subr.bf16.mxu1 %v9620_v53 }
 0x54c   : > { %5309 = vmatpush1.bf16.msra.mxu0 %v9707_v9  ;;  %5373 = vmatpush1.bf16.msra.mxu1 %v9708_v21 }
 0x54d   : > { %5311 = vmatprep.subr.bf16.mxu0 %v9709_v1  ;;  %5375 = vmatprep.subr.bf16.mxu1 %v9710_v52 }
 0x550   : > { %5313 = vmatpush1.bf16.msra.mxu0 %v9711_v56  ;;  %5377 = vmatpush1.bf16.msra.mxu1 %v9712_v55 }
 0x551   : > { %5315 = vmatprep.subr.bf16.mxu0 %v9713_v3  ;;  %5379 = vmatprep.subr.bf16.mxu1 %v9714_v58 }
 0x554   : > { %5317 = vmatpush1.bf16.msra.mxu0 %v9715_v16  ;;  %5381 = vmatpush1.bf16.msra.mxu1 %v9716_v17 }
 0x555   : > { %5319 = vmatprep.subr.bf16.mxu0 %v9717_v12  ;;  %5383 = vmatprep.subr.bf16.mxu1 %v9718_v35 }
 0x558   : > { %5321 = vmatpush1.bf16.msra.mxu0 %v9719_v25  ;;  %5385 = vmatpush1.bf16.msra.mxu1 %v9720_v20 }
 0x559   : > { %5323 = vmatprep.subr.bf16.mxu0 %v9721_v26  ;;  %5387 = vmatprep.subr.bf16.mxu1 %v9722_v22 }
 0x55c   : > { %5325 = vmatpush1.bf16.msra.mxu0 %v9637_v7  ;;  %5389 = vmatpush1.bf16.msra.mxu1 %v9638_v59 }
 0x55d   : > { %5327 = vmatprep.subr.bf16.mxu0 %v9639_v23  ;;  %5391 = vmatprep.subr.bf16.mxu1 %v9640_v33 }
 0x560   : > { %5329 = vmatpush1.bf16.msra.mxu0 %v9641_v29  ;;  %5393 = vmatpush1.bf16.msra.mxu1 %v9642_v37 }
 0x561   : > { %5331 = vmatprep.subr.bf16.mxu0 %v9643_v13  ;;  %5395 = vmatprep.subr.bf16.mxu1 %v9644_v6 }
 0x564   : > { %5333 = vmatpush1.bf16.msra.mxu0 %v9645_v28  ;;  %5397 = vmatpush1.bf16.msra.mxu1 %v9646_v38 }
 0x565   : > { %5335 = vmatprep.subr.bf16.mxu0 %v9647_v41  ;;  %5399 = vmatprep.subr.bf16.mxu1 %v9562_v42 }
 0x568   : > { %5337 = vmatpush1.bf16.msra.mxu0 %v9563_v47  ;;  %5401 = vmatpush1.bf16.msra.mxu1 %v9564_v43 }
 0x569   : > { %5339 = vmatprep.subr.bf16.mxu0 %v9565_v24  ;;  %5403 = vmatprep.subr.bf16.mxu1 %v9566_v61 }
 0x56c   : > { %5341 = vmatpush1.bf16.msra.mxu0 %v9567_v31  ;;  %5405 = vmatpush1.bf16.msra.mxu1 %v9568_v44  ;;  %v9724_v44 = vld [vmem:[#allocation152_spill] sm:$0xff] }
 0x56d   : > { %5343 = vmatprep.subr.bf16.mxu0 %v9569_v40  ;;  %5407 = vmatprep.subr.bf16.mxu1 %v9570_v18  ;;  %v9725_v40 = vld [vmem:[#allocation153_spill] sm:$0xff]  ;;  %v9726_v18 = vld [vmem:[#allocation154_spill] sm:$0xff]  ;;  %v9796_v31 = vld [vmem:[#allocation84_spill] sm:$0xff] }
 0x570   : > { %5345 = vmatpush1.bf16.msra.mxu0 %v9571_v8  ;;  %5409 = vmatpush1.bf16.msra.mxu1 %v9572_v39  ;;  %v9727_v8 = vld [vmem:[#allocation155_spill] sm:$0xff]  ;;  %v9728_v39 = vld [vmem:[#allocation156_spill] sm:$0xff] }
 0x571   : > { %5347 = vmatprep.subr.bf16.mxu0 %v7819_v62  ;;  %5411 = vmatprep.subr.bf16.mxu1 %v7821_v10  ;;  %v9729_v62 = vld [vmem:[#allocation157_spill] sm:$0xff]  ;;  %v9730_v10 = vld [vmem:[#allocation16_spill] sm:$0xff] }
 0x574   : > { %5349 = vmatpush1.bf16.msra.mxu0 %v7825_v60  ;;  %5413 = vmatpush1.bf16.msra.mxu1 %v7827_v48  ;;  %v9731_v60 = vld [vmem:[#allocation17_spill] sm:$0xff] }
 0x575   : > { %5351 = vmatprep.subr.bf16.mxu0 %v7831_v2  ;;  %5415 = vmatprep.subr.bf16.mxu1 %v9723_v30  ;;  %v9732_v30 = vld [vmem:[#allocation18_spill] sm:$0xff]  ;;  %v9741_v2 = vld [vmem:[#allocation27_spill] sm:$0xff] }
 0x578   : > { %5353 = vmatpush1.bf16.msra.mxu0 %v9724_v44  ;;  %5417 = vmatpush1.bf16.msra.mxu1 %v9725_v40  ;;  %v9733_v44 = vld [vmem:[#allocation19_spill] sm:$0xff]  ;;  %v9734_v40 = vld [vmem:[#allocation20_spill] sm:$0xff] }
 0x579   : > { %5355 = vmatprep.subr.bf16.mxu0 %v9726_v18  ;;  %5419 = vmatprep.subr.bf16.mxu1 %v9727_v8  ;;  %v9735_v18 = vld [vmem:[#allocation21_spill] sm:$0xff]  ;;  %v9736_v8 = vld [vmem:[#allocation22_spill] sm:$0xff] }
 0x57c   : > { %5357 = vmatpush1.bf16.msra.mxu0 %v9728_v39  ;;  %5421 = vmatpush1.bf16.msra.mxu1 %v9729_v62  ;;  %v9737_v39 = vld [vmem:[#allocation23_spill] sm:$0xff]  ;;  %v9738_v62 = vld [vmem:[#allocation24_spill] sm:$0xff] }
 0x57d   : > { %5423 = vmatprep.subr.bf16.mxu0 %v9730_v10  ;;  %5487 = vmatprep.subr.bf16.mxu1 %v9731_v60  ;;  %v9739_v10 = vld [vmem:[#allocation25_spill] sm:$0xff]  ;;  %v9740_v60 = vld [vmem:[#allocation26_spill] sm:$0xff] }
 0x57f   : > { %2464 = vmatmul.mubr.f32.vlgmr.msra.gmra.mrb[24].mxu0 %v8260_v45  ;;  %2535 = vmatmul.mubr.f32.vlgmr.msra.gmra.mrb[24].mxu1 %v8260_v45  ;;  %v9742_v45 = vld [vmem:[#allocation28_spill] sm:$0xff] }
 0x580   : > { %5425 = vmatpush1.bf16.msra.mxu0 %v9732_v30  ;;  %5489 = vmatpush1.bf16.msra.mxu1 %v9733_v44  ;;  %v9743_v30 = vld [vmem:[#allocation29_spill] sm:$0xff]  ;;  %v9744_v44 = vld [vmem:[#allocation30_spill] sm:$0xff] }
 0x581   : > { %5427 = vmatprep.subr.bf16.mxu0 %v9734_v40  ;;  %5491 = vmatprep.subr.bf16.mxu1 %v9735_v18  ;;  %v9745_v40 = vld [vmem:[#allocation31_spill] sm:$0xff]  ;;  %v9746_v18 = vld [vmem:[#allocation32_spill] sm:$0xff] }
 0x584   : > { %5429 = vmatpush1.bf16.msra.mxu0 %v9736_v8  ;;  %5493 = vmatpush1.bf16.msra.mxu1 %v9737_v39  ;;  %v9747_v8 = vld [vmem:[#allocation33_spill] sm:$0xff]  ;;  %v9748_v39 = vld [vmem:[#allocation34_spill] sm:$0xff] }
 0x585   : > { %5431 = vmatprep.subr.bf16.mxu0 %v9738_v62  ;;  %5495 = vmatprep.subr.bf16.mxu1 %v9739_v10  ;;  %v9749_v62 = vld [vmem:[#allocation35_spill] sm:$0xff]  ;;  %v9750_v10 = vld [vmem:[#allocation36_spill] sm:$0xff] }
 0x588   : > { %5433 = vmatpush1.bf16.msra.mxu0 %v9740_v60  ;;  %5497 = vmatpush1.bf16.msra.mxu1 %v9741_v2  ;;  %v9751_v60 = vld [vmem:[#allocation37_spill] sm:$0xff]  ;;  %v9752_v2 = vld [vmem:[#allocation38_spill] sm:$0xff] }
 0x589   : > { %5435 = vmatprep.subr.bf16.mxu0 %v9742_v45  ;;  %5499 = vmatprep.subr.bf16.mxu1 %v9743_v30  ;;  %v9753_v45 = vld [vmem:[#allocation39_spill] sm:$0xff]  ;;  %v9754_v30 = vld [vmem:[#allocation40_spill] sm:$0xff] }
 0x58c   : > { %5437 = vmatpush1.bf16.msra.mxu0 %v9744_v44  ;;  %5501 = vmatpush1.bf16.msra.mxu1 %v9745_v40  ;;  %v9755_v44 = vld [vmem:[#allocation41_spill] sm:$0xff]  ;;  %v9756_v40 = vld [vmem:[#allocation42_spill] sm:$0xff] }
 0x58d   : > { %5439 = vmatprep.subr.bf16.mxu0 %v9746_v18  ;;  %5503 = vmatprep.subr.bf16.mxu1 %v9747_v8  ;;  %v9757_v18 = vld [vmem:[#allocation43_spill] sm:$0xff]  ;;  %v9758_v8 = vld [vmem:[#allocation44_spill] sm:$0xff] }
 0x590   : > { %5441 = vmatpush1.bf16.msra.mxu0 %v9748_v39  ;;  %5505 = vmatpush1.bf16.msra.mxu1 %v9749_v62  ;;  %v9759_v39 = vld [vmem:[#allocation45_spill] sm:$0xff]  ;;  %v9760_v62 = vld [vmem:[#allocation46_spill] sm:$0xff] }
 0x591   : > { %5443 = vmatprep.subr.bf16.mxu0 %v9750_v10  ;;  %5507 = vmatprep.subr.bf16.mxu1 %v9751_v60  ;;  %v9761_v10 = vld [vmem:[#allocation47_spill] sm:$0xff]  ;;  %v9762_v60 = vld [vmem:[#allocation48_spill] sm:$0xff] }
 0x594   : > { %5445 = vmatpush1.bf16.msra.mxu0 %v9752_v2  ;;  %5509 = vmatpush1.bf16.msra.mxu1 %v9753_v45  ;;  %v9763_v2 = vld [vmem:[#allocation49_spill] sm:$0xff]  ;;  %v9764_v45 = vld [vmem:[#allocation50_spill] sm:$0xff] }
 0x595   : > { %5447 = vmatprep.subr.bf16.mxu0 %v9754_v30  ;;  %5511 = vmatprep.subr.bf16.mxu1 %v9755_v44  ;;  %v9765_v30 = vld [vmem:[#allocation51_spill] sm:$0xff]  ;;  %v9766_v44 = vld [vmem:[#allocation52_spill] sm:$0xff] }
 0x598   : > { %5449 = vmatpush1.bf16.msra.mxu0 %v9756_v40  ;;  %5513 = vmatpush1.bf16.msra.mxu1 %v9757_v18  ;;  %v9767_v40 = vld [vmem:[#allocation53_spill] sm:$0xff]  ;;  %v9768_v18 = vld [vmem:[#allocation54_spill] sm:$0xff] }
 0x599   : > { %5451 = vmatprep.subr.bf16.mxu0 %v9758_v8  ;;  %5515 = vmatprep.subr.bf16.mxu1 %v9759_v39  ;;  %v9769_v8 = vld [vmem:[#allocation55_spill] sm:$0xff]  ;;  %v9770_v39 = vld [vmem:[#allocation56_spill] sm:$0xff] }
 0x59c   : > { %5453 = vmatpush1.bf16.msra.mxu0 %v9760_v62  ;;  %5517 = vmatpush1.bf16.msra.mxu1 %v9761_v10  ;;  %v9771_v62 = vld [vmem:[#allocation57_spill] sm:$0xff]  ;;  %v9772_v10 = vld [vmem:[#allocation58_spill] sm:$0xff] }
 0x59d   : > { %5455 = vmatprep.subr.bf16.mxu0 %v9762_v60  ;;  %5519 = vmatprep.subr.bf16.mxu1 %v9763_v2  ;;  %v9773_v60 = vld [vmem:[#allocation59_spill] sm:$0xff]  ;;  %v9774_v2 = vld [vmem:[#allocation60_spill] sm:$0xff] }
 0x5a0   : > { %5457 = vmatpush1.bf16.msra.mxu0 %v9764_v45  ;;  %5521 = vmatpush1.bf16.msra.mxu1 %v9765_v30  ;;  %v9775_v45 = vld [vmem:[#allocation61_spill] sm:$0xff]  ;;  %v9776_v30 = vld [vmem:[#allocation62_spill] sm:$0xff] }
 0x5a1   : > { %5459 = vmatprep.subr.bf16.mxu0 %v9766_v44  ;;  %5523 = vmatprep.subr.bf16.mxu1 %v9767_v40  ;;  %v9777_v44 = vld [vmem:[#allocation63_spill] sm:$0xff]  ;;  %v9778_v40 = vld [vmem:[#allocation64_spill] sm:$0xff] }
 0x5a4   : > { %5461 = vmatpush1.bf16.msra.mxu0 %v9768_v18  ;;  %5525 = vmatpush1.bf16.msra.mxu1 %v9769_v8  ;;  %v9779_v18 = vld [vmem:[#allocation65_spill] sm:$0xff]  ;;  %v9780_v8 = vld [vmem:[#allocation66_spill] sm:$0xff] }
 0x5a5   : > { %5463 = vmatprep.subr.bf16.mxu0 %v9770_v39  ;;  %5527 = vmatprep.subr.bf16.mxu1 %v9771_v62  ;;  %v9781_v39 = vld [vmem:[#allocation67_spill] sm:$0xff]  ;;  %v9782_v62 = vld [vmem:[#allocation68_spill] sm:$0xff] }
 0x5a8   : > { %5465 = vmatpush1.bf16.msra.mxu0 %v9772_v10  ;;  %5529 = vmatpush1.bf16.msra.mxu1 %v9773_v60  ;;  %v9783_v10 = vld [vmem:[#allocation69_spill] sm:$0xff]  ;;  %v9784_v60 = vld [vmem:[#allocation70_spill] sm:$0xff] }
 0x5a9   : > { %5467 = vmatprep.subr.bf16.mxu0 %v9774_v2  ;;  %5531 = vmatprep.subr.bf16.mxu1 %v9775_v45  ;;  %v9785_v2 = vld [vmem:[#allocation71_spill] sm:$0xff]  ;;  %v9786_v45 = vld [vmem:[#allocation72_spill] sm:$0xff] }
 0x5ac   : > { %5469 = vmatpush1.bf16.msra.mxu0 %v9776_v30  ;;  %5533 = vmatpush1.bf16.msra.mxu1 %v9777_v44  ;;  %v9787_v30 = vld [vmem:[#allocation73_spill] sm:$0xff]  ;;  %v9788_v44 = vld [vmem:[#allocation74_spill] sm:$0xff] }
 0x5ad   : > { %5471 = vmatprep.subr.bf16.mxu0 %v9778_v40  ;;  %5535 = vmatprep.subr.bf16.mxu1 %v9779_v18  ;;  %v9789_v40 = vld [vmem:[#allocation75_spill] sm:$0xff]  ;;  %v9790_v18 = vld [vmem:[#allocation76_spill] sm:$0xff] }
 0x5b0   : > { %5473 = vmatpush1.bf16.msra.mxu0 %v9780_v8  ;;  %5537 = vmatpush1.bf16.msra.mxu1 %v9781_v39  ;;  %v9791_v8 = vld [vmem:[#allocation77_spill] sm:$0xff]  ;;  %v9792_v39 = vld [vmem:[#allocation78_spill] sm:$0xff] }
 0x5b1   : > { %5475 = vmatprep.subr.bf16.mxu0 %v9782_v62  ;;  %5539 = vmatprep.subr.bf16.mxu1 %v9783_v10  ;;  %v9793_v62 = vld [vmem:[#allocation79_spill] sm:$0xff]  ;;  %v9794_v10 = vld [vmem:[#allocation80_spill] sm:$0xff] }
 0x5b4   : > { %5477 = vmatpush1.bf16.msra.mxu0 %v9784_v60  ;;  %5541 = vmatpush1.bf16.msra.mxu1 %v9785_v2  ;;  %v9795_v60 = vld [vmem:[#allocation81_spill] sm:$0xff] }
 0x5b5   : > { %5479 = vmatprep.subr.bf16.mxu0 %v9786_v45  ;;  %5543 = vmatprep.subr.bf16.mxu1 %v9787_v30 }
 0x5b8   : > { %5481 = vmatpush1.bf16.msra.mxu0 %v9788_v44  ;;  %5545 = vmatpush1.bf16.msra.mxu1 %v9789_v40 }
 0x5b9   : > { %5483 = vmatprep.subr.bf16.mxu0 %v9790_v18  ;;  %5547 = vmatprep.subr.bf16.mxu1 %v9791_v8 }
 0x5bc   : > { %5485 = vmatpush1.bf16.msra.mxu0 %v9792_v39  ;;  %5549 = vmatpush1.bf16.msra.mxu1 %v9793_v62 }
 0x5bd   : > { %5551 = vmatprep.subr.bf16.mxu0 %v9794_v10  ;;  %5615 = vmatprep.subr.bf16.mxu1 %v9795_v60 }
 0x612   : > { %v2323_v2 = vpop.f32.mrb[8].mxu0  ;;  %v2394_v45 = vpop.f32.mrb[8].mxu1 }
 0x613   : > { %v2325_v48 = vpop.f32.mrb[9].mxu0  ;;  %v2396_v30 = vpop.f32.mrb[9].mxu1  ;;  %v6484_v44 = vadd.f32 %v2323_v2, %v9796_v31  ;;  %v6496_v40 = vadd.f32 %v2394_v45, %v7929_v36 }
 0x614   : > { %v6485_v18 = vadd.f32 %v2325_v48, %v9610_v49  ;;  %v6497_v8 = vadd.f32 %v2396_v30, %v9704_v11 }
 0x615   : > { %v4266_v61 = vmul.f32 -1.442695, %v6484_v44  ;;  %v4268_v39 = vmul.f32 -1.442695, %v6496_v40  ;;  %v9797_v40 = vld [vmem:[#allocation90_spill] sm:$0xff] }
 0x616   : > { %v4267_v24 = vmul.f32 -1.442695, %v6485_v18  ;;  %v4269_v62 = vmul.f32 -1.442695, %v6497_v8 }
 0x617   : > { %6774 = vpow2.f32 %v4266_v61 }
 0x618   : > { %6776 = vpow2.f32 %v4268_v39 }
 0x619   : > { %6778 = vpow2.f32 %v4267_v24 }
 0x61a   : > { %6780 = vpow2.f32 %v4269_v62  ;;  %v9798_v62 = vld [vmem:[#allocation158_spill] sm:$0xff] }
 0x621   : > { %v6775_v60 = vpop.eup %6774 }
 0x622   : > { %v6777_v10 = vpop.eup %6776  ;;  %v2547_v42 = vadd.f32 1.0, %v6775_v60 }
 0x623   : > { %v6779_v43 = vpop.eup %6778  ;;  %v2559_v2 = vadd.f32 1.0, %v6777_v10 }
 0x624   : > { %v6781_v47 = vpop.eup %6780  ;;  %v2548_v31 = vadd.f32 1.0, %v6779_v43  ;;  %6782 = vrcp.f32 %v2547_v42 }
 0x625   : > { %v2560_v45 = vadd.f32 1.0, %v6781_v47  ;;  %6784 = vrcp.f32 %v2559_v2 }
 0x626   : > { %6786 = vrcp.f32 %v2548_v31 }
 0x627   : > { %6788 = vrcp.f32 %v2560_v45 }
 0x62e   : > { %v6783_v42 = vpop.eup %6782 }
 0x62f   : > { %v6785_v47 = vpop.eup %6784 }
 0x630   : > { %v6787_v43 = vpop.eup %6786 }
 0x631   : > { %v6789_v31 = vpop.eup %6788 }
 0x652   : > { %v2465_v48 = vpop.f32.mrb[24].mxu0  ;;  %v2536_v30 = vpop.f32.mrb[24].mxu1 }
 0x653   : > { %v6508_v44 = vadd.f32 %v2465_v48, %v9612_v14  ;;  %v6520_v61 = vadd.f32 %v2536_v30, %v9797_v40  ;;  %v2467_v18 = vpop.f32.mrb[25].mxu0  ;;  %v2538_v24 = vpop.f32.mrb[25].mxu1  ;;  %v2579_v30 = vmul.f32 %v6785_v47, %v8254_v4 }
 0x654   : > { %v6509_v8 = vadd.f32 %v2467_v18, %v9798_v62  ;;  %v6521_v39 = vadd.f32 %v2538_v24, %v7947_v54  ;;  %v2580_v18 = vmul.f32 %v6789_v31, %v8256_v19  ;;  %v9802_v31 = vld [vmem:[#allocation138_spill] sm:$0xff] }
 0x655   : > { %6790 = vtanh.f32 %v6508_v44  ;;  %v4270_v10 = vmul.f32 -1.442695, %v6520_v61 }
 0x656   : > { %6792 = vtanh.f32 %v6509_v8  ;;  %v4271_v60 = vmul.f32 -1.442695, %v6521_v39 }
 0x657   : > { %6794 = vpow2.f32 %v4270_v10 }
 0x658   : > { %6796 = vpow2.f32 %v4271_v60 }
 0x65f   : > { %v6791_v2 = vpop.eup %6790 }
 0x660   : > { %v6793_v48 = vpop.eup %6792  ;;  %v2581_v40 = vmul.f32 %v6791_v2, %v6783_v42  ;;  %v9803_v2 = vld [vmem:[#allocation139_spill] sm:$0xff] }
 0x661   : > { %v6795_v45 = vpop.eup %6794  ;;  %v2582_v62 = vmul.f32 %v6793_v48, %v6787_v43  ;;  %v9801_v43 = vld [vmem:[#allocation137_spill] sm:$0xff]  ;;  %v9804_v48 = vld [vmem:[#allocation140_spill] sm:$0xff] }
 0x662   : > { %v6797_v24 = vpop.eup %6796  ;;  %v8404_v44 = vadd.f32 %v2581_v40, %v2579_v30  ;;  %v2573_v61 = vadd.f32 1.0, %v6795_v45  ;;  %v9799_v40 = vld [vmem:[#allocation135_spill] sm:$0xff]  ;;  %v9805_v30 = vld [vmem:[#allocation141_spill] sm:$0xff]  ;;  %v9806_v45 = vld [vmem:[#allocation142_spill] sm:$0xff] }
 0x663   : > { %v8406_v8 = vadd.f32 %v2582_v62, %v2580_v18  ;;  %v2574_v39 = vadd.f32 1.0, %v6797_v24  ;;  %v9800_v62 = vld [vmem:[#allocation136_spill] sm:$0xff]  ;;  %v9807_v18 = vld [vmem:[#allocation143_spill] sm:$0xff] }
 0x664   : > { %6798 = vtanh.f32 %v8404_v44  ;;  %v9808_v24 = vld [vmem:[#allocation144_spill] sm:$0xff] }
 0x665   : > { %6800 = vrcp.f32 %v2573_v61  ;;  %v9809_v61 = vld [vmem:[#allocation145_spill] sm:$0xff] }
 0x666   : > { %6802 = vtanh.f32 %v8406_v8 }
 0x667   : > { %6804 = vrcp.f32 %v2574_v39  ;;  %v9810_v39 = vld [vmem:[#allocation146_spill] sm:$0xff] }
 0x66e   : > { %v6799_v10 = vpop.eup %6798 }
 0x66f   : > { %v6801_v4 = vpop.eup %6800 }
 0x670   : > { %v6803_v60 = vpop.eup %6802  ;;  %v8410_v19 = vmul.f32 %v6801_v4, %v6799_v10  ;;  %v9811_v10 = vld [vmem:[#allocation147_spill] sm:$0xff]  ;;  %v9812_v4 = vld [vmem:[#allocation148_spill] sm:$0xff] }
 0x671   : > { %v6805_v42 = vpop.eup %6804 }
 0x672   : > { %v2588_v47 = vmul.f32 %v6805_v42, %v6803_v60  ;;  %v9813_v60 = vld [vmem:[#allocation149_spill] sm:$0xff]  ;;  %v9814_v42 = vld [vmem:[#allocation150_spill] sm:$0xff] }
 0x674   : > { %2590 = vst [vmem:[#allocation3 + $0x18] sm:$0xff] %v2588_v47  ;;  %2666 = vmatprep.mubr.f32.mxu0 %v2588_v47  ;;  %2737 = vmatprep.mubr.f32.mxu1 %v2588_v47 }
 0x675   : > { %2667 = vmatmul.mubr.f32.vlgmr.msra.gmra.mrb[10].mxu0 %v8410_v19  ;;  %2738 = vmatmul.mubr.f32.vlgmr.msra.gmra.mrb[10].mxu1 %v8410_v19 }
 0x676   : > { %5553 = vmatpush1.bf16.msra.mxu0 %v9523_v46  ;;  %5617 = vmatpush1.bf16.msra.mxu1 %v9524_v5 }
 0x677   : > { %2808 = vmatprep.mubr.f32.mxu0 %v2588_v47  ;;  %2879 = vmatprep.mubr.f32.mxu1 %v2588_v47  ;;  %v9815_v47 = vld [vmem:[#allocation151_spill] sm:$0xff] }
 0x678   : > { %5555 = vmatprep.subr.bf16.mxu0 %v9525_v57  ;;  %5619 = vmatprep.subr.bf16.mxu1 %v9526_v15 }
 0x67a   : > { %5557 = vmatpush1.bf16.msra.mxu0 %v9527_v51  ;;  %5621 = vmatpush1.bf16.msra.mxu1 %v9528_v32 }
 0x67b   : > { %5559 = vmatprep.subr.bf16.mxu0 %v9615_v27  ;;  %5623 = vmatprep.subr.bf16.mxu1 %v9616_v34 }
 0x67e   : > { %5561 = vmatpush1.bf16.msra.mxu0 %v9617_v50  ;;  %5625 = vmatpush1.bf16.msra.mxu1 %v9618_v63 }
 0x67f   : > { %5563 = vmatprep.subr.bf16.mxu0 %v9619_v0  ;;  %5627 = vmatprep.subr.bf16.mxu1 %v9620_v53 }
 0x682   : > { %5565 = vmatpush1.bf16.msra.mxu0 %v9707_v9  ;;  %5629 = vmatpush1.bf16.msra.mxu1 %v9708_v21 }
 0x683   : > { %5567 = vmatprep.subr.bf16.mxu0 %v9709_v1  ;;  %5631 = vmatprep.subr.bf16.mxu1 %v9710_v52 }
 0x686   : > { %5569 = vmatpush1.bf16.msra.mxu0 %v9711_v56  ;;  %5633 = vmatpush1.bf16.msra.mxu1 %v9712_v55 }
 0x687   : > { %5571 = vmatprep.subr.bf16.mxu0 %v9713_v3  ;;  %5635 = vmatprep.subr.bf16.mxu1 %v9714_v58 }
 0x68a   : > { %5573 = vmatpush1.bf16.msra.mxu0 %v9715_v16  ;;  %5637 = vmatpush1.bf16.msra.mxu1 %v9716_v17 }
 0x68b   : > { %5575 = vmatprep.subr.bf16.mxu0 %v9717_v12  ;;  %5639 = vmatprep.subr.bf16.mxu1 %v9718_v35 }
 0x68e   : > { %5577 = vmatpush1.bf16.msra.mxu0 %v9719_v25  ;;  %5641 = vmatpush1.bf16.msra.mxu1 %v9720_v20 }
 0x68f   : > { %5579 = vmatprep.subr.bf16.mxu0 %v9721_v26  ;;  %5643 = vmatprep.subr.bf16.mxu1 %v9722_v22 }
 0x692   : > { %5581 = vmatpush1.bf16.msra.mxu0 %v9637_v7  ;;  %5645 = vmatpush1.bf16.msra.mxu1 %v9638_v59 }
 0x693   : > { %5583 = vmatprep.subr.bf16.mxu0 %v9639_v23  ;;  %5647 = vmatprep.subr.bf16.mxu1 %v9640_v33 }
 0x696   : > { %5585 = vmatpush1.bf16.msra.mxu0 %v9641_v29  ;;  %5649 = vmatpush1.bf16.msra.mxu1 %v9642_v37 }
 0x697   : > { %5587 = vmatprep.subr.bf16.mxu0 %v9643_v13  ;;  %5651 = vmatprep.subr.bf16.mxu1 %v9644_v6 }
 0x69a   : > { %5589 = vmatpush1.bf16.msra.mxu0 %v9645_v28  ;;  %5653 = vmatpush1.bf16.msra.mxu1 %v9646_v38 }
 0x69b   : > { %5591 = vmatprep.subr.bf16.mxu0 %v9647_v41  ;;  %5655 = vmatprep.subr.bf16.mxu1 %v9799_v40 }
 0x69e   : > { %5593 = vmatpush1.bf16.msra.mxu0 %v9800_v62  ;;  %5657 = vmatpush1.bf16.msra.mxu1 %v9801_v43 }
 0x69f   : > { %5595 = vmatprep.subr.bf16.mxu0 %v9802_v31  ;;  %5659 = vmatprep.subr.bf16.mxu1 %v9803_v2 }
 0x6a2   : > { %5597 = vmatpush1.bf16.msra.mxu0 %v9804_v48  ;;  %5661 = vmatpush1.bf16.msra.mxu1 %v9805_v30  ;;  %v9816_v30 = vld [vmem:[#allocation152_spill] sm:$0xff] }
 0x6a3   : > { %5599 = vmatprep.subr.bf16.mxu0 %v9806_v45  ;;  %5663 = vmatprep.subr.bf16.mxu1 %v9807_v18  ;;  %v9817_v45 = vld [vmem:[#allocation153_spill] sm:$0xff]  ;;  %v9818_v18 = vld [vmem:[#allocation154_spill] sm:$0xff]  ;;  %v9888_v48 = vld [vmem:[#allocation84_spill] sm:$0xff] }
 0x6a6   : > { %5601 = vmatpush1.bf16.msra.mxu0 %v9808_v24  ;;  %5665 = vmatpush1.bf16.msra.mxu1 %v9809_v61  ;;  %v9819_v24 = vld [vmem:[#allocation155_spill] sm:$0xff]  ;;  %v9820_v61 = vld [vmem:[#allocation156_spill] sm:$0xff] }
 0x6a7   : > { %5603 = vmatprep.subr.bf16.mxu0 %v9810_v39  ;;  %5667 = vmatprep.subr.bf16.mxu1 %v9811_v10  ;;  %v9821_v39 = vld [vmem:[#allocation157_spill] sm:$0xff]  ;;  %v9822_v10 = vld [vmem:[#allocation16_spill] sm:$0xff] }
 0x6aa   : > { %5605 = vmatpush1.bf16.msra.mxu0 %v9812_v4  ;;  %5669 = vmatpush1.bf16.msra.mxu1 %v9813_v60  ;;  %v9823_v4 = vld [vmem:[#allocation17_spill] sm:$0xff] }
 0x6ab   : > { %5607 = vmatprep.subr.bf16.mxu0 %v9814_v42  ;;  %5671 = vmatprep.subr.bf16.mxu1 %v9815_v47  ;;  %v9824_v47 = vld [vmem:[#allocation18_spill] sm:$0xff]  ;;  %v9833_v42 = vld [vmem:[#allocation27_spill] sm:$0xff] }
 0x6ae   : > { %5609 = vmatpush1.bf16.msra.mxu0 %v9816_v30  ;;  %5673 = vmatpush1.bf16.msra.mxu1 %v9817_v45  ;;  %v9825_v30 = vld [vmem:[#allocation19_spill] sm:$0xff]  ;;  %v9826_v45 = vld [vmem:[#allocation20_spill] sm:$0xff] }
 0x6af   : > { %5611 = vmatprep.subr.bf16.mxu0 %v9818_v18  ;;  %5675 = vmatprep.subr.bf16.mxu1 %v9819_v24  ;;  %v9827_v18 = vld [vmem:[#allocation21_spill] sm:$0xff]  ;;  %v9828_v24 = vld [vmem:[#allocation22_spill] sm:$0xff] }
 0x6b2   : > { %5613 = vmatpush1.bf16.msra.mxu0 %v9820_v61  ;;  %5677 = vmatpush1.bf16.msra.mxu1 %v9821_v39  ;;  %v9829_v61 = vld [vmem:[#allocation23_spill] sm:$0xff]  ;;  %v9830_v39 = vld [vmem:[#allocation24_spill] sm:$0xff] }
 0x6b3   : > { %5679 = vmatprep.subr.bf16.mxu0 %v9822_v10  ;;  %5743 = vmatprep.subr.bf16.mxu1 %v9823_v4  ;;  %v9831_v10 = vld [vmem:[#allocation25_spill] sm:$0xff]  ;;  %v9832_v4 = vld [vmem:[#allocation26_spill] sm:$0xff] }
 0x6b5   : > { %2809 = vmatmul.mubr.f32.vlgmr.msra.gmra.mrb[26].mxu0 %v8410_v19  ;;  %2880 = vmatmul.mubr.f32.vlgmr.msra.gmra.mrb[26].mxu1 %v8410_v19  ;;  %v9834_v19 = vld [vmem:[#allocation28_spill] sm:$0xff] }
 0x6b6   : > { %5681 = vmatpush1.bf16.msra.mxu0 %v9824_v47  ;;  %5745 = vmatpush1.bf16.msra.mxu1 %v9825_v30  ;;  %v9835_v47 = vld [vmem:[#allocation29_spill] sm:$0xff]  ;;  %v9836_v30 = vld [vmem:[#allocation30_spill] sm:$0xff] }
 0x6b7   : > { %5683 = vmatprep.subr.bf16.mxu0 %v9826_v45  ;;  %5747 = vmatprep.subr.bf16.mxu1 %v9827_v18  ;;  %v9837_v45 = vld [vmem:[#allocation31_spill] sm:$0xff]  ;;  %v9838_v18 = vld [vmem:[#allocation32_spill] sm:$0xff] }
 0x6ba   : > { %5685 = vmatpush1.bf16.msra.mxu0 %v9828_v24  ;;  %5749 = vmatpush1.bf16.msra.mxu1 %v9829_v61  ;;  %v9839_v24 = vld [vmem:[#allocation33_spill] sm:$0xff]  ;;  %v9840_v61 = vld [vmem:[#allocation34_spill] sm:$0xff] }
 0x6bb   : > { %5687 = vmatprep.subr.bf16.mxu0 %v9830_v39  ;;  %5751 = vmatprep.subr.bf16.mxu1 %v9831_v10  ;;  %v9841_v39 = vld [vmem:[#allocation35_spill] sm:$0xff]  ;;  %v9842_v10 = vld [vmem:[#allocation36_spill] sm:$0xff] }
 0x6be   : > { %5689 = vmatpush1.bf16.msra.mxu0 %v9832_v4  ;;  %5753 = vmatpush1.bf16.msra.mxu1 %v9833_v42  ;;  %v9843_v4 = vld [vmem:[#allocation37_spill] sm:$0xff]  ;;  %v9844_v42 = vld [vmem:[#allocation38_spill] sm:$0xff] }
 0x6bf   : > { %5691 = vmatprep.subr.bf16.mxu0 %v9834_v19  ;;  %5755 = vmatprep.subr.bf16.mxu1 %v9835_v47  ;;  %v9845_v19 = vld [vmem:[#allocation39_spill] sm:$0xff]  ;;  %v9846_v47 = vld [vmem:[#allocation40_spill] sm:$0xff] }
 0x6c2   : > { %5693 = vmatpush1.bf16.msra.mxu0 %v9836_v30  ;;  %5757 = vmatpush1.bf16.msra.mxu1 %v9837_v45  ;;  %v9847_v30 = vld [vmem:[#allocation41_spill] sm:$0xff]  ;;  %v9848_v45 = vld [vmem:[#allocation42_spill] sm:$0xff] }
 0x6c3   : > { %5695 = vmatprep.subr.bf16.mxu0 %v9838_v18  ;;  %5759 = vmatprep.subr.bf16.mxu1 %v9839_v24  ;;  %v9849_v18 = vld [vmem:[#allocation43_spill] sm:$0xff]  ;;  %v9850_v24 = vld [vmem:[#allocation44_spill] sm:$0xff] }
 0x6c6   : > { %5697 = vmatpush1.bf16.msra.mxu0 %v9840_v61  ;;  %5761 = vmatpush1.bf16.msra.mxu1 %v9841_v39  ;;  %v9851_v61 = vld [vmem:[#allocation45_spill] sm:$0xff]  ;;  %v9852_v39 = vld [vmem:[#allocation46_spill] sm:$0xff] }
 0x6c7   : > { %5699 = vmatprep.subr.bf16.mxu0 %v9842_v10  ;;  %5763 = vmatprep.subr.bf16.mxu1 %v9843_v4  ;;  %v9853_v10 = vld [vmem:[#allocation47_spill] sm:$0xff]  ;;  %v9854_v4 = vld [vmem:[#allocation48_spill] sm:$0xff] }
 0x6ca   : > { %5701 = vmatpush1.bf16.msra.mxu0 %v9844_v42  ;;  %5765 = vmatpush1.bf16.msra.mxu1 %v9845_v19  ;;  %v9855_v42 = vld [vmem:[#allocation49_spill] sm:$0xff]  ;;  %v9856_v19 = vld [vmem:[#allocation50_spill] sm:$0xff] }
 0x6cb   : > { %5703 = vmatprep.subr.bf16.mxu0 %v9846_v47  ;;  %5767 = vmatprep.subr.bf16.mxu1 %v9847_v30  ;;  %v9857_v47 = vld [vmem:[#allocation51_spill] sm:$0xff]  ;;  %v9858_v30 = vld [vmem:[#allocation52_spill] sm:$0xff] }
 0x6ce   : > { %5705 = vmatpush1.bf16.msra.mxu0 %v9848_v45  ;;  %5769 = vmatpush1.bf16.msra.mxu1 %v9849_v18  ;;  %v9859_v45 = vld [vmem:[#allocation53_spill] sm:$0xff]  ;;  %v9860_v18 = vld [vmem:[#allocation54_spill] sm:$0xff] }
 0x6cf   : > { %5707 = vmatprep.subr.bf16.mxu0 %v9850_v24  ;;  %5771 = vmatprep.subr.bf16.mxu1 %v9851_v61  ;;  %v9861_v24 = vld [vmem:[#allocation55_spill] sm:$0xff]  ;;  %v9862_v61 = vld [vmem:[#allocation56_spill] sm:$0xff] }
 0x6d2   : > { %5709 = vmatpush1.bf16.msra.mxu0 %v9852_v39  ;;  %5773 = vmatpush1.bf16.msra.mxu1 %v9853_v10  ;;  %v9863_v39 = vld [vmem:[#allocation57_spill] sm:$0xff]  ;;  %v9864_v10 = vld [vmem:[#allocation58_spill] sm:$0xff] }
 0x6d3   : > { %5711 = vmatprep.subr.bf16.mxu0 %v9854_v4  ;;  %5775 = vmatprep.subr.bf16.mxu1 %v9855_v42  ;;  %v9865_v4 = vld [vmem:[#allocation59_spill] sm:$0xff]  ;;  %v9866_v42 = vld [vmem:[#allocation60_spill] sm:$0xff] }
 0x6d6   : > { %5713 = vmatpush1.bf16.msra.mxu0 %v9856_v19  ;;  %5777 = vmatpush1.bf16.msra.mxu1 %v9857_v47  ;;  %v9867_v19 = vld [vmem:[#allocation61_spill] sm:$0xff]  ;;  %v9868_v47 = vld [vmem:[#allocation62_spill] sm:$0xff] }
 0x6d7   : > { %5715 = vmatprep.subr.bf16.mxu0 %v9858_v30  ;;  %5779 = vmatprep.subr.bf16.mxu1 %v9859_v45  ;;  %v9869_v30 = vld [vmem:[#allocation63_spill] sm:$0xff]  ;;  %v9870_v45 = vld [vmem:[#allocation64_spill] sm:$0xff] }
 0x6da   : > { %5717 = vmatpush1.bf16.msra.mxu0 %v9860_v18  ;;  %5781 = vmatpush1.bf16.msra.mxu1 %v9861_v24  ;;  %v9871_v18 = vld [vmem:[#allocation65_spill] sm:$0xff]  ;;  %v9872_v24 = vld [vmem:[#allocation66_spill] sm:$0xff] }
 0x6db   : > { %5719 = vmatprep.subr.bf16.mxu0 %v9862_v61  ;;  %5783 = vmatprep.subr.bf16.mxu1 %v9863_v39  ;;  %v9873_v61 = vld [vmem:[#allocation67_spill] sm:$0xff]  ;;  %v9874_v39 = vld [vmem:[#allocation68_spill] sm:$0xff] }
 0x6de   : > { %5721 = vmatpush1.bf16.msra.mxu0 %v9864_v10  ;;  %5785 = vmatpush1.bf16.msra.mxu1 %v9865_v4  ;;  %v9875_v10 = vld [vmem:[#allocation69_spill] sm:$0xff]  ;;  %v9876_v4 = vld [vmem:[#allocation70_spill] sm:$0xff] }
 0x6df   : > { %5723 = vmatprep.subr.bf16.mxu0 %v9866_v42  ;;  %5787 = vmatprep.subr.bf16.mxu1 %v9867_v19  ;;  %v9877_v42 = vld [vmem:[#allocation71_spill] sm:$0xff]  ;;  %v9878_v19 = vld [vmem:[#allocation72_spill] sm:$0xff] }
 0x6e2   : > { %5725 = vmatpush1.bf16.msra.mxu0 %v9868_v47  ;;  %5789 = vmatpush1.bf16.msra.mxu1 %v9869_v30  ;;  %v9879_v47 = vld [vmem:[#allocation73_spill] sm:$0xff]  ;;  %v9880_v30 = vld [vmem:[#allocation74_spill] sm:$0xff] }
 0x6e3   : > { %5727 = vmatprep.subr.bf16.mxu0 %v9870_v45  ;;  %5791 = vmatprep.subr.bf16.mxu1 %v9871_v18  ;;  %v9881_v45 = vld [vmem:[#allocation75_spill] sm:$0xff]  ;;  %v9882_v18 = vld [vmem:[#allocation76_spill] sm:$0xff] }
 0x6e6   : > { %5729 = vmatpush1.bf16.msra.mxu0 %v9872_v24  ;;  %5793 = vmatpush1.bf16.msra.mxu1 %v9873_v61  ;;  %v9883_v24 = vld [vmem:[#allocation77_spill] sm:$0xff]  ;;  %v9884_v61 = vld [vmem:[#allocation78_spill] sm:$0xff] }
 0x6e7   : > { %5731 = vmatprep.subr.bf16.mxu0 %v9874_v39  ;;  %5795 = vmatprep.subr.bf16.mxu1 %v9875_v10  ;;  %v9885_v39 = vld [vmem:[#allocation79_spill] sm:$0xff]  ;;  %v9886_v10 = vld [vmem:[#allocation80_spill] sm:$0xff] }
 0x6ea   : > { %5733 = vmatpush1.bf16.msra.mxu0 %v9876_v4  ;;  %5797 = vmatpush1.bf16.msra.mxu1 %v9877_v42  ;;  %v9887_v4 = vld [vmem:[#allocation81_spill] sm:$0xff] }
 0x6eb   : > { %5735 = vmatprep.subr.bf16.mxu0 %v9878_v19  ;;  %5799 = vmatprep.subr.bf16.mxu1 %v9879_v47 }
 0x6ee   : > { %5737 = vmatpush1.bf16.msra.mxu0 %v9880_v30  ;;  %5801 = vmatpush1.bf16.msra.mxu1 %v9881_v45 }
 0x6ef   : > { %5739 = vmatprep.subr.bf16.mxu0 %v9882_v18  ;;  %5803 = vmatprep.subr.bf16.mxu1 %v9883_v24 }
 0x6f2   : > { %5741 = vmatpush1.bf16.msra.mxu0 %v9884_v61  ;;  %5805 = vmatpush1.bf16.msra.mxu1 %v9885_v39 }
 0x6f3   : > { %5807 = vmatprep.subr.bf16.mxu0 %v9886_v10  ;;  %5871 = vmatprep.subr.bf16.mxu1 %v9887_v4 }
 0x748   : > { %v2668_v42 = vpop.f32.mrb[10].mxu0  ;;  %v2739_v19 = vpop.f32.mrb[10].mxu1 }
 0x749   : > { %v2670_v60 = vpop.f32.mrb[11].mxu0  ;;  %v2741_v47 = vpop.f32.mrb[11].mxu1  ;;  %v6486_v30 = vadd.f32 %v2668_v42, %v9888_v48  ;;  %v6498_v45 = vadd.f32 %v2739_v19, %v7929_v36 }
 0x74a   : > { %v6487_v18 = vadd.f32 %v2670_v60, %v9610_v49  ;;  %v6499_v24 = vadd.f32 %v2741_v47, %v9704_v11 }
 0x74b   : > { %v4272_v2 = vmul.f32 -1.442695, %v6486_v30  ;;  %v4274_v61 = vmul.f32 -1.442695, %v6498_v45  ;;  %v9889_v45 = vld [vmem:[#allocation90_spill] sm:$0xff] }
 0x74c   : > { %v4273_v31 = vmul.f32 -1.442695, %v6487_v18  ;;  %v4275_v39 = vmul.f32 -1.442695, %v6499_v24  ;;  %v9890_v24 = vld [vmem:[#allocation158_spill] sm:$0xff] }
 0x74d   : > { %6806 = vpow2.f32 %v4272_v2 }
 0x74e   : > { %6808 = vpow2.f32 %v4274_v61 }
 0x74f   : > { %6810 = vpow2.f32 %v4273_v31 }
 0x750   : > { %6812 = vpow2.f32 %v4275_v39 }
 0x757   : > { %v6807_v4 = vpop.eup %6806 }
 0x758   : > { %v6809_v10 = vpop.eup %6808  ;;  %v2892_v40 = vadd.f32 1.0, %v6807_v4 }
 0x759   : > { %v6811_v43 = vpop.eup %6810  ;;  %v2904_v42 = vadd.f32 1.0, %v6809_v10 }
 0x75a   : > { %v6813_v62 = vpop.eup %6812  ;;  %v2893_v48 = vadd.f32 1.0, %v6811_v43  ;;  %6814 = vrcp.f32 %v2892_v40 }
 0x75b   : > { %v2905_v19 = vadd.f32 1.0, %v6813_v62  ;;  %6816 = vrcp.f32 %v2904_v42 }
 0x75c   : > { %6818 = vrcp.f32 %v2893_v48 }
 0x75d   : > { %6820 = vrcp.f32 %v2905_v19 }
 0x764   : > { %v6815_v40 = vpop.eup %6814 }
 0x765   : > { %v6817_v43 = vpop.eup %6816 }
 0x766   : > { %v6819_v48 = vpop.eup %6818 }
 0x767   : > { %v6821_v4 = vpop.eup %6820 }
 0x788   : > { %v2810_v60 = vpop.f32.mrb[26].mxu0  ;;  %v2881_v47 = vpop.f32.mrb[26].mxu1 }
 0x789   : > { %v6510_v30 = vadd.f32 %v2810_v60, %v9612_v14  ;;  %v6522_v2 = vadd.f32 %v2881_v47, %v9889_v45  ;;  %v2812_v18 = vpop.f32.mrb[27].mxu0  ;;  %v2883_v31 = vpop.f32.mrb[27].mxu1  ;;  %v2924_v47 = vmul.f32 %v6817_v43, %v8404_v44 }
 0x78a   : > { %v6511_v61 = vadd.f32 %v2812_v18, %v9890_v24  ;;  %v6523_v39 = vadd.f32 %v2883_v31, %v7947_v54  ;;  %v2925_v18 = vmul.f32 %v6821_v4, %v8406_v8  ;;  %v9894_v4 = vld [vmem:[#allocation138_spill] sm:$0xff] }
 0x78b   : > { %6822 = vtanh.f32 %v6510_v30  ;;  %v4276_v10 = vmul.f32 -1.442695, %v6522_v2 }
 0x78c   : > { %6824 = vtanh.f32 %v6511_v61  ;;  %v4277_v62 = vmul.f32 -1.442695, %v6523_v39 }
 0x78d   : > { %6826 = vpow2.f32 %v4276_v10 }
 0x78e   : > { %6828 = vpow2.f32 %v4277_v62 }
 0x795   : > { %v6823_v42 = vpop.eup %6822 }
 0x796   : > { %v6825_v60 = vpop.eup %6824  ;;  %v2926_v45 = vmul.f32 %v6823_v42, %v6815_v40  ;;  %v9895_v42 = vld [vmem:[#allocation139_spill] sm:$0xff] }
 0x797   : > { %v6827_v19 = vpop.eup %6826  ;;  %v2927_v24 = vmul.f32 %v6825_v60, %v6819_v48  ;;  %v9893_v48 = vld [vmem:[#allocation137_spill] sm:$0xff]  ;;  %v9896_v60 = vld [vmem:[#allocation140_spill] sm:$0xff] }
 0x798   : > { %v6829_v31 = vpop.eup %6828  ;;  %v8554_v30 = vadd.f32 %v2926_v45, %v2924_v47  ;;  %v2918_v2 = vadd.f32 1.0, %v6827_v19  ;;  %v9891_v45 = vld [vmem:[#allocation135_spill] sm:$0xff]  ;;  %v9897_v47 = vld [vmem:[#allocation141_spill] sm:$0xff]  ;;  %v9898_v19 = vld [vmem:[#allocation142_spill] sm:$0xff] }
 0x799   : > { %v8556_v61 = vadd.f32 %v2927_v24, %v2925_v18  ;;  %v2919_v39 = vadd.f32 1.0, %v6829_v31  ;;  %v9892_v24 = vld [vmem:[#allocation136_spill] sm:$0xff]  ;;  %v9899_v18 = vld [vmem:[#allocation143_spill] sm:$0xff] }
 0x79a   : > { %6830 = vtanh.f32 %v8554_v30  ;;  %v9900_v31 = vld [vmem:[#allocation144_spill] sm:$0xff] }
 0x79b   : > { %6832 = vrcp.f32 %v2918_v2  ;;  %v9901_v2 = vld [vmem:[#allocation145_spill] sm:$0xff] }
 0x79c   : > { %6834 = vtanh.f32 %v8556_v61 }
 0x79d   : > { %6836 = vrcp.f32 %v2919_v39  ;;  %v9902_v39 = vld [vmem:[#allocation146_spill] sm:$0xff] }
 0x7a4   : > { %v6831_v10 = vpop.eup %6830 }
 0x7a5   : > { %v6833_v44 = vpop.eup %6832 }
 0x7a6   : > { %v6835_v62 = vpop.eup %6834  ;;  %v8560_v8 = vmul.f32 %v6833_v44, %v6831_v10  ;;  %v9903_v10 = vld [vmem:[#allocation147_spill] sm:$0xff]  ;;  %v9904_v44 = vld [vmem:[#allocation148_spill] sm:$0xff] }
 0x7a7   : > { %v6837_v40 = vpop.eup %6836 }
 0x7a8   : > { %v2933_v43 = vmul.f32 %v6837_v40, %v6835_v62  ;;  %v9905_v62 = vld [vmem:[#allocation149_spill] sm:$0xff]  ;;  %v9906_v40 = vld [vmem:[#allocation150_spill] sm:$0xff] }
 0x7aa   : > { %2935 = vst [vmem:[#allocation3 + $0x20] sm:$0xff] %v2933_v43  ;;  %3011 = vmatprep.mubr.f32.mxu0 %v2933_v43  ;;  %3082 = vmatprep.mubr.f32.mxu1 %v2933_v43 }
 0x7ab   : > { %3012 = vmatmul.mubr.f32.vlgmr.msra.gmra.mrb[12].mxu0 %v8560_v8  ;;  %3083 = vmatmul.mubr.f32.vlgmr.msra.gmra.mrb[12].mxu1 %v8560_v8 }
 0x7ac   : > { %5809 = vmatpush1.bf16.msra.mxu0 %v9523_v46  ;;  %5873 = vmatpush1.bf16.msra.mxu1 %v9524_v5 }
 0x7ad   : > { %3153 = vmatprep.mubr.f32.mxu0 %v2933_v43  ;;  %3224 = vmatprep.mubr.f32.mxu1 %v2933_v43  ;;  %v9907_v43 = vld [vmem:[#allocation151_spill] sm:$0xff] }
 0x7ae   : > { %5811 = vmatprep.subr.bf16.mxu0 %v9525_v57  ;;  %5875 = vmatprep.subr.bf16.mxu1 %v9526_v15 }
 0x7b0   : > { %5813 = vmatpush1.bf16.msra.mxu0 %v9527_v51  ;;  %5877 = vmatpush1.bf16.msra.mxu1 %v9528_v32 }
 0x7b1   : > { %5815 = vmatprep.subr.bf16.mxu0 %v9615_v27  ;;  %5879 = vmatprep.subr.bf16.mxu1 %v9616_v34 }
 0x7b4   : > { %5817 = vmatpush1.bf16.msra.mxu0 %v9617_v50  ;;  %5881 = vmatpush1.bf16.msra.mxu1 %v9618_v63 }
 0x7b5   : > { %5819 = vmatprep.subr.bf16.mxu0 %v9619_v0  ;;  %5883 = vmatprep.subr.bf16.mxu1 %v9620_v53 }
 0x7b8   : > { %5821 = vmatpush1.bf16.msra.mxu0 %v9707_v9  ;;  %5885 = vmatpush1.bf16.msra.mxu1 %v9708_v21 }
 0x7b9   : > { %5823 = vmatprep.subr.bf16.mxu0 %v9709_v1  ;;  %5887 = vmatprep.subr.bf16.mxu1 %v9710_v52 }
 0x7bc   : > { %5825 = vmatpush1.bf16.msra.mxu0 %v9711_v56  ;;  %5889 = vmatpush1.bf16.msra.mxu1 %v9712_v55 }
 0x7bd   : > { %5827 = vmatprep.subr.bf16.mxu0 %v9713_v3  ;;  %5891 = vmatprep.subr.bf16.mxu1 %v9714_v58 }
 0x7c0   : > { %5829 = vmatpush1.bf16.msra.mxu0 %v9715_v16  ;;  %5893 = vmatpush1.bf16.msra.mxu1 %v9716_v17 }
 0x7c1   : > { %5831 = vmatprep.subr.bf16.mxu0 %v9717_v12  ;;  %5895 = vmatprep.subr.bf16.mxu1 %v9718_v35 }
 0x7c4   : > { %5833 = vmatpush1.bf16.msra.mxu0 %v9719_v25  ;;  %5897 = vmatpush1.bf16.msra.mxu1 %v9720_v20 }
 0x7c5   : > { %5835 = vmatprep.subr.bf16.mxu0 %v9721_v26  ;;  %5899 = vmatprep.subr.bf16.mxu1 %v9722_v22 }
 0x7c8   : > { %5837 = vmatpush1.bf16.msra.mxu0 %v9637_v7  ;;  %5901 = vmatpush1.bf16.msra.mxu1 %v9638_v59 }
 0x7c9   : > { %5839 = vmatprep.subr.bf16.mxu0 %v9639_v23  ;;  %5903 = vmatprep.subr.bf16.mxu1 %v9640_v33 }
 0x7cc   : > { %5841 = vmatpush1.bf16.msra.mxu0 %v9641_v29  ;;  %5905 = vmatpush1.bf16.msra.mxu1 %v9642_v37 }
 0x7cd   : > { %5843 = vmatprep.subr.bf16.mxu0 %v9643_v13  ;;  %5907 = vmatprep.subr.bf16.mxu1 %v9644_v6 }
 0x7d0   : > { %5845 = vmatpush1.bf16.msra.mxu0 %v9645_v28  ;;  %5909 = vmatpush1.bf16.msra.mxu1 %v9646_v38 }
 0x7d1   : > { %5847 = vmatprep.subr.bf16.mxu0 %v9647_v41  ;;  %5911 = vmatprep.subr.bf16.mxu1 %v9891_v45 }
 0x7d4   : > { %5849 = vmatpush1.bf16.msra.mxu0 %v9892_v24  ;;  %5913 = vmatpush1.bf16.msra.mxu1 %v9893_v48 }
 0x7d5   : > { %5851 = vmatprep.subr.bf16.mxu0 %v9894_v4  ;;  %5915 = vmatprep.subr.bf16.mxu1 %v9895_v42 }
 0x7d8   : > { %5853 = vmatpush1.bf16.msra.mxu0 %v9896_v60  ;;  %5917 = vmatpush1.bf16.msra.mxu1 %v9897_v47  ;;  %v9908_v47 = vld [vmem:[#allocation152_spill] sm:$0xff] }
 0x7d9   : > { %5855 = vmatprep.subr.bf16.mxu0 %v9898_v19  ;;  %5919 = vmatprep.subr.bf16.mxu1 %v9899_v18  ;;  %v9909_v19 = vld [vmem:[#allocation153_spill] sm:$0xff]  ;;  %v9910_v18 = vld [vmem:[#allocation154_spill] sm:$0xff]  ;;  %v9980_v60 = vld [vmem:[#allocation84_spill] sm:$0xff] }
 0x7dc   : > { %5857 = vmatpush1.bf16.msra.mxu0 %v9900_v31  ;;  %5921 = vmatpush1.bf16.msra.mxu1 %v9901_v2  ;;  %v9911_v31 = vld [vmem:[#allocation155_spill] sm:$0xff]  ;;  %v9912_v2 = vld [vmem:[#allocation156_spill] sm:$0xff] }
 0x7dd   : > { %5859 = vmatprep.subr.bf16.mxu0 %v9902_v39  ;;  %5923 = vmatprep.subr.bf16.mxu1 %v9903_v10  ;;  %v9913_v39 = vld [vmem:[#allocation157_spill] sm:$0xff]  ;;  %v9914_v10 = vld [vmem:[#allocation16_spill] sm:$0xff] }
 0x7e0   : > { %5861 = vmatpush1.bf16.msra.mxu0 %v9904_v44  ;;  %5925 = vmatpush1.bf16.msra.mxu1 %v9905_v62  ;;  %v9915_v44 = vld [vmem:[#allocation17_spill] sm:$0xff] }
 0x7e1   : > { %5863 = vmatprep.subr.bf16.mxu0 %v9906_v40  ;;  %5927 = vmatprep.subr.bf16.mxu1 %v9907_v43  ;;  %v9916_v43 = vld [vmem:[#allocation18_spill] sm:$0xff]  ;;  %v9925_v40 = vld [vmem:[#allocation27_spill] sm:$0xff] }
 0x7e4   : > { %5865 = vmatpush1.bf16.msra.mxu0 %v9908_v47  ;;  %5929 = vmatpush1.bf16.msra.mxu1 %v9909_v19  ;;  %v9917_v47 = vld [vmem:[#allocation19_spill] sm:$0xff]  ;;  %v9918_v19 = vld [vmem:[#allocation20_spill] sm:$0xff] }
 0x7e5   : > { %5867 = vmatprep.subr.bf16.mxu0 %v9910_v18  ;;  %5931 = vmatprep.subr.bf16.mxu1 %v9911_v31  ;;  %v9919_v18 = vld [vmem:[#allocation21_spill] sm:$0xff]  ;;  %v9920_v31 = vld [vmem:[#allocation22_spill] sm:$0xff] }
 0x7e8   : > { %5869 = vmatpush1.bf16.msra.mxu0 %v9912_v2  ;;  %5933 = vmatpush1.bf16.msra.mxu1 %v9913_v39  ;;  %v9921_v2 = vld [vmem:[#allocation23_spill] sm:$0xff]  ;;  %v9922_v39 = vld [vmem:[#allocation24_spill] sm:$0xff] }
 0x7e9   : > { %5935 = vmatprep.subr.bf16.mxu0 %v9914_v10  ;;  %5999 = vmatprep.subr.bf16.mxu1 %v9915_v44  ;;  %v9923_v10 = vld [vmem:[#allocation25_spill] sm:$0xff]  ;;  %v9924_v44 = vld [vmem:[#allocation26_spill] sm:$0xff] }
 0x7eb   : > { %3154 = vmatmul.mubr.f32.vlgmr.msra.gmra.mrb[28].mxu0 %v8560_v8  ;;  %3225 = vmatmul.mubr.f32.vlgmr.msra.gmra.mrb[28].mxu1 %v8560_v8  ;;  %v9926_v8 = vld [vmem:[#allocation28_spill] sm:$0xff] }
 0x7ec   : > { %5937 = vmatpush1.bf16.msra.mxu0 %v9916_v43  ;;  %6001 = vmatpush1.bf16.msra.mxu1 %v9917_v47  ;;  %v9927_v43 = vld [vmem:[#allocation29_spill] sm:$0xff]  ;;  %v9928_v47 = vld [vmem:[#allocation30_spill] sm:$0xff] }
 0x7ed   : > { %5939 = vmatprep.subr.bf16.mxu0 %v9918_v19  ;;  %6003 = vmatprep.subr.bf16.mxu1 %v9919_v18  ;;  %v9929_v19 = vld [vmem:[#allocation31_spill] sm:$0xff]  ;;  %v9930_v18 = vld [vmem:[#allocation32_spill] sm:$0xff] }
 0x7f0   : > { %5941 = vmatpush1.bf16.msra.mxu0 %v9920_v31  ;;  %6005 = vmatpush1.bf16.msra.mxu1 %v9921_v2  ;;  %v9931_v31 = vld [vmem:[#allocation33_spill] sm:$0xff]  ;;  %v9932_v2 = vld [vmem:[#allocation34_spill] sm:$0xff] }
 0x7f1   : > { %5943 = vmatprep.subr.bf16.mxu0 %v9922_v39  ;;  %6007 = vmatprep.subr.bf16.mxu1 %v9923_v10  ;;  %v9933_v39 = vld [vmem:[#allocation35_spill] sm:$0xff]  ;;  %v9934_v10 = vld [vmem:[#allocation36_spill] sm:$0xff] }
 0x7f4   : > { %5945 = vmatpush1.bf16.msra.mxu0 %v9924_v44  ;;  %6009 = vmatpush1.bf16.msra.mxu1 %v9925_v40  ;;  %v9935_v44 = vld [vmem:[#allocation37_spill] sm:$0xff]  ;;  %v9936_v40 = vld [vmem:[#allocation38_spill] sm:$0xff] }
 0x7f5   : > { %5947 = vmatprep.subr.bf16.mxu0 %v9926_v8  ;;  %6011 = vmatprep.subr.bf16.mxu1 %v9927_v43  ;;  %v9937_v8 = vld [vmem:[#allocation39_spill] sm:$0xff]  ;;  %v9938_v43 = vld [vmem:[#allocation40_spill] sm:$0xff] }
 0x7f8   : > { %5949 = vmatpush1.bf16.msra.mxu0 %v9928_v47  ;;  %6013 = vmatpush1.bf16.msra.mxu1 %v9929_v19  ;;  %v9939_v47 = vld [vmem:[#allocation41_spill] sm:$0xff]  ;;  %v9940_v19 = vld [vmem:[#allocation42_spill] sm:$0xff] }
 0x7f9   : > { %5951 = vmatprep.subr.bf16.mxu0 %v9930_v18  ;;  %6015 = vmatprep.subr.bf16.mxu1 %v9931_v31  ;;  %v9941_v18 = vld [vmem:[#allocation43_spill] sm:$0xff]  ;;  %v9942_v31 = vld [vmem:[#allocation44_spill] sm:$0xff] }
 0x7fc   : > { %5953 = vmatpush1.bf16.msra.mxu0 %v9932_v2  ;;  %6017 = vmatpush1.bf16.msra.mxu1 %v9933_v39  ;;  %v9943_v2 = vld [vmem:[#allocation45_spill] sm:$0xff]  ;;  %v9944_v39 = vld [vmem:[#allocation46_spill] sm:$0xff] }
 0x7fd   : > { %5955 = vmatprep.subr.bf16.mxu0 %v9934_v10  ;;  %6019 = vmatprep.subr.bf16.mxu1 %v9935_v44  ;;  %v9945_v10 = vld [vmem:[#allocation47_spill] sm:$0xff]  ;;  %v9946_v44 = vld [vmem:[#allocation48_spill] sm:$0xff] }
 0x800   : > { %5957 = vmatpush1.bf16.msra.mxu0 %v9936_v40  ;;  %6021 = vmatpush1.bf16.msra.mxu1 %v9937_v8  ;;  %v9947_v40 = vld [vmem:[#allocation49_spill] sm:$0xff]  ;;  %v9948_v8 = vld [vmem:[#allocation50_spill] sm:$0xff] }
 0x801   : > { %5959 = vmatprep.subr.bf16.mxu0 %v9938_v43  ;;  %6023 = vmatprep.subr.bf16.mxu1 %v9939_v47  ;;  %v9949_v43 = vld [vmem:[#allocation51_spill] sm:$0xff]  ;;  %v9950_v47 = vld [vmem:[#allocation52_spill] sm:$0xff] }
 0x804   : > { %5961 = vmatpush1.bf16.msra.mxu0 %v9940_v19  ;;  %6025 = vmatpush1.bf16.msra.mxu1 %v9941_v18  ;;  %v9951_v19 = vld [vmem:[#allocation53_spill] sm:$0xff]  ;;  %v9952_v18 = vld [vmem:[#allocation54_spill] sm:$0xff] }
 0x805   : > { %5963 = vmatprep.subr.bf16.mxu0 %v9942_v31  ;;  %6027 = vmatprep.subr.bf16.mxu1 %v9943_v2  ;;  %v9953_v31 = vld [vmem:[#allocation55_spill] sm:$0xff]  ;;  %v9954_v2 = vld [vmem:[#allocation56_spill] sm:$0xff] }
 0x808   : > { %5965 = vmatpush1.bf16.msra.mxu0 %v9944_v39  ;;  %6029 = vmatpush1.bf16.msra.mxu1 %v9945_v10  ;;  %v9955_v39 = vld [vmem:[#allocation57_spill] sm:$0xff]  ;;  %v9956_v10 = vld [vmem:[#allocation58_spill] sm:$0xff] }
 0x809   : > { %5967 = vmatprep.subr.bf16.mxu0 %v9946_v44  ;;  %6031 = vmatprep.subr.bf16.mxu1 %v9947_v40  ;;  %v9957_v44 = vld [vmem:[#allocation59_spill] sm:$0xff]  ;;  %v9958_v40 = vld [vmem:[#allocation60_spill] sm:$0xff] }
 0x80c   : > { %5969 = vmatpush1.bf16.msra.mxu0 %v9948_v8  ;;  %6033 = vmatpush1.bf16.msra.mxu1 %v9949_v43  ;;  %v9959_v8 = vld [vmem:[#allocation61_spill] sm:$0xff]  ;;  %v9960_v43 = vld [vmem:[#allocation62_spill] sm:$0xff] }
 0x80d   : > { %5971 = vmatprep.subr.bf16.mxu0 %v9950_v47  ;;  %6035 = vmatprep.subr.bf16.mxu1 %v9951_v19  ;;  %v9961_v47 = vld [vmem:[#allocation63_spill] sm:$0xff]  ;;  %v9962_v19 = vld [vmem:[#allocation64_spill] sm:$0xff] }
 0x810   : > { %5973 = vmatpush1.bf16.msra.mxu0 %v9952_v18  ;;  %6037 = vmatpush1.bf16.msra.mxu1 %v9953_v31  ;;  %v9963_v18 = vld [vmem:[#allocation65_spill] sm:$0xff]  ;;  %v9964_v31 = vld [vmem:[#allocation66_spill] sm:$0xff] }
 0x811   : > { %5975 = vmatprep.subr.bf16.mxu0 %v9954_v2  ;;  %6039 = vmatprep.subr.bf16.mxu1 %v9955_v39  ;;  %v9965_v2 = vld [vmem:[#allocation67_spill] sm:$0xff]  ;;  %v9966_v39 = vld [vmem:[#allocation68_spill] sm:$0xff] }
 0x814   : > { %5977 = vmatpush1.bf16.msra.mxu0 %v9956_v10  ;;  %6041 = vmatpush1.bf16.msra.mxu1 %v9957_v44  ;;  %v9967_v10 = vld [vmem:[#allocation69_spill] sm:$0xff]  ;;  %v9968_v44 = vld [vmem:[#allocation70_spill] sm:$0xff] }
 0x815   : > { %5979 = vmatprep.subr.bf16.mxu0 %v9958_v40  ;;  %6043 = vmatprep.subr.bf16.mxu1 %v9959_v8  ;;  %v9969_v40 = vld [vmem:[#allocation71_spill] sm:$0xff]  ;;  %v9970_v8 = vld [vmem:[#allocation72_spill] sm:$0xff] }
 0x818   : > { %5981 = vmatpush1.bf16.msra.mxu0 %v9960_v43  ;;  %6045 = vmatpush1.bf16.msra.mxu1 %v9961_v47  ;;  %v9971_v43 = vld [vmem:[#allocation73_spill] sm:$0xff]  ;;  %v9972_v47 = vld [vmem:[#allocation74_spill] sm:$0xff] }
 0x819   : > { %5983 = vmatprep.subr.bf16.mxu0 %v9962_v19  ;;  %6047 = vmatprep.subr.bf16.mxu1 %v9963_v18  ;;  %v9973_v19 = vld [vmem:[#allocation75_spill] sm:$0xff]  ;;  %v9974_v18 = vld [vmem:[#allocation76_spill] sm:$0xff] }
 0x81c   : > { %5985 = vmatpush1.bf16.msra.mxu0 %v9964_v31  ;;  %6049 = vmatpush1.bf16.msra.mxu1 %v9965_v2  ;;  %v9975_v31 = vld [vmem:[#allocation77_spill] sm:$0xff]  ;;  %v9976_v2 = vld [vmem:[#allocation78_spill] sm:$0xff] }
 0x81d   : > { %5987 = vmatprep.subr.bf16.mxu0 %v9966_v39  ;;  %6051 = vmatprep.subr.bf16.mxu1 %v9967_v10  ;;  %v9977_v39 = vld [vmem:[#allocation79_spill] sm:$0xff]  ;;  %v9978_v10 = vld [vmem:[#allocation80_spill] sm:$0xff] }
 0x820   : > { %5989 = vmatpush1.bf16.msra.mxu0 %v9968_v44  ;;  %6053 = vmatpush1.bf16.msra.mxu1 %v9969_v40  ;;  %v9979_v44 = vld [vmem:[#allocation81_spill] sm:$0xff] }
 0x821   : > { %5991 = vmatprep.subr.bf16.mxu0 %v9970_v8  ;;  %6055 = vmatprep.subr.bf16.mxu1 %v9971_v43 }
 0x824   : > { %5993 = vmatpush1.bf16.msra.mxu0 %v9972_v47  ;;  %6057 = vmatpush1.bf16.msra.mxu1 %v9973_v19 }
 0x825   : > { %5995 = vmatprep.subr.bf16.mxu0 %v9974_v18  ;;  %6059 = vmatprep.subr.bf16.mxu1 %v9975_v31 }
 0x828   : > { %5997 = vmatpush1.bf16.msra.mxu0 %v9976_v2  ;;  %6061 = vmatpush1.bf16.msra.mxu1 %v9977_v39 }
 0x829   : > { %6063 = vmatprep.subr.bf16.mxu0 %v9978_v10  ;;  %6127 = vmatprep.subr.bf16.mxu1 %v9979_v44 }
 0x87e   : > { %v3013_v40 = vpop.f32.mrb[12].mxu0  ;;  %v3084_v8 = vpop.f32.mrb[12].mxu1 }
 0x87f   : > { %v3015_v62 = vpop.f32.mrb[13].mxu0  ;;  %v3086_v43 = vpop.f32.mrb[13].mxu1  ;;  %v6488_v47 = vadd.f32 %v3013_v40, %v9980_v60  ;;  %v6500_v19 = vadd.f32 %v3084_v8, %v7929_v36 }
 0x880   : > { %v6489_v18 = vadd.f32 %v3015_v62, %v9610_v49  ;;  %v6501_v31 = vadd.f32 %v3086_v43, %v9704_v11 }
 0x881   : > { %v4278_v42 = vmul.f32 -1.442695, %v6488_v47  ;;  %v4280_v2 = vmul.f32 -1.442695, %v6500_v19  ;;  %v9981_v19 = vld [vmem:[#allocation90_spill] sm:$0xff] }
 0x882   : > { %v4279_v4 = vmul.f32 -1.442695, %v6489_v18  ;;  %v4281_v39 = vmul.f32 -1.442695, %v6501_v31  ;;  %v9982_v31 = vld [vmem:[#allocation158_spill] sm:$0xff] }
 0x883   : > { %6838 = vpow2.f32 %v4278_v42 }
 0x884   : > { %6840 = vpow2.f32 %v4280_v2 }
 0x885   : > { %6842 = vpow2.f32 %v4279_v4 }
 0x886   : > { %6844 = vpow2.f32 %v4281_v39 }
 0x88d   : > { %v6839_v44 = vpop.eup %6838 }
 0x88e   : > { %v6841_v10 = vpop.eup %6840  ;;  %v3237_v45 = vadd.f32 1.0, %v6839_v44 }
 0x88f   : > { %v6843_v48 = vpop.eup %6842  ;;  %v3249_v40 = vadd.f32 1.0, %v6841_v10 }
 0x890   : > { %v6845_v24 = vpop.eup %6844  ;;  %v3238_v60 = vadd.f32 1.0, %v6843_v48  ;;  %6846 = vrcp.f32 %v3237_v45 }
 0x891   : > { %v3250_v8 = vadd.f32 1.0, %v6845_v24  ;;  %6848 = vrcp.f32 %v3249_v40 }
 0x892   : > { %6850 = vrcp.f32 %v3238_v60 }
 0x893   : > { %6852 = vrcp.f32 %v3250_v8 }
 0x89a   : > { %v6847_v45 = vpop.eup %6846 }
 0x89b   : > { %v6849_v48 = vpop.eup %6848 }
 0x89c   : > { %v6851_v60 = vpop.eup %6850 }
 0x89d   : > { %v6853_v44 = vpop.eup %6852 }
 0x8be   : > { %v3155_v62 = vpop.f32.mrb[28].mxu0  ;;  %v3226_v43 = vpop.f32.mrb[28].mxu1 }
 0x8bf   : > { %v6512_v47 = vadd.f32 %v3155_v62, %v9612_v14  ;;  %v6524_v42 = vadd.f32 %v3226_v43, %v9981_v19  ;;  %v3157_v18 = vpop.f32.mrb[29].mxu0  ;;  %v3228_v4 = vpop.f32.mrb[29].mxu1  ;;  %v3269_v43 = vmul.f32 %v6849_v48, %v8554_v30 }
 0x8c0   : > { %v6513_v2 = vadd.f32 %v3157_v18, %v9982_v31  ;;  %v6525_v39 = vadd.f32 %v3228_v4, %v7947_v54  ;;  %v3270_v18 = vmul.f32 %v6853_v44, %v8556_v61  ;;  %v9986_v44 = vld [vmem:[#allocation138_spill] sm:$0xff] }
 0x8c1   : > { %6854 = vtanh.f32 %v6512_v47  ;;  %v4282_v10 = vmul.f32 -1.442695, %v6524_v42 }
 0x8c2   : > { %6856 = vtanh.f32 %v6513_v2  ;;  %v4283_v24 = vmul.f32 -1.442695, %v6525_v39 }
 0x8c3   : > { %6858 = vpow2.f32 %v4282_v10 }
 0x8c4   : > { %6860 = vpow2.f32 %v4283_v24 }
 0x8cb   : > { %v6855_v40 = vpop.eup %6854 }
 0x8cc   : > { %v6857_v62 = vpop.eup %6856  ;;  %v3271_v19 = vmul.f32 %v6855_v40, %v6847_v45  ;;  %v9987_v40 = vld [vmem:[#allocation139_spill] sm:$0xff] }
 0x8cd   : > { %v6859_v8 = vpop.eup %6858  ;;  %v3272_v31 = vmul.f32 %v6857_v62, %v6851_v60  ;;  %v9985_v60 = vld [vmem:[#allocation137_spill] sm:$0xff]  ;;  %v9988_v62 = vld [vmem:[#allocation140_spill] sm:$0xff] }
 0x8ce   : > { %v6861_v4 = vpop.eup %6860  ;;  %v8704_v47 = vadd.f32 %v3271_v19, %v3269_v43  ;;  %v3263_v42 = vadd.f32 1.0, %v6859_v8  ;;  %v9983_v19 = vld [vmem:[#allocation135_spill] sm:$0xff]  ;;  %v9989_v43 = vld [vmem:[#allocation141_spill] sm:$0xff]  ;;  %v9990_v8 = vld [vmem:[#allocation142_spill] sm:$0xff] }
 0x8cf   : > { %v8706_v2 = vadd.f32 %v3272_v31, %v3270_v18  ;;  %v3264_v39 = vadd.f32 1.0, %v6861_v4  ;;  %v9984_v31 = vld [vmem:[#allocation136_spill] sm:$0xff]  ;;  %v9991_v18 = vld [vmem:[#allocation143_spill] sm:$0xff] }
 0x8d0   : > { %6862 = vtanh.f32 %v8704_v47  ;;  %v9992_v4 = vld [vmem:[#allocation144_spill] sm:$0xff] }
 0x8d1   : > { %6864 = vrcp.f32 %v3263_v42  ;;  %v9993_v42 = vld [vmem:[#allocation145_spill] sm:$0xff] }
 0x8d2   : > { %6866 = vtanh.f32 %v8706_v2 }
 0x8d3   : > { %6868 = vrcp.f32 %v3264_v39  ;;  %v9994_v39 = vld [vmem:[#allocation146_spill] sm:$0xff] }
 0x8da   : > { %v6863_v10 = vpop.eup %6862 }
 0x8db   : > { %v6865_v30 = vpop.eup %6864 }
 0x8dc   : > { %v6867_v24 = vpop.eup %6866  ;;  %v8710_v61 = vmul.f32 %v6865_v30, %v6863_v10  ;;  %v9995_v10 = vld [vmem:[#allocation147_spill] sm:$0xff]  ;;  %v9996_v30 = vld [vmem:[#allocation148_spill] sm:$0xff] }
 0x8dd   : > { %v6869_v45 = vpop.eup %6868 }
 0x8de   : > { %v3278_v48 = vmul.f32 %v6869_v45, %v6867_v24  ;;  %v9997_v24 = vld [vmem:[#allocation149_spill] sm:$0xff]  ;;  %v9998_v45 = vld [vmem:[#allocation150_spill] sm:$0xff] }
 0x8e0   : > { %3280 = vst [vmem:[#allocation3 + $0x28] sm:$0xff] %v3278_v48  ;;  %3356 = vmatprep.mubr.f32.mxu0 %v3278_v48  ;;  %3427 = vmatprep.mubr.f32.mxu1 %v3278_v48 }
 0x8e1   : > { %3357 = vmatmul.mubr.f32.vlgmr.msra.gmra.mrb[32].mxu0 %v8710_v61  ;;  %3428 = vmatmul.mubr.f32.vlgmr.msra.gmra.mrb[32].mxu1 %v8710_v61 }
 0x8e2   : > { %6065 = vmatpush1.bf16.msra.mxu0 %v9523_v46  ;;  %6129 = vmatpush1.bf16.msra.mxu1 %v9524_v5 }
 0x8e3   : > { %3498 = vmatprep.mubr.f32.mxu0 %v3278_v48  ;;  %3569 = vmatprep.mubr.f32.mxu1 %v3278_v48  ;;  %v9999_v48 = vld [vmem:[#allocation151_spill] sm:$0xff] }
 0x8e4   : > { %6067 = vmatprep.subr.bf16.mxu0 %v9525_v57  ;;  %6131 = vmatprep.subr.bf16.mxu1 %v9526_v15 }
 0x8e6   : > { %6069 = vmatpush1.bf16.msra.mxu0 %v9527_v51  ;;  %6133 = vmatpush1.bf16.msra.mxu1 %v9528_v32 }
 0x8e7   : > { %6071 = vmatprep.subr.bf16.mxu0 %v9615_v27  ;;  %6135 = vmatprep.subr.bf16.mxu1 %v9616_v34 }
 0x8ea   : > { %6073 = vmatpush1.bf16.msra.mxu0 %v9617_v50  ;;  %6137 = vmatpush1.bf16.msra.mxu1 %v9618_v63 }
 0x8eb   : > { %6075 = vmatprep.subr.bf16.mxu0 %v9619_v0  ;;  %6139 = vmatprep.subr.bf16.mxu1 %v9620_v53 }
 0x8ee   : > { %6077 = vmatpush1.bf16.msra.mxu0 %v9707_v9  ;;  %6141 = vmatpush1.bf16.msra.mxu1 %v9708_v21 }
 0x8ef   : > { %6079 = vmatprep.subr.bf16.mxu0 %v9709_v1  ;;  %6143 = vmatprep.subr.bf16.mxu1 %v9710_v52 }
 0x8f2   : > { %6081 = vmatpush1.bf16.msra.mxu0 %v9711_v56  ;;  %6145 = vmatpush1.bf16.msra.mxu1 %v9712_v55 }
 0x8f3   : > { %6083 = vmatprep.subr.bf16.mxu0 %v9713_v3  ;;  %6147 = vmatprep.subr.bf16.mxu1 %v9714_v58 }
 0x8f6   : > { %6085 = vmatpush1.bf16.msra.mxu0 %v9715_v16  ;;  %6149 = vmatpush1.bf16.msra.mxu1 %v9716_v17 }
 0x8f7   : > { %6087 = vmatprep.subr.bf16.mxu0 %v9717_v12  ;;  %6151 = vmatprep.subr.bf16.mxu1 %v9718_v35 }
 0x8fa   : > { %6089 = vmatpush1.bf16.msra.mxu0 %v9719_v25  ;;  %6153 = vmatpush1.bf16.msra.mxu1 %v9720_v20 }
 0x8fb   : > { %6091 = vmatprep.subr.bf16.mxu0 %v9721_v26  ;;  %6155 = vmatprep.subr.bf16.mxu1 %v9722_v22 }
 0x8fe   : > { %6093 = vmatpush1.bf16.msra.mxu0 %v9637_v7  ;;  %6157 = vmatpush1.bf16.msra.mxu1 %v9638_v59 }
 0x8ff   : > { %6095 = vmatprep.subr.bf16.mxu0 %v9639_v23  ;;  %6159 = vmatprep.subr.bf16.mxu1 %v9640_v33 }
 0x902   : > { %6097 = vmatpush1.bf16.msra.mxu0 %v9641_v29  ;;  %6161 = vmatpush1.bf16.msra.mxu1 %v9642_v37 }
 0x903   : > { %6099 = vmatprep.subr.bf16.mxu0 %v9643_v13  ;;  %6163 = vmatprep.subr.bf16.mxu1 %v9644_v6 }
 0x906   : > { %6101 = vmatpush1.bf16.msra.mxu0 %v9645_v28  ;;  %6165 = vmatpush1.bf16.msra.mxu1 %v9646_v38 }
 0x907   : > { %6103 = vmatprep.subr.bf16.mxu0 %v9647_v41  ;;  %6167 = vmatprep.subr.bf16.mxu1 %v9983_v19 }
 0x90a   : > { %6105 = vmatpush1.bf16.msra.mxu0 %v9984_v31  ;;  %6169 = vmatpush1.bf16.msra.mxu1 %v9985_v60 }
 0x90b   : > { %6107 = vmatprep.subr.bf16.mxu0 %v9986_v44  ;;  %6171 = vmatprep.subr.bf16.mxu1 %v9987_v40 }
 0x90e   : > { %6109 = vmatpush1.bf16.msra.mxu0 %v9988_v62  ;;  %6173 = vmatpush1.bf16.msra.mxu1 %v9989_v43  ;;  %v10000_v43 = vld [vmem:[#allocation152_spill] sm:$0xff] }
 0x90f   : > { %6111 = vmatprep.subr.bf16.mxu0 %v9990_v8  ;;  %6175 = vmatprep.subr.bf16.mxu1 %v9991_v18  ;;  %v10001_v8 = vld [vmem:[#allocation153_spill] sm:$0xff]  ;;  %v10002_v18 = vld [vmem:[#allocation154_spill] sm:$0xff] }
 0x912   : > { %6113 = vmatpush1.bf16.msra.mxu0 %v9992_v4  ;;  %6177 = vmatpush1.bf16.msra.mxu1 %v9993_v42  ;;  %v10003_v4 = vld [vmem:[#allocation155_spill] sm:$0xff]  ;;  %v10004_v42 = vld [vmem:[#allocation156_spill] sm:$0xff] }
 0x913   : > { %6115 = vmatprep.subr.bf16.mxu0 %v9994_v39  ;;  %6179 = vmatprep.subr.bf16.mxu1 %v9995_v10  ;;  %v10005_v39 = vld [vmem:[#allocation157_spill] sm:$0xff]  ;;  %v10006_v10 = vld [vmem:[#allocation16_spill] sm:$0xff] }
 0x916   : > { %6117 = vmatpush1.bf16.msra.mxu0 %v9996_v30  ;;  %6181 = vmatpush1.bf16.msra.mxu1 %v9997_v24  ;;  %v10007_v30 = vld [vmem:[#allocation17_spill] sm:$0xff] }
 0x917   : > { %6119 = vmatprep.subr.bf16.mxu0 %v9998_v45  ;;  %6183 = vmatprep.subr.bf16.mxu1 %v9999_v48  ;;  %v10008_v48 = vld [vmem:[#allocation18_spill] sm:$0xff]  ;;  %v10017_v45 = vld [vmem:[#allocation27_spill] sm:$0xff]  ;;  %v10074_v24 = vld [vmem:[#allocation85_spill] sm:$0xff] }
 0x91a   : > { %6121 = vmatpush1.bf16.msra.mxu0 %v10000_v43  ;;  %6185 = vmatpush1.bf16.msra.mxu1 %v10001_v8  ;;  %v10009_v43 = vld [vmem:[#allocation19_spill] sm:$0xff]  ;;  %v10010_v8 = vld [vmem:[#allocation20_spill] sm:$0xff] }
 0x91b   : > { %6123 = vmatprep.subr.bf16.mxu0 %v10002_v18  ;;  %6187 = vmatprep.subr.bf16.mxu1 %v10003_v4  ;;  %v10011_v18 = vld [vmem:[#allocation21_spill] sm:$0xff]  ;;  %v10012_v4 = vld [vmem:[#allocation22_spill] sm:$0xff] }
 0x91e   : > { %6125 = vmatpush1.bf16.msra.mxu0 %v10004_v42  ;;  %6189 = vmatpush1.bf16.msra.mxu1 %v10005_v39  ;;  %v10013_v42 = vld [vmem:[#allocation23_spill] sm:$0xff]  ;;  %v10014_v39 = vld [vmem:[#allocation24_spill] sm:$0xff] }
 0x91f   : > { %6191 = vmatprep.subr.bf16.mxu0 %v10006_v10  ;;  %6255 = vmatprep.subr.bf16.mxu1 %v10007_v30  ;;  %v10015_v10 = vld [vmem:[#allocation25_spill] sm:$0xff]  ;;  %v10016_v30 = vld [vmem:[#allocation26_spill] sm:$0xff] }
 0x921   : > { %3499 = vmatmul.mubr.f32.vlgmr.msra.gmra.mrb[34].mxu0 %v8710_v61  ;;  %3570 = vmatmul.mubr.f32.vlgmr.msra.gmra.mrb[34].mxu1 %v8710_v61  ;;  %v10018_v61 = vld [vmem:[#allocation28_spill] sm:$0xff] }
 0x922   : > { %6193 = vmatpush1.bf16.msra.mxu0 %v10008_v48  ;;  %6257 = vmatpush1.bf16.msra.mxu1 %v10009_v43  ;;  %v10019_v48 = vld [vmem:[#allocation29_spill] sm:$0xff]  ;;  %v10020_v43 = vld [vmem:[#allocation30_spill] sm:$0xff] }
 0x923   : > { %6195 = vmatprep.subr.bf16.mxu0 %v10010_v8  ;;  %6259 = vmatprep.subr.bf16.mxu1 %v10011_v18  ;;  %v10021_v8 = vld [vmem:[#allocation31_spill] sm:$0xff]  ;;  %v10022_v18 = vld [vmem:[#allocation32_spill] sm:$0xff] }
 0x926   : > { %6197 = vmatpush1.bf16.msra.mxu0 %v10012_v4  ;;  %6261 = vmatpush1.bf16.msra.mxu1 %v10013_v42  ;;  %v10023_v4 = vld [vmem:[#allocation33_spill] sm:$0xff]  ;;  %v10024_v42 = vld [vmem:[#allocation34_spill] sm:$0xff] }
 0x927   : > { %6199 = vmatprep.subr.bf16.mxu0 %v10014_v39  ;;  %6263 = vmatprep.subr.bf16.mxu1 %v10015_v10  ;;  %v10025_v39 = vld [vmem:[#allocation35_spill] sm:$0xff]  ;;  %v10026_v10 = vld [vmem:[#allocation36_spill] sm:$0xff] }
 0x92a   : > { %6201 = vmatpush1.bf16.msra.mxu0 %v10016_v30  ;;  %6265 = vmatpush1.bf16.msra.mxu1 %v10017_v45  ;;  %v10027_v30 = vld [vmem:[#allocation37_spill] sm:$0xff]  ;;  %v10028_v45 = vld [vmem:[#allocation38_spill] sm:$0xff] }
 0x92b   : > { %6203 = vmatprep.subr.bf16.mxu0 %v10018_v61  ;;  %6267 = vmatprep.subr.bf16.mxu1 %v10019_v48  ;;  %v10029_v61 = vld [vmem:[#allocation39_spill] sm:$0xff]  ;;  %v10030_v48 = vld [vmem:[#allocation40_spill] sm:$0xff] }
 0x92e   : > { %6205 = vmatpush1.bf16.msra.mxu0 %v10020_v43  ;;  %6269 = vmatpush1.bf16.msra.mxu1 %v10021_v8  ;;  %v10031_v43 = vld [vmem:[#allocation41_spill] sm:$0xff]  ;;  %v10032_v8 = vld [vmem:[#allocation42_spill] sm:$0xff] }
 0x92f   : > { %6207 = vmatprep.subr.bf16.mxu0 %v10022_v18  ;;  %6271 = vmatprep.subr.bf16.mxu1 %v10023_v4  ;;  %v10033_v18 = vld [vmem:[#allocation43_spill] sm:$0xff]  ;;  %v10034_v4 = vld [vmem:[#allocation44_spill] sm:$0xff] }
 0x932   : > { %6209 = vmatpush1.bf16.msra.mxu0 %v10024_v42  ;;  %6273 = vmatpush1.bf16.msra.mxu1 %v10025_v39  ;;  %v10035_v42 = vld [vmem:[#allocation45_spill] sm:$0xff]  ;;  %v10036_v39 = vld [vmem:[#allocation46_spill] sm:$0xff] }
 0x933   : > { %6211 = vmatprep.subr.bf16.mxu0 %v10026_v10  ;;  %6275 = vmatprep.subr.bf16.mxu1 %v10027_v30  ;;  %v10037_v10 = vld [vmem:[#allocation47_spill] sm:$0xff]  ;;  %v10038_v30 = vld [vmem:[#allocation48_spill] sm:$0xff] }
 0x936   : > { %6213 = vmatpush1.bf16.msra.mxu0 %v10028_v45  ;;  %6277 = vmatpush1.bf16.msra.mxu1 %v10029_v61  ;;  %v10039_v45 = vld [vmem:[#allocation49_spill] sm:$0xff]  ;;  %v10040_v61 = vld [vmem:[#allocation50_spill] sm:$0xff] }
 0x937   : > { %6215 = vmatprep.subr.bf16.mxu0 %v10030_v48  ;;  %6279 = vmatprep.subr.bf16.mxu1 %v10031_v43  ;;  %v10041_v48 = vld [vmem:[#allocation51_spill] sm:$0xff]  ;;  %v10042_v43 = vld [vmem:[#allocation52_spill] sm:$0xff] }
 0x93a   : > { %6217 = vmatpush1.bf16.msra.mxu0 %v10032_v8  ;;  %6281 = vmatpush1.bf16.msra.mxu1 %v10033_v18  ;;  %v10043_v8 = vld [vmem:[#allocation53_spill] sm:$0xff]  ;;  %v10044_v18 = vld [vmem:[#allocation54_spill] sm:$0xff] }
 0x93b   : > { %6219 = vmatprep.subr.bf16.mxu0 %v10034_v4  ;;  %6283 = vmatprep.subr.bf16.mxu1 %v10035_v42  ;;  %v10045_v4 = vld [vmem:[#allocation55_spill] sm:$0xff]  ;;  %v10046_v42 = vld [vmem:[#allocation56_spill] sm:$0xff] }
 0x93e   : > { %6221 = vmatpush1.bf16.msra.mxu0 %v10036_v39  ;;  %6285 = vmatpush1.bf16.msra.mxu1 %v10037_v10  ;;  %v10047_v39 = vld [vmem:[#allocation57_spill] sm:$0xff]  ;;  %v10048_v10 = vld [vmem:[#allocation58_spill] sm:$0xff] }
 0x93f   : > { %6223 = vmatprep.subr.bf16.mxu0 %v10038_v30  ;;  %6287 = vmatprep.subr.bf16.mxu1 %v10039_v45  ;;  %v10049_v30 = vld [vmem:[#allocation59_spill] sm:$0xff]  ;;  %v10050_v45 = vld [vmem:[#allocation60_spill] sm:$0xff] }
 0x942   : > { %6225 = vmatpush1.bf16.msra.mxu0 %v10040_v61  ;;  %6289 = vmatpush1.bf16.msra.mxu1 %v10041_v48  ;;  %v10051_v61 = vld [vmem:[#allocation61_spill] sm:$0xff]  ;;  %v10052_v48 = vld [vmem:[#allocation62_spill] sm:$0xff] }
 0x943   : > { %6227 = vmatprep.subr.bf16.mxu0 %v10042_v43  ;;  %6291 = vmatprep.subr.bf16.mxu1 %v10043_v8  ;;  %v10053_v43 = vld [vmem:[#allocation63_spill] sm:$0xff]  ;;  %v10054_v8 = vld [vmem:[#allocation64_spill] sm:$0xff] }
 0x946   : > { %6229 = vmatpush1.bf16.msra.mxu0 %v10044_v18  ;;  %6293 = vmatpush1.bf16.msra.mxu1 %v10045_v4  ;;  %v10055_v18 = vld [vmem:[#allocation65_spill] sm:$0xff]  ;;  %v10056_v4 = vld [vmem:[#allocation66_spill] sm:$0xff] }
 0x947   : > { %6231 = vmatprep.subr.bf16.mxu0 %v10046_v42  ;;  %6295 = vmatprep.subr.bf16.mxu1 %v10047_v39  ;;  %v10057_v42 = vld [vmem:[#allocation67_spill] sm:$0xff]  ;;  %v10058_v39 = vld [vmem:[#allocation68_spill] sm:$0xff] }
 0x94a   : > { %6233 = vmatpush1.bf16.msra.mxu0 %v10048_v10  ;;  %6297 = vmatpush1.bf16.msra.mxu1 %v10049_v30  ;;  %v10059_v10 = vld [vmem:[#allocation69_spill] sm:$0xff]  ;;  %v10060_v30 = vld [vmem:[#allocation70_spill] sm:$0xff] }
 0x94b   : > { %6235 = vmatprep.subr.bf16.mxu0 %v10050_v45  ;;  %6299 = vmatprep.subr.bf16.mxu1 %v10051_v61  ;;  %v10061_v45 = vld [vmem:[#allocation71_spill] sm:$0xff]  ;;  %v10062_v61 = vld [vmem:[#allocation72_spill] sm:$0xff] }
 0x94e   : > { %6237 = vmatpush1.bf16.msra.mxu0 %v10052_v48  ;;  %6301 = vmatpush1.bf16.msra.mxu1 %v10053_v43  ;;  %v10063_v48 = vld [vmem:[#allocation73_spill] sm:$0xff]  ;;  %v10064_v43 = vld [vmem:[#allocation74_spill] sm:$0xff] }
 0x94f   : > { %6239 = vmatprep.subr.bf16.mxu0 %v10054_v8  ;;  %6303 = vmatprep.subr.bf16.mxu1 %v10055_v18  ;;  %v10065_v8 = vld [vmem:[#allocation75_spill] sm:$0xff]  ;;  %v10066_v18 = vld [vmem:[#allocation76_spill] sm:$0xff] }
 0x952   : > { %6241 = vmatpush1.bf16.msra.mxu0 %v10056_v4  ;;  %6305 = vmatpush1.bf16.msra.mxu1 %v10057_v42  ;;  %v10067_v4 = vld [vmem:[#allocation77_spill] sm:$0xff]  ;;  %v10068_v42 = vld [vmem:[#allocation78_spill] sm:$0xff] }
 0x953   : > { %6243 = vmatprep.subr.bf16.mxu0 %v10058_v39  ;;  %6307 = vmatprep.subr.bf16.mxu1 %v10059_v10  ;;  %v10069_v39 = vld [vmem:[#allocation79_spill] sm:$0xff]  ;;  %v10070_v10 = vld [vmem:[#allocation80_spill] sm:$0xff] }
 0x956   : > { %6245 = vmatpush1.bf16.msra.mxu0 %v10060_v30  ;;  %6309 = vmatpush1.bf16.msra.mxu1 %v10061_v45  ;;  %v10071_v30 = vld [vmem:[#allocation81_spill] sm:$0xff]  ;;  %v10072_v45 = vld [vmem:[#allocation86_spill] sm:$0xff] }
 0x957   : > { %6247 = vmatprep.subr.bf16.mxu0 %v10062_v61  ;;  %6311 = vmatprep.subr.bf16.mxu1 %v10063_v48  ;;  %v643_v61 = vadd.f32 %v10072_v45, %v7929_v36  ;;  %v10073_v48 = vld [vmem:[#allocation84_spill] sm:$0xff] }
 0x95a   : > { %6249 = vmatpush1.bf16.msra.mxu0 %v10064_v43  ;;  %6313 = vmatpush1.bf16.msra.mxu1 %v10065_v8  ;;  %v530_v43 = vadd.f32 %v10074_v24, %v10073_v48 }
 0x95b   : > { %6251 = vmatprep.subr.bf16.mxu0 %v10066_v18  ;;  %6315 = vmatprep.subr.bf16.mxu1 %v10067_v4 }
 0x95e   : > { %6253 = vmatpush1.bf16.msra.mxu0 %v10068_v42  ;;  %6317 = vmatpush1.bf16.msra.mxu1 %v10069_v39  ;;  %v10075_v42 = vld [vmem:[#allocation87_spill] sm:$0xff]  ;;  %v10077_v39 = vld [vmem:[#allocation89_spill] sm:$0xff] }
 0x95f   : > { %6319 = vmatprep.subr.bf16.mxu0 %v10070_v10  ;;  %6383 = vmatprep.subr.bf16.mxu1 %v10071_v30  ;;  %v8850_v60 = vadd.f32 %v10075_v42, %v9610_v49  ;;  %v8854_v10 = vadd.f32 %v10077_v39, %v9704_v11 }
 0x961   : > { %10076 = vst [vmem:[#allocation91_spill] sm:$0xff] %v8850_v60 }
 0x9b4   : > { %v3358_v62 = vpop.f32.mrb[32].mxu0  ;;  %v3429_v8 = vpop.f32.mrb[32].mxu1 }
 0x9b5   : > { %v3359_v40 = vadd.f32 %v3358_v62, %v530_v43  ;;  %v3430_v18 = vadd.f32 %v3429_v8, %v643_v61  ;;  %v3360_v44 = vpop.f32.mrb[33].mxu0  ;;  %v3431_v4 = vpop.f32.mrb[33].mxu1 }
 0x9b6   : > { %v3361_v30 = vadd.f32 %v3360_v44, %v8850_v60  ;;  %v3432_v36 = vadd.f32 %v3431_v4, %v8854_v10  ;;  %v10078_v44 = vld [vmem:[#allocation92_spill] sm:$0xff]  ;;  %v10079_v4 = vld [vmem:[#allocation90_spill] sm:$0xff] }
 0x9b7   : > { %v4284_v45 = vmul.f32 -1.442695, %v3359_v40  ;;  %v4286_v24 = vmul.f32 -1.442695, %v3430_v18  ;;  %v756_v60 = vadd.f32 %v10078_v44, %v9612_v14  ;;  %v10080_v40 = vld [vmem:[#allocation95_spill] sm:$0xff] }
 0x9b8   : > { %v4285_v48 = vmul.f32 -1.442695, %v3361_v30  ;;  %v4287_v31 = vmul.f32 -1.442695, %v3432_v36  ;;  %v869_v18 = vadd.f32 %v10080_v40, %v10079_v4  ;;  %v10081_v30 = vld [vmem:[#allocation158_spill] sm:$0xff]  ;;  %v10082_v36 = vld [vmem:[#allocation96_spill] sm:$0xff] }
 0x9b9   : > { %6870 = vpow2.f32 %v4284_v45  ;;  %v8864_v45 = vadd.f32 %v10082_v36, %v10081_v30 }
 0x9ba   : > { %6872 = vpow2.f32 %v4286_v24 }
 0x9bb   : > { %6874 = vpow2.f32 %v4285_v48 }
 0x9bc   : > { %6876 = vpow2.f32 %v4287_v31  ;;  %v10083_v31 = vld [vmem:[#allocation99_spill] sm:$0xff] }
 0x9bd   : > { %v8868_v24 = vadd.f32 %v10083_v31, %v7947_v54 }
 0x9c3   : > { %v6871_v62 = vpop.eup %6870 }
 0x9c4   : > { %v6873_v61 = vpop.eup %6872  ;;  %v3582_v8 = vadd.f32 1.0, %v6871_v62 }
 0x9c5   : > { %v6875_v49 = vpop.eup %6874  ;;  %v3594_v42 = vadd.f32 1.0, %v6873_v61 }
 0x9c6   : > { %v6877_v43 = vpop.eup %6876  ;;  %v3583_v11 = vadd.f32 1.0, %v6875_v49  ;;  %6878 = vrcp.f32 %v3582_v8 }
 0x9c7   : > { %v3595_v39 = vadd.f32 1.0, %v6877_v43  ;;  %6880 = vrcp.f32 %v3594_v42 }
 0x9c8   : > { %6882 = vrcp.f32 %v3583_v11 }
 0x9c9   : > { %6884 = vrcp.f32 %v3595_v39 }
 0x9d0   : > { %v6879_v54 = vpop.eup %6878 }
 0x9d1   : > { %v6881_v42 = vpop.eup %6880 }
 0x9d2   : > { %v6883_v30 = vpop.eup %6882 }
 0x9d3   : > { %v6885_v36 = vpop.eup %6884 }
 0x9f4   : > { %v3500_v48 = vpop.f32.mrb[34].mxu0  ;;  %v3571_v62 = vpop.f32.mrb[34].mxu1 }
 0x9f5   : > { %v3501_v61 = vadd.f32 %v3500_v48, %v756_v60  ;;  %v3572_v49 = vadd.f32 %v3571_v62, %v869_v18  ;;  %v3502_v43 = vpop.f32.mrb[35].mxu0  ;;  %v3573_v14 = vpop.f32.mrb[35].mxu1  ;;  %v3614_v18 = vmul.f32 %v6881_v42, %v8704_v47  ;;  %v3615_v48 = vmul.f32 %v6885_v36, %v8706_v2 }
 0x9f6   : > { %v3503_v44 = vadd.f32 %v3502_v43, %v8864_v45  ;;  %v3574_v8 = vadd.f32 %v3573_v14, %v8868_v24 }
 0x9f7   : > { %6886 = vtanh.f32 %v3501_v61  ;;  %v4288_v4 = vmul.f32 -1.442695, %v3572_v49 }
 0x9f8   : > { %6888 = vtanh.f32 %v3503_v44  ;;  %v4289_v40 = vmul.f32 -1.442695, %v3574_v8 }
 0x9f9   : > { %6890 = vpow2.f32 %v4288_v4 }
 0x9fa   : > { %6892 = vpow2.f32 %v4289_v40 }
 0xa01   : > { %v6887_v11 = vpop.eup %6886 }
 0xa02   : > { %v6889_v60 = vpop.eup %6888  ;;  %v3616_v31 = vmul.f32 %v6887_v11, %v6879_v54 }
 0xa03   : > { %v6891_v39 = vpop.eup %6890  ;;  %v3617_v62 = vmul.f32 %v6889_v60, %v6883_v30 }
 0xa04   : > { %v6893_v43 = vpop.eup %6892  ;;  %v3618_v61 = vadd.f32 %v3616_v31, %v3614_v18  ;;  %v3608_v49 = vadd.f32 1.0, %v6891_v39 }
 0xa05   : > { %v8874_v14 = vadd.f32 %v3617_v62, %v3615_v48  ;;  %v3609_v44 = vadd.f32 1.0, %v6893_v43 }
 0xa06   : > { %6894 = vtanh.f32 %v3618_v61 }
 0xa07   : > { %6896 = vrcp.f32 %v3608_v49 }
 0xa08   : > { %6898 = vtanh.f32 %v8874_v14 }
 0xa09   : > { %6900 = vrcp.f32 %v3609_v44 }
 0xa10   : > { %v6895_v8 = vpop.eup %6894 }
 0xa11   : > { %v6897_v4 = vpop.eup %6896 }
 0xa12   : > { %v6899_v40 = vpop.eup %6898  ;;  %v8877_v47 = vmul.f32 %v6897_v4, %v6895_v8 }
 0xa13   : > { %v6901_v54 = vpop.eup %6900 }
 0xa14   : > { %v3623_v42 = vmul.f32 %v6901_v54, %v6899_v40 }
 0xa16   : > { %3625 = vst [vmem:[#allocation3 + $0x30] sm:$0xff] %v3623_v42  ;;  %3694 = vmatprep.mubr.f32.mxu0 %v3623_v42  ;;  %3764 = vmatprep.mubr.f32.mxu1 %v3623_v42 }
 0xa17   : > { %3695 = vmatmul.mubr.f32.vlgmr.msra.gmra.mrb[36].mxu0 %v8877_v47  ;;  %3765 = vmatmul.mubr.f32.vlgmr.msra.gmra.mrb[36].mxu1 %v8877_v47 }
 0xa18   : > { %6321 = vmatpush1.bf16.msra.mxu0 %v9523_v46  ;;  %6385 = vmatpush1.bf16.msra.mxu1 %v9524_v5  ;;  %v10084_v46 = vld [vmem:[#allocation136_spill] sm:$0xff]  ;;  %v10085_v5 = vld [vmem:[#allocation137_spill] sm:$0xff] }
 0xa19   : > { %3834 = vmatprep.mubr.f32.mxu0 %v3623_v42  ;;  %3904 = vmatprep.mubr.f32.mxu1 %v3623_v42 }
 0xa1a   : > { %6323 = vmatprep.subr.bf16.mxu0 %v9525_v57  ;;  %6387 = vmatprep.subr.bf16.mxu1 %v9526_v15  ;;  %v10086_v57 = vld [vmem:[#allocation138_spill] sm:$0xff]  ;;  %v10087_v15 = vld [vmem:[#allocation139_spill] sm:$0xff] }
 0xa1c   : > { %6325 = vmatpush1.bf16.msra.mxu0 %v9527_v51  ;;  %6389 = vmatpush1.bf16.msra.mxu1 %v9528_v32  ;;  %v10088_v51 = vld [vmem:[#allocation140_spill] sm:$0xff]  ;;  %v10089_v32 = vld [vmem:[#allocation141_spill] sm:$0xff] }
 0xa1d   : > { %6327 = vmatprep.subr.bf16.mxu0 %v9615_v27  ;;  %6391 = vmatprep.subr.bf16.mxu1 %v9616_v34  ;;  %v10090_v27 = vld [vmem:[#allocation142_spill] sm:$0xff]  ;;  %v10091_v34 = vld [vmem:[#allocation143_spill] sm:$0xff] }
 0xa20   : > { %6329 = vmatpush1.bf16.msra.mxu0 %v9617_v50  ;;  %6393 = vmatpush1.bf16.msra.mxu1 %v9618_v63  ;;  %v10092_v50 = vld [vmem:[#allocation144_spill] sm:$0xff]  ;;  %v10093_v63 = vld [vmem:[#allocation145_spill] sm:$0xff] }
 0xa21   : > { %6331 = vmatprep.subr.bf16.mxu0 %v9619_v0  ;;  %6395 = vmatprep.subr.bf16.mxu1 %v9620_v53  ;;  %v10094_v0 = vld [vmem:[#allocation146_spill] sm:$0xff]  ;;  %v10095_v53 = vld [vmem:[#allocation147_spill] sm:$0xff] }
 0xa24   : > { %6333 = vmatpush1.bf16.msra.mxu0 %v9707_v9  ;;  %6397 = vmatpush1.bf16.msra.mxu1 %v9708_v21 }
 0xa25   : > { %6335 = vmatprep.subr.bf16.mxu0 %v9709_v1  ;;  %6399 = vmatprep.subr.bf16.mxu1 %v9710_v52 }
 0xa28   : > { %6337 = vmatpush1.bf16.msra.mxu0 %v9711_v56  ;;  %6401 = vmatpush1.bf16.msra.mxu1 %v9712_v55  ;;  %v10106_v56 = vld [vmem:[#allocation91_spill] sm:$0xff] }
 0xa29   : > { %6339 = vmatprep.subr.bf16.mxu0 %v9713_v3  ;;  %6403 = vmatprep.subr.bf16.mxu1 %v9714_v58 }
 0xa2c   : > { %6341 = vmatpush1.bf16.msra.mxu0 %v9715_v16  ;;  %6405 = vmatpush1.bf16.msra.mxu1 %v9716_v17 }
 0xa2d   : > { %6343 = vmatprep.subr.bf16.mxu0 %v9717_v12  ;;  %6407 = vmatprep.subr.bf16.mxu1 %v9718_v35 }
 0xa30   : > { %6345 = vmatpush1.bf16.msra.mxu0 %v9719_v25  ;;  %6409 = vmatpush1.bf16.msra.mxu1 %v9720_v20 }
 0xa31   : > { %6347 = vmatprep.subr.bf16.mxu0 %v9721_v26  ;;  %6411 = vmatprep.subr.bf16.mxu1 %v9722_v22 }
 0xa34   : > { %6349 = vmatpush1.bf16.msra.mxu0 %v9637_v7  ;;  %6413 = vmatpush1.bf16.msra.mxu1 %v9638_v59  ;;  %v10101_v7 = vld [vmem:[#allocation153_spill] sm:$0xff]  ;;  %v10102_v59 = vld [vmem:[#allocation154_spill] sm:$0xff] }
 0xa35   : > { %6351 = vmatprep.subr.bf16.mxu0 %v9639_v23  ;;  %6415 = vmatprep.subr.bf16.mxu1 %v9640_v33  ;;  %v10103_v23 = vld [vmem:[#allocation155_spill] sm:$0xff]  ;;  %v10104_v33 = vld [vmem:[#allocation156_spill] sm:$0xff] }
 0xa38   : > { %6353 = vmatpush1.bf16.msra.mxu0 %v9641_v29  ;;  %6417 = vmatpush1.bf16.msra.mxu1 %v9642_v37  ;;  %v10105_v29 = vld [vmem:[#allocation157_spill] sm:$0xff] }
 0xa39   : > { %6355 = vmatprep.subr.bf16.mxu0 %v9643_v13  ;;  %6419 = vmatprep.subr.bf16.mxu1 %v9644_v6  ;;  %v10096_v13 = vld [vmem:[#allocation148_spill] sm:$0xff]  ;;  %v10097_v6 = vld [vmem:[#allocation149_spill] sm:$0xff] }
 0xa3c   : > { %6357 = vmatpush1.bf16.msra.mxu0 %v9645_v28  ;;  %6421 = vmatpush1.bf16.msra.mxu1 %v9646_v38  ;;  %v10098_v28 = vld [vmem:[#allocation150_spill] sm:$0xff]  ;;  %v10099_v38 = vld [vmem:[#allocation151_spill] sm:$0xff] }
 0xa3d   : > { %6359 = vmatprep.subr.bf16.mxu0 %v9647_v41  ;;  %6423 = vmatprep.subr.bf16.mxu1 %v9983_v19  ;;  %v10100_v41 = vld [vmem:[#allocation152_spill] sm:$0xff] }
 0xa40   : > { %6361 = vmatpush1.bf16.msra.mxu0 %v10084_v46  ;;  %6425 = vmatpush1.bf16.msra.mxu1 %v10085_v5 }
 0xa41   : > { %6363 = vmatprep.subr.bf16.mxu0 %v10086_v57  ;;  %6427 = vmatprep.subr.bf16.mxu1 %v10087_v15 }
 0xa44   : > { %6365 = vmatpush1.bf16.msra.mxu0 %v10088_v51  ;;  %6429 = vmatpush1.bf16.msra.mxu1 %v10089_v32 }
 0xa45   : > { %6367 = vmatprep.subr.bf16.mxu0 %v10090_v27  ;;  %6431 = vmatprep.subr.bf16.mxu1 %v10091_v34 }
 0xa48   : > { %6369 = vmatpush1.bf16.msra.mxu0 %v10092_v50  ;;  %6433 = vmatpush1.bf16.msra.mxu1 %v10093_v63 }
 0xa49   : > { %6371 = vmatprep.subr.bf16.mxu0 %v10094_v0  ;;  %6435 = vmatprep.subr.bf16.mxu1 %v10095_v53 }
 0xa4c   : > { %6373 = vmatpush1.bf16.msra.mxu0 %v10096_v13  ;;  %6437 = vmatpush1.bf16.msra.mxu1 %v10097_v6 }
 0xa4d   : > { %6375 = vmatprep.subr.bf16.mxu0 %v10098_v28  ;;  %6439 = vmatprep.subr.bf16.mxu1 %v10099_v38 }
 0xa50   : > { %6377 = vmatpush1.bf16.msra.mxu0 %v10100_v41  ;;  %6441 = vmatpush1.bf16.msra.mxu1 %v10101_v7 }
 0xa51   : > { %6379 = vmatprep.subr.bf16.mxu0 %v10102_v59  ;;  %6443 = vmatprep.subr.bf16.mxu1 %v10103_v23 }
 0xa54   : > { %6381 = vmatpush1.bf16.msra.mxu0 %v10104_v33  ;;  %6445 = vmatpush1.bf16.msra.mxu1 %v10105_v29 }
 0xa57   : > { %3835 = vmatmul.mubr.f32.vlgmr.msra.gmra.mrb[38].mxu0 %v8877_v47  ;;  %3905 = vmatmul.mubr.f32.vlgmr.msra.gmra.mrb[38].mxu1 %v8877_v47 }
 0xaea   : > { %v3696_v37 = vpop.f32.mrb[36].mxu0  ;;  %v3766_v9 = vpop.f32.mrb[36].mxu1 }
 0xaeb   : > { %v3697_v21 = vpop.f32.mrb[37].mxu0  ;;  %v3767_v1 = vpop.f32.mrb[37].mxu1 }
 0xaec   : > { %v3768_v52 = vadd.f32 %v3767_v1, %v8854_v10  ;;  %v3698_v55 = vadd.f32 %v3697_v21, %v10106_v56 }
 0xaee   : > { %v4291_v3 = vmul.f32 -1.442695, %v3768_v52  ;;  %v4290_v58 = vmul.f32 -1.442695, %v3698_v55 }
 0xaf0   : > { %6902 = vpow2.f32 %v4291_v3 }
 0xaf1   : > { %6904 = vpow2.f32 %v4290_v58 }
 0xafa   : > { %v6903_v16 = vpop.eup %6902 }
 0xafb   : > { %v6905_v17 = vpop.eup %6904  ;;  %v3919_v12 = vadd.f32 1.0, %v6903_v16 }
 0xafc   : > { %v3913_v35 = vadd.f32 1.0, %v6905_v17 }
 0xafd   : > { %6906 = vrcp.f32 %v3919_v12 }
 0xafe   : > { %6908 = vrcp.f32 %v3913_v35 }
 0xb07   : > { %v6907_v30 = vpop.eup %6906 }
 0xb08   : > { %v6909_v36 = vpop.eup %6908  ;;  %v3929_v60 = vmul.f32 %v6907_v30, %v8874_v14 }
 0xb2a   : > { %v3836_v25 = vpop.f32.mrb[38].mxu0  ;;  %v3906_v20 = vpop.f32.mrb[38].mxu1 }
 0xb2b   : > { %v3837_v26 = vpop.f32.mrb[39].mxu0  ;;  %v3907_v22 = vpop.f32.mrb[39].mxu1 }
 0xb2c   : > { %v3838_v2 = vadd.f32 %v3837_v26, %v8864_v45  ;;  %v3908_v19 = vadd.f32 %v3907_v22, %v8868_v24 }
 0xb2e   : > { %6910 = vtanh.f32 %v3838_v2  ;;  %v4292_v10 = vmul.f32 -1.442695, %v3908_v19 }
 0xb30   : > { %6912 = vpow2.f32 %v4292_v10 }
 0xb38   : > { %v6911_v11 = vpop.eup %6910 }
 0xb39   : > { %v3930_v18 = vmul.f32 %v6911_v11, %v6909_v36 }
 0xb3a   : > { %v6913_v31 = vpop.eup %6912 }
 0xb3b   : > { %v3931_v39 = vadd.f32 %v3930_v18, %v3929_v60  ;;  %v3926_v48 = vadd.f32 1.0, %v6913_v31 }
 0xb3d   : > { %6914 = vtanh.f32 %v3931_v39 }
 0xb3e   : > { %6916 = vrcp.f32 %v3926_v48 }
 0xb47   : > { %v6915_v62 = vpop.eup %6914 }
 0xb48   : > { %v6917_v43 = vpop.eup %6916 }
 0xb49   : > { %v3933_v45 = vmul.f32 %v6917_v43, %v6915_v62 }
 0xb4b   : > { %3935 = vst [vmem:[#allocation3 + $0x38] sm:$0xff] %v3933_v45 }
 0xb4c PF: > { %v3944_v24 = vld [vmem:[%s7305_s19] sm:$0xff]  ;;  %v3945_v61 = vld [vmem:[%s7305_s19 + $0x8] sm:$0xff]  ;;  %v3946_v49 = vld [vmem:[%s7305_s19 + $0x10] sm:$0xff]  ;;  %s4295_s28 = sshll.u32 %s7149_s25, 7  ;;  %s4093_s13 = sshll.u32 %s7320_s7, 4  ;;  %s8982_s13 = int_to_ptr.vmem [resolvable:$true] %s4093_s13 }
 0xb4d   : > { %v6446_v14 = vpack.c.bf16 %v3945_v61, %v3944_v24  ;;  %v3947_v44 = vld [vmem:[%s7305_s19 + $0x18] sm:$0xff]  ;;  %v3948_v4 = vld [vmem:[%s7305_s19 + $0x20] sm:$0xff]  ;;  %v3949_v40 = vld [vmem:[%s7305_s19 + $0x28] sm:$0xff]  ;;  %s8980_s26 = scalar_lea.hbm %s9035_s6, %s4295_s28  ;;  %s4081_s25 = scalar_lea.sflag [#allocation6], %s7302_s18 }
 0xb4e   : > { %v6450_v8 = vpack.c.bf16 %v3947_v44, %v3946_v49  ;;  %v6454_v47 = vpack.c.bf16 %v3949_v40, %v3948_v4  ;;  %v3936_v54 = vld [vmem:[#allocation3] sm:$0xff]  ;;  %v3950_v46 = vld [vmem:[%s7305_s19 + $0x30] sm:$0xff]  ;;  %v3951_v5 = vld [vmem:[%s7305_s19 + $0x38] sm:$0xff]  ;;  %s7004_s8 = scalar_lea.vmem %s8982_s13, 1024  ;;  %p10107_p7 = scmp.ne.s32.totalorder %s9331_s9, 0 }
 0xb4f   : > { %6447 = vmatprep.subr.bf16.mxu0 %v6446_v14  ;;  %6574 = vmatprep.subr.bf16.mxu1 %v6446_v14  ;;  %v3940_v42 = vld [vmem:[#allocation3 + $0x20] sm:$0xff]  ;;  %v6458_v57 = vpack.c.bf16 %v3951_v5, %v3950_v46  ;;  %v3953_v51 = vld [vmem:[%s7305_s19 + $0x48] sm:$0xff]  ;;  %v3954_v27 = vld [vmem:[%s7305_s19 + $0x50] sm:$0xff]  ;;  %p7005_p1 = scmp.ne.s32.totalorder %s8982_s13, %s7004_s8  ;;  %s7089_s14 = smov [#allocation10]  }
 0xb50   : > { %6449 = vmatpush3.bf16.msra.mxu0 %v6446_v14  ;;  %6582 = vmatpush3.bf16.msra.mxu1 %v6446_v14  ;;  %v3952_v15 = vld [vmem:[%s7305_s19 + $0x40] sm:$0xff]  ;;  %v3955_v34 = vld [vmem:[%s7305_s19 + $0x58] sm:$0xff]  ;;  %v3957_v0 = vld [vmem:[%s7305_s19 + $0x68] sm:$0xff]  ;;  %s7008_s16 = sshll.u32 %s7089_s14, 4  ;;  %s7009_s16 = int_to_ptr.vmem [resolvable:$false] %s7008_s16 }
 0xb51   : > { %6451 = vmatprep.subr.bf16.mxu0 %v6450_v8  ;;  %6575 = vmatprep.subr.bf16.mxu1 %v6450_v8  ;;  %v6462_v32 = vpack.c.bf16 %v3953_v51, %v3952_v15  ;;  %v6466_v50 = vpack.c.bf16 %v3955_v34, %v3954_v27  ;;  %v3956_v63 = vld [vmem:[%s7305_s19 + $0x60] sm:$0xff]  ;;  %v3958_v13 = vld [vmem:[%s7305_s19 + $0x70] sm:$0xff]  ;;  %v3959_v6 = vld [vmem:[%s7305_s19 + $0x78] sm:$0xff]  ;;  %p7006_p0 = pnand %p7005_p1, %p10107_p7  ;;  %s7010_s15 = scalar_lea.vmem %s7009_s16, 2048 }
 0xb52   : > { %4354 = vmatprep.mubr.f32.mxu0 %v3936_v54  ;;  %4360 = vmatprep.mubr.f32.mxu1 %v3940_v42  ;;  %v6470_v53 = vpack.c.bf16 %v3957_v0, %v3956_v63  ;;  %v6474_v28 = vpack.c.bf16 %v3959_v6, %v3958_v13  ;;  %v3937_v38 = vld [vmem:[#allocation3 + $0x8] sm:$0xff]  ;;  %v3938_v7 = vld [vmem:[#allocation3 + $0x10] sm:$0xff]  ;;  %v3939_v23 = vld [vmem:[#allocation3 + $0x18] sm:$0xff]  ;;  %p7011_p11 = scmp.lt.s32.totalorder %s8982_s13, %s7009_s16  ;;  %p7012_p12 = scmp.lt.s32.totalorder %s7010_s15, %s7004_s8 }
 0xb53   : > { %v3941_v41 = vld [vmem:[#allocation3 + $0x28] sm:$0xff]  ;;  %v3942_v59 = vld [vmem:[#allocation3 + $0x30] sm:$0xff]  ;;  %v3943_v33 = vld [vmem:[#allocation3 + $0x38] sm:$0xff]  ;;  %p7007_p5 = pneg %p7006_p0 }
 0xb54   : > { %6453 = vmatpush3.bf16.msra.mxu0 %v6450_v8  ;;  %6583 = vmatpush3.bf16.msra.mxu1 %v6450_v8  ;;  %v4293_v29 = vld [vmem:[%s309_s29] ss:$0 sm:$0xff]  ;;  %p7013_p4 = por %p7012_p12, %p7011_p11 }
 0xb55   : > { %6455 = vmatprep.subr.bf16.mxu0 %v6454_v47  ;;  %6576 = vmatprep.subr.bf16.mxu1 %v6454_v47 }
 0xb56   : > { %p7014_p6 = pnand %p7013_p4, %p7007_p5 }
 0xb58   : > { %6457 = vmatpush3.bf16.msra.mxu0 %v6454_v47  ;;  %6584 = vmatpush3.bf16.msra.mxu1 %v6454_v47 }
 0xb59   : > { %6459 = vmatprep.subr.bf16.mxu0 %v6458_v57  ;;  %6577 = vmatprep.subr.bf16.mxu1 %v6458_v57 }
 0xb5c   : > { %6461 = vmatpush3.bf16.msra.mxu0 %v6458_v57  ;;  %6585 = vmatpush3.bf16.msra.mxu1 %v6458_v57 }
 0xb5d   : > { %6463 = vmatprep.subr.bf16.mxu0 %v6462_v32  ;;  %6578 = vmatprep.subr.bf16.mxu1 %v6462_v32 }
 0xb60   : > { %6465 = vmatpush3.bf16.msra.mxu0 %v6462_v32  ;;  %6586 = vmatpush3.bf16.msra.mxu1 %v6462_v32 }
 0xb61   : > { %6467 = vmatprep.subr.bf16.mxu0 %v6466_v50  ;;  %6579 = vmatprep.subr.bf16.mxu1 %v6466_v50 }
 0xb64   : > { %6469 = vmatpush3.bf16.msra.mxu0 %v6466_v50  ;;  %6587 = vmatpush3.bf16.msra.mxu1 %v6466_v50 }
 0xb65   : > { %6471 = vmatprep.subr.bf16.mxu0 %v6470_v53  ;;  %6580 = vmatprep.subr.bf16.mxu1 %v6470_v53 }
 0xb68   : > { %6473 = vmatpush3.bf16.msra.mxu0 %v6470_v53  ;;  %6588 = vmatpush3.bf16.msra.mxu1 %v6470_v53 }
 0xb69   : > { %6475 = vmatprep.subr.bf16.mxu0 %v6474_v28  ;;  %6581 = vmatprep.subr.bf16.mxu1 %v6474_v28 }
 0xb6c   : > { %6477 = vmatpush3.bf16.msra.mxu0 %v6474_v28  ;;  %6589 = vmatpush3.bf16.msra.mxu1 %v6474_v28 }
 0xb6f   : > { %4355 = vmatmul.mubr.f32.vlgmr.msra.gmra.mrb[0].mxu0 %v3937_v38  ;;  %4361 = vmatmul.mubr.f32.vlgmr.msra.gmra.mrb[0].mxu1 %v3941_v41 }
 0xb70   : > { %4357 = vmatprep.mubr.f32.mxu0 %v3938_v7  ;;  %4363 = vmatprep.mubr.f32.mxu1 %v3942_v59 }
 0xb73   : > { %4358 = vmatmul.mubr.f32.gmra.mrb[2].mxu0 %v3939_v23  ;;  %4364 = vmatmul.mubr.f32.gmra.mrb[2].mxu1 %v3943_v33 }
 0xc42   : > { %v4356_v37 = vpop.f32.mrb[0].mxu0  ;;  %v4362_v9 = vpop.f32.mrb[0].mxu1 }
 0xc43   : > { %v4039_v21 = vadd.f32 %v4356_v37, %v4293_v29  ;;  %v4059_v1 = vadd.f32 %v4362_v9, %v4293_v29  ;;  %v4033_v52 = vpop.f32.mrb[1].mxu0  ;;  %v4053_v56 = vpop.f32.mrb[1].mxu1 }
 0xc44   : > { %v4034_v55 = vadd.f32 %v4293_v29, %v4033_v52  ;;  %v4054_v3 = vadd.f32 %v4293_v29, %v4053_v56 }
 0xc45   : > { %4073 = vst [vmem:[%s7320_s7 + $0x8] sm:$0xff] %v4039_v21  ;;  %4077 = vst [vmem:[%s7320_s7 + $0x28] sm:$0xff] %v4059_v1 }
 0xc46   : > { %4072 = vst [vmem:[%s7320_s7] sm:$0xff] %v4034_v55  ;;  %4076 = vst [vmem:[%s7320_s7 + $0x20] sm:$0xff] %v4054_v3  ;;  %v4359_v58 = vpop.f32.mrb[2].mxu0  ;;  %v4365_v16 = vpop.f32.mrb[2].mxu1 }
 0xc47   : > { %v4049_v17 = vadd.f32 %v4359_v58, %v4293_v29  ;;  %v4069_v12 = vadd.f32 %v4365_v16, %v4293_v29  ;;  %v4043_v35 = vpop.f32.mrb[3].mxu0  ;;  %v4063_v25 = vpop.f32.mrb[3].mxu1 }
 0xc48   : > { %v4044_v20 = vadd.f32 %v4293_v29, %v4043_v35  ;;  %v4064_v26 = vadd.f32 %v4293_v29, %v4063_v25 }
 0xc49   : > { %4075 = vst [vmem:[%s7320_s7 + $0x18] sm:$0xff] %v4049_v17  ;;  %4079 = vst [vmem:[%s7320_s7 + $0x38] sm:$0xff] %v4069_v12 }
 0xc4a   : > { %4074 = vst [vmem:[%s7320_s7 + $0x10] sm:$0xff] %v4044_v20  ;;  %4078 = vst [vmem:[%s7320_s7 + $0x30] sm:$0xff] %v4064_v26 }
 0xc4b   : > { %7017 = shalt.err (!%p7014_p6)
}
 0xc4c   : > { %s7018_s7 = scalar_lea.hbm %s8980_s26, 1024  ;;  %s7022_s11 = scalar_lea.hbm %s9035_s6, 3072 }
 0xc4d   : > { %p7019_p13 = scmp.ne.s32.totalorder %s8980_s26, %s7018_s7  ;;  %p7023_p8 = scmp.lt.u32.totalorder %s8980_s26, %s9035_s6 }
 0xc4e   : > { %p7024_p10 = scmp.lt.u32.totalorder %s7022_s11, %s7018_s7  ;;  %p7026_p1 = scmp.lt.u32.totalorder %s7018_s7, %s8980_s26 }
 0xc4f   : > { %p7020_p3 = pnand %p7019_p13, %p10107_p7 }
 0xc50   : > { %p7025_p2 = por %p7024_p10, %p7023_p8 }
 0xc51   : > { %p7021_p9 = pneg %p7020_p3 }
 0xc52   : > { %p7027_p0 = por %p7026_p1, %p7025_p2 }
 0xc54   : > { %p7028_p5 = pnand %p7027_p0, %p7021_p9 }
 0xc56   : > { %7031 = shalt.err (!%p7028_p5)
}
 0xc57   : > { %s7090_s28 = smov 128   ;;  %s7091_s12 = smov 384  }
 0xc58   : > { %s7092_s29 = smov 8  }
 0xc59   : > { %6600 = dma.vmem_to_hbm [thread:$0]  (%p10107_p7), %s8982_s13, 1024, %s8980_s26, %s4081_s25, %s7090_s28, %s7091_s12, %s7092_s29  }
 0xc5a PF: > { %p6622_p11 = scmp.ge.s32.totalorder %s7078_s24, 2  ;;  %s4108_s8 = sand.u32 1, %s7066_s21  }
 0xc5b   : > { %p10108_p12 = scmp.ne.s32.totalorder %s9332_s10, 0  ;;  %s4109_s14 = scalar_lea.sflag [#allocation6], %s4108_s8 }
 0xc5d   : > { %p6614_p4 = pnand %p6622_p11, %p10108_p12 }
 0xc5f   : > { %7061 = dma.done.wait (!%p6614_p4), %s4109_s14, 1024  }
 0xc60   : > { %7063 = vsyncadd (!%p6614_p4), %s4109_s14, 4294966272  ;;  %s10109_s16 = sld [smem:[#allocation15_spill]]  ;;  %p18_p6 = scmp.ge.s32.totalorder %s7153_s27, 5  }
 0xc61   : > { %s10110_s21 = smov %s7070_s22  ;;  %s10111_s22 = smov %s7074_s23 }
 0xc62   : > { %s10113_s24 = smov %s7153_s27  ;;  %20 = sbr.rel (!%p18_p6) target bundleno = 5 (0x5), region = 117 }
 0xc66   : > { %s10112_s23 = smov %s10109_s16 }
 0xc69   :  { %4114 = vsyncpa [#allocation5], 1 }
 0xc6a   :  { %4116 = vsyncpa [#allocation5 + $0x1], 1 }
 0xc6b   :  { %4117 = vsyncpa [#allocation8], 1 }
 0xc6c   :  { %4118 = vsyncpa [#allocation6], 1 }
 0xc6d   :  { %4120 = vsyncpa [#allocation6 + $0x1], 1 }

</bundles_post_ra>
